<compile_context>
chip_gen: v6e
topology: v6e:2x2x1
jax: 0.10.0
libtpu: 0.0.40
codegen_flags: <defaults>
</compile_context>

<pallas_src>
import functools
import math

import jax
import jax.numpy as jnp
from jax.experimental import pallas as pl
from jax.experimental.pallas import tpu as pltpu


def _pool_out(n):
    """PyTorch MaxPool2d(kernel_size=3, stride=2, padding=1) output size."""
    return (n - 1) // 2 + 1


def _pooled_geometry(H, W, times):
    """Per-level (H, W) after each of the `times` pools."""
    sizes = []
    for _ in range(times):
        H, W = _pool_out(H), _pool_out(W)
        sizes.append((H, W))
    return sizes


def prepare_classifier(weight, bias, *, C, Hf, Wf, dtype=jnp.float32):
    """One-time (init-time) classifier prep — hoisted out of the forward hot path.

    weight: (N, C*Hf*Wf) in torch.flatten(x,1) order (c-major over (C, Hf, Wf)).
    Returns (w_slab (Hf, Wf, C, N), bias (1, N) f32).
    """
    N = weight.shape[0]
    assert weight.shape[1] == C * Hf * Wf, "classifier in_features mismatch"
    w_slab = jnp.transpose(weight.reshape(N, C, Hf, Wf), (2, 3, 1, 0)).astype(dtype)
    b2 = bias.reshape(1, N).astype(jnp.float32)
    return w_slab, b2


def _make_kernel(W, times, level_sizes, rows_per_step):
    """Fused streaming kernel for static geometry."""
    H1, W1 = level_sizes[0]
    Hf, Wf = level_sizes[-1]

    def _wpool_col(x_ref, local_row, k):
        # 1x3 / stride-2 max along W for one input row, one output column.
        # Skipping out-of-range taps == -inf padding (PyTorch semantics).
        acc = None
        for c in (2 * k - 1, 2 * k, 2 * k + 1):
            if 0 <= c < W:
                v = x_ref[local_row, c]
                acc = v if acc is None else jnp.maximum(acc, v)
        return acc

    def kernel(x_ref, w_ref, b_ref, o_ref, carry_ref, *lvl_refs):
        step = pl.program_id(0)

        # The "row above the image" is -inf (top padding) for the very first row.
        @pl.when(step == 0)
        def _():
            carry_ref[...] = jnp.full_like(carry_ref, -jnp.inf)

        l1 = lvl_refs[0]

        # ---- level 1, streamed: rows_per_step output rows per grid step ----
        # Per output row, per output column: <=6 tap loads + 1 carry load,
        # <=6 maxima, 2 stores -> ~10 live vregs at any time (no spills).
        for j in range(rows_per_step):
            out_row = step * rows_per_step + j
            for k in range(W1):
                we = _wpool_col(x_ref, 2 * j, k)        # W-pooled input row 2*out_row
                wo = _wpool_col(x_ref, 2 * j + 1, k)    # W-pooled input row 2*out_row+1
                top = carry_ref[k]                      # W-pooled input row 2*out_row-1
                l1[out_row, k] = jnp.maximum(jnp.maximum(top, we), wo)
                carry_ref[k] = wo                       # becomes "top" for the next row

        # ---- last step: levels 2..times over the tiny VMEM pyramid + classifier ----
        @pl.when(step == pl.num_programs(0) - 1)
        def _():
            prev_ref = lvl_refs[0]
            ph, pw = level_sizes[0]
            for lvl in range(1, times):
                cur_ref = lvl_refs[lvl]
                ch, cw = level_sizes[lvl]
                for oi in range(ch):
                    for ok in range(cw):
                        acc = None
                        for dr in (-1, 0, 1):
                            r = 2 * oi + dr
                            if not 0 <= r < ph:
                                continue
                            for dc in (-1, 0, 1):
                                c = 2 * ok + dc
                                if not 0 <= c < pw:
                                    continue
                                v = prev_ref[r, c]
                                acc = v if acc is None else jnp.maximum(acc, v)
                        cur_ref[oi, ok] = acc
                prev_ref, ph, pw = cur_ref, ch, cw

            # flatten + Linear: sum over surviving spatial positions of
            # (B, C) @ (C, N) MXU matmuls (Hf = Wf = 1 at demo size -> one matmul).
            acc = None
            for oi in range(Hf):
                for ok in range(Wf):
                    part = jnp.dot(prev_ref[oi, ok], w_ref[oi, ok],
                                   preferred_element_type=jnp.float32)
                    acc = part if acc is None else acc + part
            o_ref[...] = (acc + b_ref[...]).astype(o_ref.dtype)

    return kernel


@functools.partial(jax.jit, static_argnames=("times", "rows_per_step"))
def poolingnet_rt_forward_hwbc(x_hwbc, w_slab, b2, *, times=5, rows_per_step=None):
    """Hot path.  x_hwbc: (H, W, B, C) activations (batch->sublanes, channels->lanes).

    w_slab: (Hf, Wf, C, N) from prepare_classifier; b2: (1, N) f32.
    Returns (B, N) f32 logits, identical to the PyTorch forward.
    """
    H, W, B, C = x_hwbc.shape
    assert times >= 1
    assert H % 2 == 0, "streamed level-1 row chunks assume an even input height"
    # TODO(synk): odd H needs a masked last block (or Element-offset halo read).

    level_sizes = _pooled_geometry(H, W, times)
    H1, W1 = level_sizes[0]
    Hf, Wf = level_sizes[-1]
    assert w_slab.shape == (Hf, Wf, C, w_slab.shape[-1])
    assert w_slab.dtype == x_hwbc.dtype, "cast weight slab to the activation dtype"
    N = w_slab.shape[-1]
    dtype = x_hwbc.dtype

    if rows_per_step is None:
        # Largest divisor of H1 that still leaves >=2 grid steps (for DMA/compute
        # overlap) and keeps the per-step input chunk modest (<=4 MiB per buffer).
        rows_per_step = 1
        for d in range(1, H1 + 1):
            if (H1 % d == 0 and d <= max(1, H1 // 2)
                    and 2 * d * W * B * C * dtype.itemsize <= (4 << 20)):
                rows_per_step = d
    assert H1 % rows_per_step == 0
    n_steps = H1 // rows_per_step

    kernel = _make_kernel(W, times, level_sizes, rows_per_step)

    scratch_shapes = [pltpu.VMEM((W1, B, C), dtype)]                       # line buffer
    scratch_shapes += [pltpu.VMEM((h, w, B, C), dtype) for (h, w) in level_sizes]

    flops = 2 * B * (C * Hf * Wf) * N + 2 * H * W * B * C
    bytes_accessed = ((x_hwbc.size + w_slab.size) * dtype.itemsize
                      + 4 * (b2.size + B * N))

    return pl.pallas_call(
        kernel,
        out_shape=jax.ShapeDtypeStruct((B, N), jnp.float32),
        grid_spec=pltpu.PrefetchScalarGridSpec(
            num_scalar_prefetch=0,
            grid=(n_steps,),
            in_specs=[
                # 2*rows_per_step input rows per step; halo row is carried in the
                # VMEM line buffer instead of being re-read.
                pl.BlockSpec((2 * rows_per_step, W, B, C), lambda i: (i, 0, 0, 0)),
                pl.BlockSpec((Hf, Wf, C, N), lambda i: (0, 0, 0, 0)),
                pl.BlockSpec((1, N), lambda i: (0, 0)),
            ],
            out_specs=pl.BlockSpec((B, N), lambda i: (0, 0)),
            scratch_shapes=scratch_shapes,
        ),
        compiler_params=pltpu.CompilerParams(
            # Carried line buffer + finalize-on-last-step => sequential axis.
            dimension_semantics=("arbitrary",),
        ),
        cost_estimate=pl.CostEstimate(
            flops=flops, transcendentals=0, bytes_accessed=bytes_accessed),
    )(x_hwbc, w_slab, b2)


def poolingnet_rt_forward(x_nchw, weight, bias, *, times=5, dtype=jnp.float32):
    """Convenience NCHW entry point (PyTorch layout).

    NOTE: the NCHW->HWBC transpose here is an extra HBM pass; in production the
    producer should emit HWBC/NHWC directly and prepare_classifier should be
    called once at init (as done in __main__), keeping the hot path transpose-free.
    """
    B, C, H, W = x_nchw.shape
    Hf, Wf = _pooled_geometry(H, W, times)[-1]
    w_slab, b2 = prepare_classifier(weight, bias, C=C, Hf=Hf, Wf=Wf, dtype=dtype)
    x_hwbc = jnp.transpose(x_nchw, (2, 3, 0, 1)).astype(dtype)
    return poolingnet_rt_forward_hwbc(x_hwbc, w_slab, b2, times=times)


def poolingnet_rt_reference(x_nchw, weight, bias, *, times=5):
    """Pure-JAX reference reproducing the PyTorch forward (NCHW in)."""

    def mp3(t):  # MaxPool2d(kernel_size=3, stride=2, padding=1)
        t = jnp.pad(t, ((0, 0), (0, 0), (1, 1), (1, 1)), constant_values=-jnp.inf)
        return jax.lax.reduce_window(
            t, -jnp.inf, jax.lax.max, (1, 1, 3, 3), (1, 1, 2, 2), "VALID")

    for _ in range(times):
        x_nchw = mp3(x_nchw)
    flat = x_nchw.reshape(x_nchw.shape[0], -1)   # torch.flatten(x, 1)
    return flat @ weight.T + bias                # Linear


if __name__ == "__main__":
    # Scaled-down shapes (see NOTE above).  B=8 fills sublanes, C=128 fills lanes,
    # N=256 keeps the output tile lane-dense.
    B, C, H, W = 8, 128, 16, 16
    TIMES = 5
    N = 256

    level_sizes = _pooled_geometry(H, W, TIMES)
    Hf, Wf = level_sizes[-1]                 # -> (1, 1)
    in_features = C * Hf * Wf                # -> 128

    key = jax.random.PRNGKey(0)
    kx, kw, kb = jax.random.split(key, 3)
    bound = 1.0 / math.sqrt(in_features)     # nn.Linear default-style init bounds
    # Producer emits activations already in (H, W, B, C) — no transpose on the hot path.
    x_hwbc = jax.random.normal(kx, (H, W, B, C), jnp.float32)
    weight = jax.random.uniform(kw, (N, in_features), jnp.float32, -bound, bound)
    bias = jax.random.uniform(kb, (N,), jnp.float32, -bound, bound)

    # Init-time (hoisted) classifier prep.
    w_slab, b2 = prepare_classifier(weight, bias, C=C, Hf=Hf, Wf=Wf)

    out = jax.block_until_ready(
        poolingnet_rt_forward_hwbc(x_hwbc, w_slab, b2, times=TIMES))

    # Reference consumes NCHW (PyTorch layout); transpose only for the check.
    x_nchw = jnp.transpose(x_hwbc, (2, 3, 0, 1))
    ref = jax.block_until_ready(
        poolingnet_rt_reference(x_nchw, weight, bias, times=TIMES))

    assert out.shape == (B, N)
    assert jnp.allclose(out, ref, rtol=1e-5, atol=1e-4), "f32 kernel mismatch vs reference"

    # bf16 activation/weight path (recommended on v6e/v7x; keep f32 on v5e):
    # pooling is exact in bf16, matmul accumulates in f32 on the MXU.
    w_slab_bf, b2_bf = prepare_classifier(
        weight, bias, C=C, Hf=Hf, Wf=Wf, dtype=jnp.bfloat16)
    out_bf = jax.block_until_ready(
        poolingnet_rt_forward_hwbc(
            x_hwbc.astype(jnp.bfloat16), w_slab_bf, b2_bf, times=TIMES))
    ref_bf = jax.block_until_ready(
        poolingnet_rt_reference(
            x_nchw.astype(jnp.bfloat16).astype(jnp.float32),
            weight.astype(jnp.bfloat16).astype(jnp.float32),
            bias, times=TIMES))
    assert out_bf.shape == (B, N)
    assert jnp.allclose(out_bf, ref_bf, rtol=5e-2, atol=5e-2), "bf16 kernel mismatch vs reference"

    print("KERNEL_OK")
</pallas_src>

<mosaic_0001>
module attributes {stable_mosaic.version = 11 : i64} {
  func.func @kernel(%arg0: i32, %arg1: memref<8x16x8x128xf32, #tpu.memory_space<vmem>>, %arg2: memref<1x1x128x256xf32, #tpu.memory_space<vmem>>, %arg3: memref<1x256xf32, #tpu.memory_space<vmem>>, %arg4: memref<8x256xf32, #tpu.memory_space<vmem>>, %arg5: memref<8x8x128xf32, #tpu.memory_space<vmem>>, %arg6: memref<8x8x8x128xf32, #tpu.memory_space<vmem>>, %arg7: memref<4x4x8x128xf32, #tpu.memory_space<vmem>>, %arg8: memref<2x2x8x128xf32, #tpu.memory_space<vmem>>, %arg9: memref<1x1x8x128xf32, #tpu.memory_space<vmem>>, %arg10: memref<1x1x8x128xf32, #tpu.memory_space<vmem>>) attributes {dimension_semantics = [#tpu.dimension_semantics<arbitrary>], iteration_bounds = array<i64: 2>, scalar_prefetch = 0 : i64, scratch_operands = 6 : i64, tpu.core_type = #tpu.core_type<tc>, window_params = [{transform_indices = @transform_0, window_bounds = array<i64: 8, 16, 8, 128>}, {pipeline_mode = #tpu.pipeline_mode<synchronous>, transform_indices = @transform_1, window_bounds = array<i64: 1, 1, 128, 256>}, {pipeline_mode = #tpu.pipeline_mode<synchronous>, transform_indices = @transform_2, window_bounds = array<i64: 1, 256>}, {pipeline_mode = #tpu.pipeline_mode<synchronous>, transform_indices = @transform_3, window_bounds = array<i64: 8, 256>}]} {
    %c0_i32 = arith.constant 0 : i32
    %0 = arith.cmpi eq, %arg0, %c0_i32 : i32
    %1 = arith.extui %0 : i1 to i32
    %c0_i32_0 = arith.constant 0 : i32
    %2 = arith.cmpi ne, %1, %c0_i32_0 : i32
    scf.if %2 {
      %cst = arith.constant 0xFF800000 : f32
      %854 = vector.broadcast %cst : f32 to vector<8x8x128xf32>
      %c0_1015 = arith.constant 0 : index
      %c0_1016 = arith.constant 0 : index
      %c0_1017 = arith.constant 0 : index
      %855 = vector.load %arg5[%c0_1015, %c0_1016, %c0_1017] : memref<8x8x128xf32, #tpu.memory_space<vmem>>, vector<8x8x128xf32>
      tpu.vector_store %arg5[%c0_1015, %c0_1016, %c0_1017], %854 {strides = array<i32>} : memref<8x8x128xf32, #tpu.memory_space<vmem>>, vector<8x8x128xf32>,
    } else {
    }
    %c4_i32 = arith.constant 4 : i32
    %3 = arith.muli %arg0, %c4_i32 : i32
    %c0_i32_1 = arith.constant 0 : i32
    %4 = arith.addi %3, %c0_i32_1 : i32
    %c0 = arith.constant 0 : index
    %c0_2 = arith.constant 0 : index
    %c0_3 = arith.constant 0 : index
    %c0_4 = arith.constant 0 : index
    %5 = vector.load %arg1[%c0, %c0_2, %c0_3, %c0_4] : memref<8x16x8x128xf32, #tpu.memory_space<vmem>>, vector<1x1x8x128xf32>
    %6 = vector.shape_cast %5 : vector<1x1x8x128xf32> to vector<8x128xf32>
    %c0_5 = arith.constant 0 : index
    %c1 = arith.constant 1 : index
    %c0_6 = arith.constant 0 : index
    %c0_7 = arith.constant 0 : index
    %7 = vector.load %arg1[%c0_5, %c1, %c0_6, %c0_7] : memref<8x16x8x128xf32, #tpu.memory_space<vmem>>, vector<1x1x8x128xf32>
    %8 = vector.shape_cast %7 : vector<1x1x8x128xf32> to vector<8x128xf32>
    %9 = arith.maximumf %6, %8 : vector<8x128xf32>
    %c1_8 = arith.constant 1 : index
    %c0_9 = arith.constant 0 : index
    %c0_10 = arith.constant 0 : index
    %c0_11 = arith.constant 0 : index
    %10 = vector.load %arg1[%c1_8, %c0_9, %c0_10, %c0_11] : memref<8x16x8x128xf32, #tpu.memory_space<vmem>>, vector<1x1x8x128xf32>
    %11 = vector.shape_cast %10 : vector<1x1x8x128xf32> to vector<8x128xf32>
    %c1_12 = arith.constant 1 : index
    %c1_13 = arith.constant 1 : index
    %c0_14 = arith.constant 0 : index
    %c0_15 = arith.constant 0 : index
    %12 = vector.load %arg1[%c1_12, %c1_13, %c0_14, %c0_15] : memref<8x16x8x128xf32, #tpu.memory_space<vmem>>, vector<1x1x8x128xf32>
    %13 = vector.shape_cast %12 : vector<1x1x8x128xf32> to vector<8x128xf32>
    %14 = arith.maximumf %11, %13 : vector<8x128xf32>
    %c0_16 = arith.constant 0 : index
    %c0_17 = arith.constant 0 : index
    %c0_18 = arith.constant 0 : index
    %15 = vector.load %arg5[%c0_16, %c0_17, %c0_18] : memref<8x8x128xf32, #tpu.memory_space<vmem>>, vector<1x8x128xf32>
    %16 = vector.shape_cast %15 : vector<1x8x128xf32> to vector<8x128xf32>
    %17 = arith.maximumf %16, %9 : vector<8x128xf32>
    %18 = arith.maximumf %17, %14 : vector<8x128xf32>
    %19 = arith.index_cast %4 : i32 to index
    %c0_19 = arith.constant 0 : index
    %c0_20 = arith.constant 0 : index
    %c0_21 = arith.constant 0 : index
    %20 = vector.load %arg6[%19, %c0_19, %c0_20, %c0_21] : memref<8x8x8x128xf32, #tpu.memory_space<vmem>>, vector<1x1x8x128xf32>
    %21 = vector.shape_cast %20 : vector<1x1x8x128xf32> to vector<8x128xf32>
    %22 = vector.shape_cast %18 : vector<8x128xf32> to vector<1x1x8x128xf32>
    tpu.vector_store %arg6[%19, %c0_19, %c0_20, %c0_21], %22 {strides = array<i32>} : memref<8x8x8x128xf32, #tpu.memory_space<vmem>>, vector<1x1x8x128xf32>,
    %c0_22 = arith.constant 0 : index
    %c0_23 = arith.constant 0 : index
    %c0_24 = arith.constant 0 : index
    %23 = vector.load %arg5[%c0_22, %c0_23, %c0_24] : memref<8x8x128xf32, #tpu.memory_space<vmem>>, vector<1x8x128xf32>
    %24 = vector.shape_cast %23 : vector<1x8x128xf32> to vector<8x128xf32>
    %25 = vector.shape_cast %14 : vector<8x128xf32> to vector<1x8x128xf32>
    tpu.vector_store %arg5[%c0_22, %c0_23, %c0_24], %25 {strides = array<i32>} : memref<8x8x128xf32, #tpu.memory_space<vmem>>, vector<1x8x128xf32>,
    %c0_25 = arith.constant 0 : index
    %c1_26 = arith.constant 1 : index
    %c0_27 = arith.constant 0 : index
    %c0_28 = arith.constant 0 : index
    %26 = vector.load %arg1[%c0_25, %c1_26, %c0_27, %c0_28] : memref<8x16x8x128xf32, #tpu.memory_space<vmem>>, vector<1x1x8x128xf32>
    %27 = vector.shape_cast %26 : vector<1x1x8x128xf32> to vector<8x128xf32>
    %c0_29 = arith.constant 0 : index
    %c2 = arith.constant 2 : index
    %c0_30 = arith.constant 0 : index
    %c0_31 = arith.constant 0 : index
    %28 = vector.load %arg1[%c0_29, %c2, %c0_30, %c0_31] : memref<8x16x8x128xf32, #tpu.memory_space<vmem>>, vector<1x1x8x128xf32>
    %29 = vector.shape_cast %28 : vector<1x1x8x128xf32> to vector<8x128xf32>
    %30 = arith.maximumf %27, %29 : vector<8x128xf32>
    %c0_32 = arith.constant 0 : index
    %c3 = arith.constant 3 : index
    %c0_33 = arith.constant 0 : index
    %c0_34 = arith.constant 0 : index
    %31 = vector.load %arg1[%c0_32, %c3, %c0_33, %c0_34] : memref<8x16x8x128xf32, #tpu.memory_space<vmem>>, vector<1x1x8x128xf32>
    %32 = vector.shape_cast %31 : vector<1x1x8x128xf32> to vector<8x128xf32>
    %33 = arith.maximumf %30, %32 : vector<8x128xf32>
    %c1_35 = arith.constant 1 : index
    %c1_36 = arith.constant 1 : index
    %c0_37 = arith.constant 0 : index
    %c0_38 = arith.constant 0 : index
    %34 = vector.load %arg1[%c1_35, %c1_36, %c0_37, %c0_38] : memref<8x16x8x128xf32, #tpu.memory_space<vmem>>, vector<1x1x8x128xf32>
    %35 = vector.shape_cast %34 : vector<1x1x8x128xf32> to vector<8x128xf32>
    %c1_39 = arith.constant 1 : index
    %c2_40 = arith.constant 2 : index
    %c0_41 = arith.constant 0 : index
    %c0_42 = arith.constant 0 : index
    %36 = vector.load %arg1[%c1_39, %c2_40, %c0_41, %c0_42] : memref<8x16x8x128xf32, #tpu.memory_space<vmem>>, vector<1x1x8x128xf32>
    %37 = vector.shape_cast %36 : vector<1x1x8x128xf32> to vector<8x128xf32>
    %38 = arith.maximumf %35, %37 : vector<8x128xf32>
    %c1_43 = arith.constant 1 : index
    %c3_44 = arith.constant 3 : index
    %c0_45 = arith.constant 0 : index
    %c0_46 = arith.constant 0 : index
    %39 = vector.load %arg1[%c1_43, %c3_44, %c0_45, %c0_46] : memref<8x16x8x128xf32, #tpu.memory_space<vmem>>, vector<1x1x8x128xf32>
    %40 = vector.shape_cast %39 : vector<1x1x8x128xf32> to vector<8x128xf32>
    %41 = arith.maximumf %38, %40 : vector<8x128xf32>
    %c1_47 = arith.constant 1 : index
    %c0_48 = arith.constant 0 : index
    %c0_49 = arith.constant 0 : index
    %42 = vector.load %arg5[%c1_47, %c0_48, %c0_49] : memref<8x8x128xf32, #tpu.memory_space<vmem>>, vector<1x8x128xf32>
    %43 = vector.shape_cast %42 : vector<1x8x128xf32> to vector<8x128xf32>
    %44 = arith.maximumf %43, %33 : vector<8x128xf32>
    %45 = arith.maximumf %44, %41 : vector<8x128xf32>
    %46 = arith.index_cast %4 : i32 to index
    %c1_50 = arith.constant 1 : index
    %c0_51 = arith.constant 0 : index
    %c0_52 = arith.constant 0 : index
    %47 = vector.load %arg6[%46, %c1_50, %c0_51, %c0_52] : memref<8x8x8x128xf32, #tpu.memory_space<vmem>>, vector<1x1x8x128xf32>
    %48 = vector.shape_cast %47 : vector<1x1x8x128xf32> to vector<8x128xf32>
    %49 = vector.shape_cast %45 : vector<8x128xf32> to vector<1x1x8x128xf32>
    tpu.vector_store %arg6[%46, %c1_50, %c0_51, %c0_52], %49 {strides = array<i32>} : memref<8x8x8x128xf32, #tpu.memory_space<vmem>>, vector<1x1x8x128xf32>,
    %c1_53 = arith.constant 1 : index
    %c0_54 = arith.constant 0 : index
    %c0_55 = arith.constant 0 : index
    %50 = vector.load %arg5[%c1_53, %c0_54, %c0_55] : memref<8x8x128xf32, #tpu.memory_space<vmem>>, vector<1x8x128xf32>
    %51 = vector.shape_cast %50 : vector<1x8x128xf32> to vector<8x128xf32>
    %52 = vector.shape_cast %41 : vector<8x128xf32> to vector<1x8x128xf32>
    tpu.vector_store %arg5[%c1_53, %c0_54, %c0_55], %52 {strides = array<i32>} : memref<8x8x128xf32, #tpu.memory_space<vmem>>, vector<1x8x128xf32>,
    %c0_56 = arith.constant 0 : index
    %c3_57 = arith.constant 3 : index
    %c0_58 = arith.constant 0 : index
    %c0_59 = arith.constant 0 : index
    %53 = vector.load %arg1[%c0_56, %c3_57, %c0_58, %c0_59] : memref<8x16x8x128xf32, #tpu.memory_space<vmem>>, vector<1x1x8x128xf32>
    %54 = vector.shape_cast %53 : vector<1x1x8x128xf32> to vector<8x128xf32>
    %c0_60 = arith.constant 0 : index
    %c4 = arith.constant 4 : index
    %c0_61 = arith.constant 0 : index
    %c0_62 = arith.constant 0 : index
    %55 = vector.load %arg1[%c0_60, %c4, %c0_61, %c0_62] : memref<8x16x8x128xf32, #tpu.memory_space<vmem>>, vector<1x1x8x128xf32>
    %56 = vector.shape_cast %55 : vector<1x1x8x128xf32> to vector<8x128xf32>
    %57 = arith.maximumf %54, %56 : vector<8x128xf32>
    %c0_63 = arith.constant 0 : index
    %c5 = arith.constant 5 : index
    %c0_64 = arith.constant 0 : index
    %c0_65 = arith.constant 0 : index
    %58 = vector.load %arg1[%c0_63, %c5, %c0_64, %c0_65] : memref<8x16x8x128xf32, #tpu.memory_space<vmem>>, vector<1x1x8x128xf32>
    %59 = vector.shape_cast %58 : vector<1x1x8x128xf32> to vector<8x128xf32>
    %60 = arith.maximumf %57, %59 : vector<8x128xf32>
    %c1_66 = arith.constant 1 : index
    %c3_67 = arith.constant 3 : index
    %c0_68 = arith.constant 0 : index
    %c0_69 = arith.constant 0 : index
    %61 = vector.load %arg1[%c1_66, %c3_67, %c0_68, %c0_69] : memref<8x16x8x128xf32, #tpu.memory_space<vmem>>, vector<1x1x8x128xf32>
    %62 = vector.shape_cast %61 : vector<1x1x8x128xf32> to vector<8x128xf32>
    %c1_70 = arith.constant 1 : index
    %c4_71 = arith.constant 4 : index
    %c0_72 = arith.constant 0 : index
    %c0_73 = arith.constant 0 : index
    %63 = vector.load %arg1[%c1_70, %c4_71, %c0_72, %c0_73] : memref<8x16x8x128xf32, #tpu.memory_space<vmem>>, vector<1x1x8x128xf32>
    %64 = vector.shape_cast %63 : vector<1x1x8x128xf32> to vector<8x128xf32>
    %65 = arith.maximumf %62, %64 : vector<8x128xf32>
    %c1_74 = arith.constant 1 : index
    %c5_75 = arith.constant 5 : index
    %c0_76 = arith.constant 0 : index
    %c0_77 = arith.constant 0 : index
    %66 = vector.load %arg1[%c1_74, %c5_75, %c0_76, %c0_77] : memref<8x16x8x128xf32, #tpu.memory_space<vmem>>, vector<1x1x8x128xf32>
    %67 = vector.shape_cast %66 : vector<1x1x8x128xf32> to vector<8x128xf32>
    %68 = arith.maximumf %65, %67 : vector<8x128xf32>
    %c2_78 = arith.constant 2 : index
    %c0_79 = arith.constant 0 : index
    %c0_80 = arith.constant 0 : index
    %69 = vector.load %arg5[%c2_78, %c0_79, %c0_80] : memref<8x8x128xf32, #tpu.memory_space<vmem>>, vector<1x8x128xf32>
    %70 = vector.shape_cast %69 : vector<1x8x128xf32> to vector<8x128xf32>
    %71 = arith.maximumf %70, %60 : vector<8x128xf32>
    %72 = arith.maximumf %71, %68 : vector<8x128xf32>
    %73 = arith.index_cast %4 : i32 to index
    %c2_81 = arith.constant 2 : index
    %c0_82 = arith.constant 0 : index
    %c0_83 = arith.constant 0 : index
    %74 = vector.load %arg6[%73, %c2_81, %c0_82, %c0_83] : memref<8x8x8x128xf32, #tpu.memory_space<vmem>>, vector<1x1x8x128xf32>
    %75 = vector.shape_cast %74 : vector<1x1x8x128xf32> to vector<8x128xf32>
    %76 = vector.shape_cast %72 : vector<8x128xf32> to vector<1x1x8x128xf32>
    tpu.vector_store %arg6[%73, %c2_81, %c0_82, %c0_83], %76 {strides = array<i32>} : memref<8x8x8x128xf32, #tpu.memory_space<vmem>>, vector<1x1x8x128xf32>,
    %c2_84 = arith.constant 2 : index
    %c0_85 = arith.constant 0 : index
    %c0_86 = arith.constant 0 : index
    %77 = vector.load %arg5[%c2_84, %c0_85, %c0_86] : memref<8x8x128xf32, #tpu.memory_space<vmem>>, vector<1x8x128xf32>
    %78 = vector.shape_cast %77 : vector<1x8x128xf32> to vector<8x128xf32>
    %79 = vector.shape_cast %68 : vector<8x128xf32> to vector<1x8x128xf32>
    tpu.vector_store %arg5[%c2_84, %c0_85, %c0_86], %79 {strides = array<i32>} : memref<8x8x128xf32, #tpu.memory_space<vmem>>, vector<1x8x128xf32>,
    %c0_87 = arith.constant 0 : index
    %c5_88 = arith.constant 5 : index
    %c0_89 = arith.constant 0 : index
    %c0_90 = arith.constant 0 : index
    %80 = vector.load %arg1[%c0_87, %c5_88, %c0_89, %c0_90] : memref<8x16x8x128xf32, #tpu.memory_space<vmem>>, vector<1x1x8x128xf32>
    %81 = vector.shape_cast %80 : vector<1x1x8x128xf32> to vector<8x128xf32>
    %c0_91 = arith.constant 0 : index
    %c6 = arith.constant 6 : index
    %c0_92 = arith.constant 0 : index
    %c0_93 = arith.constant 0 : index
    %82 = vector.load %arg1[%c0_91, %c6, %c0_92, %c0_93] : memref<8x16x8x128xf32, #tpu.memory_space<vmem>>, vector<1x1x8x128xf32>
    %83 = vector.shape_cast %82 : vector<1x1x8x128xf32> to vector<8x128xf32>
    %84 = arith.maximumf %81, %83 : vector<8x128xf32>
    %c0_94 = arith.constant 0 : index
    %c7 = arith.constant 7 : index
    %c0_95 = arith.constant 0 : index
    %c0_96 = arith.constant 0 : index
    %85 = vector.load %arg1[%c0_94, %c7, %c0_95, %c0_96] : memref<8x16x8x128xf32, #tpu.memory_space<vmem>>, vector<1x1x8x128xf32>
    %86 = vector.shape_cast %85 : vector<1x1x8x128xf32> to vector<8x128xf32>
    %87 = arith.maximumf %84, %86 : vector<8x128xf32>
    %c1_97 = arith.constant 1 : index
    %c5_98 = arith.constant 5 : index
    %c0_99 = arith.constant 0 : index
    %c0_100 = arith.constant 0 : index
    %88 = vector.load %arg1[%c1_97, %c5_98, %c0_99, %c0_100] : memref<8x16x8x128xf32, #tpu.memory_space<vmem>>, vector<1x1x8x128xf32>
    %89 = vector.shape_cast %88 : vector<1x1x8x128xf32> to vector<8x128xf32>
    %c1_101 = arith.constant 1 : index
    %c6_102 = arith.constant 6 : index
    %c0_103 = arith.constant 0 : index
    %c0_104 = arith.constant 0 : index
    %90 = vector.load %arg1[%c1_101, %c6_102, %c0_103, %c0_104] : memref<8x16x8x128xf32, #tpu.memory_space<vmem>>, vector<1x1x8x128xf32>
    %91 = vector.shape_cast %90 : vector<1x1x8x128xf32> to vector<8x128xf32>
    %92 = arith.maximumf %89, %91 : vector<8x128xf32>
    %c1_105 = arith.constant 1 : index
    %c7_106 = arith.constant 7 : index
    %c0_107 = arith.constant 0 : index
    %c0_108 = arith.constant 0 : index
    %93 = vector.load %arg1[%c1_105, %c7_106, %c0_107, %c0_108] : memref<8x16x8x128xf32, #tpu.memory_space<vmem>>, vector<1x1x8x128xf32>
    %94 = vector.shape_cast %93 : vector<1x1x8x128xf32> to vector<8x128xf32>
    %95 = arith.maximumf %92, %94 : vector<8x128xf32>
    %c3_109 = arith.constant 3 : index
    %c0_110 = arith.constant 0 : index
    %c0_111 = arith.constant 0 : index
    %96 = vector.load %arg5[%c3_109, %c0_110, %c0_111] : memref<8x8x128xf32, #tpu.memory_space<vmem>>, vector<1x8x128xf32>
    %97 = vector.shape_cast %96 : vector<1x8x128xf32> to vector<8x128xf32>
    %98 = arith.maximumf %97, %87 : vector<8x128xf32>
    %99 = arith.maximumf %98, %95 : vector<8x128xf32>
    %100 = arith.index_cast %4 : i32 to index
    %c3_112 = arith.constant 3 : index
    %c0_113 = arith.constant 0 : index
    %c0_114 = arith.constant 0 : index
    %101 = vector.load %arg6[%100, %c3_112, %c0_113, %c0_114] : memref<8x8x8x128xf32, #tpu.memory_space<vmem>>, vector<1x1x8x128xf32>
    %102 = vector.shape_cast %101 : vector<1x1x8x128xf32> to vector<8x128xf32>
    %103 = vector.shape_cast %99 : vector<8x128xf32> to vector<1x1x8x128xf32>
    tpu.vector_store %arg6[%100, %c3_112, %c0_113, %c0_114], %103 {strides = array<i32>} : memref<8x8x8x128xf32, #tpu.memory_space<vmem>>, vector<1x1x8x128xf32>,
    %c3_115 = arith.constant 3 : index
    %c0_116 = arith.constant 0 : index
    %c0_117 = arith.constant 0 : index
    %104 = vector.load %arg5[%c3_115, %c0_116, %c0_117] : memref<8x8x128xf32, #tpu.memory_space<vmem>>, vector<1x8x128xf32>
    %105 = vector.shape_cast %104 : vector<1x8x128xf32> to vector<8x128xf32>
    %106 = vector.shape_cast %95 : vector<8x128xf32> to vector<1x8x128xf32>
    tpu.vector_store %arg5[%c3_115, %c0_116, %c0_117], %106 {strides = array<i32>} : memref<8x8x128xf32, #tpu.memory_space<vmem>>, vector<1x8x128xf32>,
    %c0_118 = arith.constant 0 : index
    %c7_119 = arith.constant 7 : index
    %c0_120 = arith.constant 0 : index
    %c0_121 = arith.constant 0 : index
    %107 = vector.load %arg1[%c0_118, %c7_119, %c0_120, %c0_121] : memref<8x16x8x128xf32, #tpu.memory_space<vmem>>, vector<1x1x8x128xf32>
    %108 = vector.shape_cast %107 : vector<1x1x8x128xf32> to vector<8x128xf32>
    %c0_122 = arith.constant 0 : index
    %c8 = arith.constant 8 : index
    %c0_123 = arith.constant 0 : index
    %c0_124 = arith.constant 0 : index
    %109 = vector.load %arg1[%c0_122, %c8, %c0_123, %c0_124] : memref<8x16x8x128xf32, #tpu.memory_space<vmem>>, vector<1x1x8x128xf32>
    %110 = vector.shape_cast %109 : vector<1x1x8x128xf32> to vector<8x128xf32>
    %111 = arith.maximumf %108, %110 : vector<8x128xf32>
    %c0_125 = arith.constant 0 : index
    %c9 = arith.constant 9 : index
    %c0_126 = arith.constant 0 : index
    %c0_127 = arith.constant 0 : index
    %112 = vector.load %arg1[%c0_125, %c9, %c0_126, %c0_127] : memref<8x16x8x128xf32, #tpu.memory_space<vmem>>, vector<1x1x8x128xf32>
    %113 = vector.shape_cast %112 : vector<1x1x8x128xf32> to vector<8x128xf32>
    %114 = arith.maximumf %111, %113 : vector<8x128xf32>
    %c1_128 = arith.constant 1 : index
    %c7_129 = arith.constant 7 : index
    %c0_130 = arith.constant 0 : index
    %c0_131 = arith.constant 0 : index
    %115 = vector.load %arg1[%c1_128, %c7_129, %c0_130, %c0_131] : memref<8x16x8x128xf32, #tpu.memory_space<vmem>>, vector<1x1x8x128xf32>
    %116 = vector.shape_cast %115 : vector<1x1x8x128xf32> to vector<8x128xf32>
    %c1_132 = arith.constant 1 : index
    %c8_133 = arith.constant 8 : index
    %c0_134 = arith.constant 0 : index
    %c0_135 = arith.constant 0 : index
    %117 = vector.load %arg1[%c1_132, %c8_133, %c0_134, %c0_135] : memref<8x16x8x128xf32, #tpu.memory_space<vmem>>, vector<1x1x8x128xf32>
    %118 = vector.shape_cast %117 : vector<1x1x8x128xf32> to vector<8x128xf32>
    %119 = arith.maximumf %116, %118 : vector<8x128xf32>
    %c1_136 = arith.constant 1 : index
    %c9_137 = arith.constant 9 : index
    %c0_138 = arith.constant 0 : index
    %c0_139 = arith.constant 0 : index
    %120 = vector.load %arg1[%c1_136, %c9_137, %c0_138, %c0_139] : memref<8x16x8x128xf32, #tpu.memory_space<vmem>>, vector<1x1x8x128xf32>
    %121 = vector.shape_cast %120 : vector<1x1x8x128xf32> to vector<8x128xf32>
    %122 = arith.maximumf %119, %121 : vector<8x128xf32>
    %c4_140 = arith.constant 4 : index
    %c0_141 = arith.constant 0 : index
    %c0_142 = arith.constant 0 : index
    %123 = vector.load %arg5[%c4_140, %c0_141, %c0_142] : memref<8x8x128xf32, #tpu.memory_space<vmem>>, vector<1x8x128xf32>
    %124 = vector.shape_cast %123 : vector<1x8x128xf32> to vector<8x128xf32>
    %125 = arith.maximumf %124, %114 : vector<8x128xf32>
    %126 = arith.maximumf %125, %122 : vector<8x128xf32>
    %127 = arith.index_cast %4 : i32 to index
    %c4_143 = arith.constant 4 : index
    %c0_144 = arith.constant 0 : index
    %c0_145 = arith.constant 0 : index
    %128 = vector.load %arg6[%127, %c4_143, %c0_144, %c0_145] : memref<8x8x8x128xf32, #tpu.memory_space<vmem>>, vector<1x1x8x128xf32>
    %129 = vector.shape_cast %128 : vector<1x1x8x128xf32> to vector<8x128xf32>
    %130 = vector.shape_cast %126 : vector<8x128xf32> to vector<1x1x8x128xf32>
    tpu.vector_store %arg6[%127, %c4_143, %c0_144, %c0_145], %130 {strides = array<i32>} : memref<8x8x8x128xf32, #tpu.memory_space<vmem>>, vector<1x1x8x128xf32>,
    %c4_146 = arith.constant 4 : index
    %c0_147 = arith.constant 0 : index
    %c0_148 = arith.constant 0 : index
    %131 = vector.load %arg5[%c4_146, %c0_147, %c0_148] : memref<8x8x128xf32, #tpu.memory_space<vmem>>, vector<1x8x128xf32>
    %132 = vector.shape_cast %131 : vector<1x8x128xf32> to vector<8x128xf32>
    %133 = vector.shape_cast %122 : vector<8x128xf32> to vector<1x8x128xf32>
    tpu.vector_store %arg5[%c4_146, %c0_147, %c0_148], %133 {strides = array<i32>} : memref<8x8x128xf32, #tpu.memory_space<vmem>>, vector<1x8x128xf32>,
    %c0_149 = arith.constant 0 : index
    %c9_150 = arith.constant 9 : index
    %c0_151 = arith.constant 0 : index
    %c0_152 = arith.constant 0 : index
    %134 = vector.load %arg1[%c0_149, %c9_150, %c0_151, %c0_152] : memref<8x16x8x128xf32, #tpu.memory_space<vmem>>, vector<1x1x8x128xf32>
    %135 = vector.shape_cast %134 : vector<1x1x8x128xf32> to vector<8x128xf32>
    %c0_153 = arith.constant 0 : index
    %c10 = arith.constant 10 : index
    %c0_154 = arith.constant 0 : index
    %c0_155 = arith.constant 0 : index
    %136 = vector.load %arg1[%c0_153, %c10, %c0_154, %c0_155] : memref<8x16x8x128xf32, #tpu.memory_space<vmem>>, vector<1x1x8x128xf32>
    %137 = vector.shape_cast %136 : vector<1x1x8x128xf32> to vector<8x128xf32>
    %138 = arith.maximumf %135, %137 : vector<8x128xf32>
    %c0_156 = arith.constant 0 : index
    %c11 = arith.constant 11 : index
    %c0_157 = arith.constant 0 : index
    %c0_158 = arith.constant 0 : index
    %139 = vector.load %arg1[%c0_156, %c11, %c0_157, %c0_158] : memref<8x16x8x128xf32, #tpu.memory_space<vmem>>, vector<1x1x8x128xf32>
    %140 = vector.shape_cast %139 : vector<1x1x8x128xf32> to vector<8x128xf32>
    %141 = arith.maximumf %138, %140 : vector<8x128xf32>
    %c1_159 = arith.constant 1 : index
    %c9_160 = arith.constant 9 : index
    %c0_161 = arith.constant 0 : index
    %c0_162 = arith.constant 0 : index
    %142 = vector.load %arg1[%c1_159, %c9_160, %c0_161, %c0_162] : memref<8x16x8x128xf32, #tpu.memory_space<vmem>>, vector<1x1x8x128xf32>
    %143 = vector.shape_cast %142 : vector<1x1x8x128xf32> to vector<8x128xf32>
    %c1_163 = arith.constant 1 : index
    %c10_164 = arith.constant 10 : index
    %c0_165 = arith.constant 0 : index
    %c0_166 = arith.constant 0 : index
    %144 = vector.load %arg1[%c1_163, %c10_164, %c0_165, %c0_166] : memref<8x16x8x128xf32, #tpu.memory_space<vmem>>, vector<1x1x8x128xf32>
    %145 = vector.shape_cast %144 : vector<1x1x8x128xf32> to vector<8x128xf32>
    %146 = arith.maximumf %143, %145 : vector<8x128xf32>
    %c1_167 = arith.constant 1 : index
    %c11_168 = arith.constant 11 : index
    %c0_169 = arith.constant 0 : index
    %c0_170 = arith.constant 0 : index
    %147 = vector.load %arg1[%c1_167, %c11_168, %c0_169, %c0_170] : memref<8x16x8x128xf32, #tpu.memory_space<vmem>>, vector<1x1x8x128xf32>
    %148 = vector.shape_cast %147 : vector<1x1x8x128xf32> to vector<8x128xf32>
    %149 = arith.maximumf %146, %148 : vector<8x128xf32>
    %c5_171 = arith.constant 5 : index
    %c0_172 = arith.constant 0 : index
    %c0_173 = arith.constant 0 : index
    %150 = vector.load %arg5[%c5_171, %c0_172, %c0_173] : memref<8x8x128xf32, #tpu.memory_space<vmem>>, vector<1x8x128xf32>
    %151 = vector.shape_cast %150 : vector<1x8x128xf32> to vector<8x128xf32>
    %152 = arith.maximumf %151, %141 : vector<8x128xf32>
    %153 = arith.maximumf %152, %149 : vector<8x128xf32>
    %154 = arith.index_cast %4 : i32 to index
    %c5_174 = arith.constant 5 : index
    %c0_175 = arith.constant 0 : index
    %c0_176 = arith.constant 0 : index
    %155 = vector.load %arg6[%154, %c5_174, %c0_175, %c0_176] : memref<8x8x8x128xf32, #tpu.memory_space<vmem>>, vector<1x1x8x128xf32>
    %156 = vector.shape_cast %155 : vector<1x1x8x128xf32> to vector<8x128xf32>
    %157 = vector.shape_cast %153 : vector<8x128xf32> to vector<1x1x8x128xf32>
    tpu.vector_store %arg6[%154, %c5_174, %c0_175, %c0_176], %157 {strides = array<i32>} : memref<8x8x8x128xf32, #tpu.memory_space<vmem>>, vector<1x1x8x128xf32>,
    %c5_177 = arith.constant 5 : index
    %c0_178 = arith.constant 0 : index
    %c0_179 = arith.constant 0 : index
    %158 = vector.load %arg5[%c5_177, %c0_178, %c0_179] : memref<8x8x128xf32, #tpu.memory_space<vmem>>, vector<1x8x128xf32>
    %159 = vector.shape_cast %158 : vector<1x8x128xf32> to vector<8x128xf32>
    %160 = vector.shape_cast %149 : vector<8x128xf32> to vector<1x8x128xf32>
    tpu.vector_store %arg5[%c5_177, %c0_178, %c0_179], %160 {strides = array<i32>} : memref<8x8x128xf32, #tpu.memory_space<vmem>>, vector<1x8x128xf32>,
    %c0_180 = arith.constant 0 : index
    %c11_181 = arith.constant 11 : index
    %c0_182 = arith.constant 0 : index
    %c0_183 = arith.constant 0 : index
    %161 = vector.load %arg1[%c0_180, %c11_181, %c0_182, %c0_183] : memref<8x16x8x128xf32, #tpu.memory_space<vmem>>, vector<1x1x8x128xf32>
    %162 = vector.shape_cast %161 : vector<1x1x8x128xf32> to vector<8x128xf32>
    %c0_184 = arith.constant 0 : index
    %c12 = arith.constant 12 : index
    %c0_185 = arith.constant 0 : index
    %c0_186 = arith.constant 0 : index
    %163 = vector.load %arg1[%c0_184, %c12, %c0_185, %c0_186] : memref<8x16x8x128xf32, #tpu.memory_space<vmem>>, vector<1x1x8x128xf32>
    %164 = vector.shape_cast %163 : vector<1x1x8x128xf32> to vector<8x128xf32>
    %165 = arith.maximumf %162, %164 : vector<8x128xf32>
    %c0_187 = arith.constant 0 : index
    %c13 = arith.constant 13 : index
    %c0_188 = arith.constant 0 : index
    %c0_189 = arith.constant 0 : index
    %166 = vector.load %arg1[%c0_187, %c13, %c0_188, %c0_189] : memref<8x16x8x128xf32, #tpu.memory_space<vmem>>, vector<1x1x8x128xf32>
    %167 = vector.shape_cast %166 : vector<1x1x8x128xf32> to vector<8x128xf32>
    %168 = arith.maximumf %165, %167 : vector<8x128xf32>
    %c1_190 = arith.constant 1 : index
    %c11_191 = arith.constant 11 : index
    %c0_192 = arith.constant 0 : index
    %c0_193 = arith.constant 0 : index
    %169 = vector.load %arg1[%c1_190, %c11_191, %c0_192, %c0_193] : memref<8x16x8x128xf32, #tpu.memory_space<vmem>>, vector<1x1x8x128xf32>
    %170 = vector.shape_cast %169 : vector<1x1x8x128xf32> to vector<8x128xf32>
    %c1_194 = arith.constant 1 : index
    %c12_195 = arith.constant 12 : index
    %c0_196 = arith.constant 0 : index
    %c0_197 = arith.constant 0 : index
    %171 = vector.load %arg1[%c1_194, %c12_195, %c0_196, %c0_197] : memref<8x16x8x128xf32, #tpu.memory_space<vmem>>, vector<1x1x8x128xf32>
    %172 = vector.shape_cast %171 : vector<1x1x8x128xf32> to vector<8x128xf32>
    %173 = arith.maximumf %170, %172 : vector<8x128xf32>
    %c1_198 = arith.constant 1 : index
    %c13_199 = arith.constant 13 : index
    %c0_200 = arith.constant 0 : index
    %c0_201 = arith.constant 0 : index
    %174 = vector.load %arg1[%c1_198, %c13_199, %c0_200, %c0_201] : memref<8x16x8x128xf32, #tpu.memory_space<vmem>>, vector<1x1x8x128xf32>
    %175 = vector.shape_cast %174 : vector<1x1x8x128xf32> to vector<8x128xf32>
    %176 = arith.maximumf %173, %175 : vector<8x128xf32>
    %c6_202 = arith.constant 6 : index
    %c0_203 = arith.constant 0 : index
    %c0_204 = arith.constant 0 : index
    %177 = vector.load %arg5[%c6_202, %c0_203, %c0_204] : memref<8x8x128xf32, #tpu.memory_space<vmem>>, vector<1x8x128xf32>
    %178 = vector.shape_cast %177 : vector<1x8x128xf32> to vector<8x128xf32>
    %179 = arith.maximumf %178, %168 : vector<8x128xf32>
    %180 = arith.maximumf %179, %176 : vector<8x128xf32>
    %181 = arith.index_cast %4 : i32 to index
    %c6_205 = arith.constant 6 : index
    %c0_206 = arith.constant 0 : index
    %c0_207 = arith.constant 0 : index
    %182 = vector.load %arg6[%181, %c6_205, %c0_206, %c0_207] : memref<8x8x8x128xf32, #tpu.memory_space<vmem>>, vector<1x1x8x128xf32>
    %183 = vector.shape_cast %182 : vector<1x1x8x128xf32> to vector<8x128xf32>
    %184 = vector.shape_cast %180 : vector<8x128xf32> to vector<1x1x8x128xf32>
    tpu.vector_store %arg6[%181, %c6_205, %c0_206, %c0_207], %184 {strides = array<i32>} : memref<8x8x8x128xf32, #tpu.memory_space<vmem>>, vector<1x1x8x128xf32>,
    %c6_208 = arith.constant 6 : index
    %c0_209 = arith.constant 0 : index
    %c0_210 = arith.constant 0 : index
    %185 = vector.load %arg5[%c6_208, %c0_209, %c0_210] : memref<8x8x128xf32, #tpu.memory_space<vmem>>, vector<1x8x128xf32>
    %186 = vector.shape_cast %185 : vector<1x8x128xf32> to vector<8x128xf32>
    %187 = vector.shape_cast %176 : vector<8x128xf32> to vector<1x8x128xf32>
    tpu.vector_store %arg5[%c6_208, %c0_209, %c0_210], %187 {strides = array<i32>} : memref<8x8x128xf32, #tpu.memory_space<vmem>>, vector<1x8x128xf32>,
    %c0_211 = arith.constant 0 : index
    %c13_212 = arith.constant 13 : index
    %c0_213 = arith.constant 0 : index
    %c0_214 = arith.constant 0 : index
    %188 = vector.load %arg1[%c0_211, %c13_212, %c0_213, %c0_214] : memref<8x16x8x128xf32, #tpu.memory_space<vmem>>, vector<1x1x8x128xf32>
    %189 = vector.shape_cast %188 : vector<1x1x8x128xf32> to vector<8x128xf32>
    %c0_215 = arith.constant 0 : index
    %c14 = arith.constant 14 : index
    %c0_216 = arith.constant 0 : index
    %c0_217 = arith.constant 0 : index
    %190 = vector.load %arg1[%c0_215, %c14, %c0_216, %c0_217] : memref<8x16x8x128xf32, #tpu.memory_space<vmem>>, vector<1x1x8x128xf32>
    %191 = vector.shape_cast %190 : vector<1x1x8x128xf32> to vector<8x128xf32>
    %192 = arith.maximumf %189, %191 : vector<8x128xf32>
    %c0_218 = arith.constant 0 : index
    %c15 = arith.constant 15 : index
    %c0_219 = arith.constant 0 : index
    %c0_220 = arith.constant 0 : index
    %193 = vector.load %arg1[%c0_218, %c15, %c0_219, %c0_220] : memref<8x16x8x128xf32, #tpu.memory_space<vmem>>, vector<1x1x8x128xf32>
    %194 = vector.shape_cast %193 : vector<1x1x8x128xf32> to vector<8x128xf32>
    %195 = arith.maximumf %192, %194 : vector<8x128xf32>
    %c1_221 = arith.constant 1 : index
    %c13_222 = arith.constant 13 : index
    %c0_223 = arith.constant 0 : index
    %c0_224 = arith.constant 0 : index
    %196 = vector.load %arg1[%c1_221, %c13_222, %c0_223, %c0_224] : memref<8x16x8x128xf32, #tpu.memory_space<vmem>>, vector<1x1x8x128xf32>
    %197 = vector.shape_cast %196 : vector<1x1x8x128xf32> to vector<8x128xf32>
    %c1_225 = arith.constant 1 : index
    %c14_226 = arith.constant 14 : index
    %c0_227 = arith.constant 0 : index
    %c0_228 = arith.constant 0 : index
    %198 = vector.load %arg1[%c1_225, %c14_226, %c0_227, %c0_228] : memref<8x16x8x128xf32, #tpu.memory_space<vmem>>, vector<1x1x8x128xf32>
    %199 = vector.shape_cast %198 : vector<1x1x8x128xf32> to vector<8x128xf32>
    %200 = arith.maximumf %197, %199 : vector<8x128xf32>
    %c1_229 = arith.constant 1 : index
    %c15_230 = arith.constant 15 : index
    %c0_231 = arith.constant 0 : index
    %c0_232 = arith.constant 0 : index
    %201 = vector.load %arg1[%c1_229, %c15_230, %c0_231, %c0_232] : memref<8x16x8x128xf32, #tpu.memory_space<vmem>>, vector<1x1x8x128xf32>
    %202 = vector.shape_cast %201 : vector<1x1x8x128xf32> to vector<8x128xf32>
    %203 = arith.maximumf %200, %202 : vector<8x128xf32>
    %c7_233 = arith.constant 7 : index
    %c0_234 = arith.constant 0 : index
    %c0_235 = arith.constant 0 : index
    %204 = vector.load %arg5[%c7_233, %c0_234, %c0_235] : memref<8x8x128xf32, #tpu.memory_space<vmem>>, vector<1x8x128xf32>
    %205 = vector.shape_cast %204 : vector<1x8x128xf32> to vector<8x128xf32>
    %206 = arith.maximumf %205, %195 : vector<8x128xf32>
    %207 = arith.maximumf %206, %203 : vector<8x128xf32>
    %208 = arith.index_cast %4 : i32 to index
    %c7_236 = arith.constant 7 : index
    %c0_237 = arith.constant 0 : index
    %c0_238 = arith.constant 0 : index
    %209 = vector.load %arg6[%208, %c7_236, %c0_237, %c0_238] : memref<8x8x8x128xf32, #tpu.memory_space<vmem>>, vector<1x1x8x128xf32>
    %210 = vector.shape_cast %209 : vector<1x1x8x128xf32> to vector<8x128xf32>
    %211 = vector.shape_cast %207 : vector<8x128xf32> to vector<1x1x8x128xf32>
    tpu.vector_store %arg6[%208, %c7_236, %c0_237, %c0_238], %211 {strides = array<i32>} : memref<8x8x8x128xf32, #tpu.memory_space<vmem>>, vector<1x1x8x128xf32>,
    %c7_239 = arith.constant 7 : index
    %c0_240 = arith.constant 0 : index
    %c0_241 = arith.constant 0 : index
    %212 = vector.load %arg5[%c7_239, %c0_240, %c0_241] : memref<8x8x128xf32, #tpu.memory_space<vmem>>, vector<1x8x128xf32>
    %213 = vector.shape_cast %212 : vector<1x8x128xf32> to vector<8x128xf32>
    %214 = vector.shape_cast %203 : vector<8x128xf32> to vector<1x8x128xf32>
    tpu.vector_store %arg5[%c7_239, %c0_240, %c0_241], %214 {strides = array<i32>} : memref<8x8x128xf32, #tpu.memory_space<vmem>>, vector<1x8x128xf32>,
    %c4_i32_242 = arith.constant 4 : i32
    %215 = arith.muli %arg0, %c4_i32_242 : i32
    %c1_i32 = arith.constant 1 : i32
    %216 = arith.addi %215, %c1_i32 : i32
    %c2_243 = arith.constant 2 : index
    %c0_244 = arith.constant 0 : index
    %c0_245 = arith.constant 0 : index
    %c0_246 = arith.constant 0 : index
    %217 = vector.load %arg1[%c2_243, %c0_244, %c0_245, %c0_246] : memref<8x16x8x128xf32, #tpu.memory_space<vmem>>, vector<1x1x8x128xf32>
    %218 = vector.shape_cast %217 : vector<1x1x8x128xf32> to vector<8x128xf32>
    %c2_247 = arith.constant 2 : index
    %c1_248 = arith.constant 1 : index
    %c0_249 = arith.constant 0 : index
    %c0_250 = arith.constant 0 : index
    %219 = vector.load %arg1[%c2_247, %c1_248, %c0_249, %c0_250] : memref<8x16x8x128xf32, #tpu.memory_space<vmem>>, vector<1x1x8x128xf32>
    %220 = vector.shape_cast %219 : vector<1x1x8x128xf32> to vector<8x128xf32>
    %221 = arith.maximumf %218, %220 : vector<8x128xf32>
    %c3_251 = arith.constant 3 : index
    %c0_252 = arith.constant 0 : index
    %c0_253 = arith.constant 0 : index
    %c0_254 = arith.constant 0 : index
    %222 = vector.load %arg1[%c3_251, %c0_252, %c0_253, %c0_254] : memref<8x16x8x128xf32, #tpu.memory_space<vmem>>, vector<1x1x8x128xf32>
    %223 = vector.shape_cast %222 : vector<1x1x8x128xf32> to vector<8x128xf32>
    %c3_255 = arith.constant 3 : index
    %c1_256 = arith.constant 1 : index
    %c0_257 = arith.constant 0 : index
    %c0_258 = arith.constant 0 : index
    %224 = vector.load %arg1[%c3_255, %c1_256, %c0_257, %c0_258] : memref<8x16x8x128xf32, #tpu.memory_space<vmem>>, vector<1x1x8x128xf32>
    %225 = vector.shape_cast %224 : vector<1x1x8x128xf32> to vector<8x128xf32>
    %226 = arith.maximumf %223, %225 : vector<8x128xf32>
    %c0_259 = arith.constant 0 : index
    %c0_260 = arith.constant 0 : index
    %c0_261 = arith.constant 0 : index
    %227 = vector.load %arg5[%c0_259, %c0_260, %c0_261] : memref<8x8x128xf32, #tpu.memory_space<vmem>>, vector<1x8x128xf32>
    %228 = vector.shape_cast %227 : vector<1x8x128xf32> to vector<8x128xf32>
    %229 = arith.maximumf %228, %221 : vector<8x128xf32>
    %230 = arith.maximumf %229, %226 : vector<8x128xf32>
    %231 = arith.index_cast %216 : i32 to index
    %c0_262 = arith.constant 0 : index
    %c0_263 = arith.constant 0 : index
    %c0_264 = arith.constant 0 : index
    %232 = vector.load %arg6[%231, %c0_262, %c0_263, %c0_264] : memref<8x8x8x128xf32, #tpu.memory_space<vmem>>, vector<1x1x8x128xf32>
    %233 = vector.shape_cast %232 : vector<1x1x8x128xf32> to vector<8x128xf32>
    %234 = vector.shape_cast %230 : vector<8x128xf32> to vector<1x1x8x128xf32>
    tpu.vector_store %arg6[%231, %c0_262, %c0_263, %c0_264], %234 {strides = array<i32>} : memref<8x8x8x128xf32, #tpu.memory_space<vmem>>, vector<1x1x8x128xf32>,
    %c0_265 = arith.constant 0 : index
    %c0_266 = arith.constant 0 : index
    %c0_267 = arith.constant 0 : index
    %235 = vector.load %arg5[%c0_265, %c0_266, %c0_267] : memref<8x8x128xf32, #tpu.memory_space<vmem>>, vector<1x8x128xf32>
    %236 = vector.shape_cast %235 : vector<1x8x128xf32> to vector<8x128xf32>
    %237 = vector.shape_cast %226 : vector<8x128xf32> to vector<1x8x128xf32>
    tpu.vector_store %arg5[%c0_265, %c0_266, %c0_267], %237 {strides = array<i32>} : memref<8x8x128xf32, #tpu.memory_space<vmem>>, vector<1x8x128xf32>,
    %c2_268 = arith.constant 2 : index
    %c1_269 = arith.constant 1 : index
    %c0_270 = arith.constant 0 : index
    %c0_271 = arith.constant 0 : index
    %238 = vector.load %arg1[%c2_268, %c1_269, %c0_270, %c0_271] : memref<8x16x8x128xf32, #tpu.memory_space<vmem>>, vector<1x1x8x128xf32>
    %239 = vector.shape_cast %238 : vector<1x1x8x128xf32> to vector<8x128xf32>
    %c2_272 = arith.constant 2 : index
    %c2_273 = arith.constant 2 : index
    %c0_274 = arith.constant 0 : index
    %c0_275 = arith.constant 0 : index
    %240 = vector.load %arg1[%c2_272, %c2_273, %c0_274, %c0_275] : memref<8x16x8x128xf32, #tpu.memory_space<vmem>>, vector<1x1x8x128xf32>
    %241 = vector.shape_cast %240 : vector<1x1x8x128xf32> to vector<8x128xf32>
    %242 = arith.maximumf %239, %241 : vector<8x128xf32>
    %c2_276 = arith.constant 2 : index
    %c3_277 = arith.constant 3 : index
    %c0_278 = arith.constant 0 : index
    %c0_279 = arith.constant 0 : index
    %243 = vector.load %arg1[%c2_276, %c3_277, %c0_278, %c0_279] : memref<8x16x8x128xf32, #tpu.memory_space<vmem>>, vector<1x1x8x128xf32>
    %244 = vector.shape_cast %243 : vector<1x1x8x128xf32> to vector<8x128xf32>
    %245 = arith.maximumf %242, %244 : vector<8x128xf32>
    %c3_280 = arith.constant 3 : index
    %c1_281 = arith.constant 1 : index
    %c0_282 = arith.constant 0 : index
    %c0_283 = arith.constant 0 : index
    %246 = vector.load %arg1[%c3_280, %c1_281, %c0_282, %c0_283] : memref<8x16x8x128xf32, #tpu.memory_space<vmem>>, vector<1x1x8x128xf32>
    %247 = vector.shape_cast %246 : vector<1x1x8x128xf32> to vector<8x128xf32>
    %c3_284 = arith.constant 3 : index
    %c2_285 = arith.constant 2 : index
    %c0_286 = arith.constant 0 : index
    %c0_287 = arith.constant 0 : index
    %248 = vector.load %arg1[%c3_284, %c2_285, %c0_286, %c0_287] : memref<8x16x8x128xf32, #tpu.memory_space<vmem>>, vector<1x1x8x128xf32>
    %249 = vector.shape_cast %248 : vector<1x1x8x128xf32> to vector<8x128xf32>
    %250 = arith.maximumf %247, %249 : vector<8x128xf32>
    %c3_288 = arith.constant 3 : index
    %c3_289 = arith.constant 3 : index
    %c0_290 = arith.constant 0 : index
    %c0_291 = arith.constant 0 : index
    %251 = vector.load %arg1[%c3_288, %c3_289, %c0_290, %c0_291] : memref<8x16x8x128xf32, #tpu.memory_space<vmem>>, vector<1x1x8x128xf32>
    %252 = vector.shape_cast %251 : vector<1x1x8x128xf32> to vector<8x128xf32>
    %253 = arith.maximumf %250, %252 : vector<8x128xf32>
    %c1_292 = arith.constant 1 : index
    %c0_293 = arith.constant 0 : index
    %c0_294 = arith.constant 0 : index
    %254 = vector.load %arg5[%c1_292, %c0_293, %c0_294] : memref<8x8x128xf32, #tpu.memory_space<vmem>>, vector<1x8x128xf32>
    %255 = vector.shape_cast %254 : vector<1x8x128xf32> to vector<8x128xf32>
    %256 = arith.maximumf %255, %245 : vector<8x128xf32>
    %257 = arith.maximumf %256, %253 : vector<8x128xf32>
    %258 = arith.index_cast %216 : i32 to index
    %c1_295 = arith.constant 1 : index
    %c0_296 = arith.constant 0 : index
    %c0_297 = arith.constant 0 : index
    %259 = vector.load %arg6[%258, %c1_295, %c0_296, %c0_297] : memref<8x8x8x128xf32, #tpu.memory_space<vmem>>, vector<1x1x8x128xf32>
    %260 = vector.shape_cast %259 : vector<1x1x8x128xf32> to vector<8x128xf32>
    %261 = vector.shape_cast %257 : vector<8x128xf32> to vector<1x1x8x128xf32>
    tpu.vector_store %arg6[%258, %c1_295, %c0_296, %c0_297], %261 {strides = array<i32>} : memref<8x8x8x128xf32, #tpu.memory_space<vmem>>, vector<1x1x8x128xf32>,
    %c1_298 = arith.constant 1 : index
    %c0_299 = arith.constant 0 : index
    %c0_300 = arith.constant 0 : index
    %262 = vector.load %arg5[%c1_298, %c0_299, %c0_300] : memref<8x8x128xf32, #tpu.memory_space<vmem>>, vector<1x8x128xf32>
    %263 = vector.shape_cast %262 : vector<1x8x128xf32> to vector<8x128xf32>
    %264 = vector.shape_cast %253 : vector<8x128xf32> to vector<1x8x128xf32>
    tpu.vector_store %arg5[%c1_298, %c0_299, %c0_300], %264 {strides = array<i32>} : memref<8x8x128xf32, #tpu.memory_space<vmem>>, vector<1x8x128xf32>,
    %c2_301 = arith.constant 2 : index
    %c3_302 = arith.constant 3 : index
    %c0_303 = arith.constant 0 : index
    %c0_304 = arith.constant 0 : index
    %265 = vector.load %arg1[%c2_301, %c3_302, %c0_303, %c0_304] : memref<8x16x8x128xf32, #tpu.memory_space<vmem>>, vector<1x1x8x128xf32>
    %266 = vector.shape_cast %265 : vector<1x1x8x128xf32> to vector<8x128xf32>
    %c2_305 = arith.constant 2 : index
    %c4_306 = arith.constant 4 : index
    %c0_307 = arith.constant 0 : index
    %c0_308 = arith.constant 0 : index
    %267 = vector.load %arg1[%c2_305, %c4_306, %c0_307, %c0_308] : memref<8x16x8x128xf32, #tpu.memory_space<vmem>>, vector<1x1x8x128xf32>
    %268 = vector.shape_cast %267 : vector<1x1x8x128xf32> to vector<8x128xf32>
    %269 = arith.maximumf %266, %268 : vector<8x128xf32>
    %c2_309 = arith.constant 2 : index
    %c5_310 = arith.constant 5 : index
    %c0_311 = arith.constant 0 : index
    %c0_312 = arith.constant 0 : index
    %270 = vector.load %arg1[%c2_309, %c5_310, %c0_311, %c0_312] : memref<8x16x8x128xf32, #tpu.memory_space<vmem>>, vector<1x1x8x128xf32>
    %271 = vector.shape_cast %270 : vector<1x1x8x128xf32> to vector<8x128xf32>
    %272 = arith.maximumf %269, %271 : vector<8x128xf32>
    %c3_313 = arith.constant 3 : index
    %c3_314 = arith.constant 3 : index
    %c0_315 = arith.constant 0 : index
    %c0_316 = arith.constant 0 : index
    %273 = vector.load %arg1[%c3_313, %c3_314, %c0_315, %c0_316] : memref<8x16x8x128xf32, #tpu.memory_space<vmem>>, vector<1x1x8x128xf32>
    %274 = vector.shape_cast %273 : vector<1x1x8x128xf32> to vector<8x128xf32>
    %c3_317 = arith.constant 3 : index
    %c4_318 = arith.constant 4 : index
    %c0_319 = arith.constant 0 : index
    %c0_320 = arith.constant 0 : index
    %275 = vector.load %arg1[%c3_317, %c4_318, %c0_319, %c0_320] : memref<8x16x8x128xf32, #tpu.memory_space<vmem>>, vector<1x1x8x128xf32>
    %276 = vector.shape_cast %275 : vector<1x1x8x128xf32> to vector<8x128xf32>
    %277 = arith.maximumf %274, %276 : vector<8x128xf32>
    %c3_321 = arith.constant 3 : index
    %c5_322 = arith.constant 5 : index
    %c0_323 = arith.constant 0 : index
    %c0_324 = arith.constant 0 : index
    %278 = vector.load %arg1[%c3_321, %c5_322, %c0_323, %c0_324] : memref<8x16x8x128xf32, #tpu.memory_space<vmem>>, vector<1x1x8x128xf32>
    %279 = vector.shape_cast %278 : vector<1x1x8x128xf32> to vector<8x128xf32>
    %280 = arith.maximumf %277, %279 : vector<8x128xf32>
    %c2_325 = arith.constant 2 : index
    %c0_326 = arith.constant 0 : index
    %c0_327 = arith.constant 0 : index
    %281 = vector.load %arg5[%c2_325, %c0_326, %c0_327] : memref<8x8x128xf32, #tpu.memory_space<vmem>>, vector<1x8x128xf32>
    %282 = vector.shape_cast %281 : vector<1x8x128xf32> to vector<8x128xf32>
    %283 = arith.maximumf %282, %272 : vector<8x128xf32>
    %284 = arith.maximumf %283, %280 : vector<8x128xf32>
    %285 = arith.index_cast %216 : i32 to index
    %c2_328 = arith.constant 2 : index
    %c0_329 = arith.constant 0 : index
    %c0_330 = arith.constant 0 : index
    %286 = vector.load %arg6[%285, %c2_328, %c0_329, %c0_330] : memref<8x8x8x128xf32, #tpu.memory_space<vmem>>, vector<1x1x8x128xf32>
    %287 = vector.shape_cast %286 : vector<1x1x8x128xf32> to vector<8x128xf32>
    %288 = vector.shape_cast %284 : vector<8x128xf32> to vector<1x1x8x128xf32>
    tpu.vector_store %arg6[%285, %c2_328, %c0_329, %c0_330], %288 {strides = array<i32>} : memref<8x8x8x128xf32, #tpu.memory_space<vmem>>, vector<1x1x8x128xf32>,
    %c2_331 = arith.constant 2 : index
    %c0_332 = arith.constant 0 : index
    %c0_333 = arith.constant 0 : index
    %289 = vector.load %arg5[%c2_331, %c0_332, %c0_333] : memref<8x8x128xf32, #tpu.memory_space<vmem>>, vector<1x8x128xf32>
    %290 = vector.shape_cast %289 : vector<1x8x128xf32> to vector<8x128xf32>
    %291 = vector.shape_cast %280 : vector<8x128xf32> to vector<1x8x128xf32>
    tpu.vector_store %arg5[%c2_331, %c0_332, %c0_333], %291 {strides = array<i32>} : memref<8x8x128xf32, #tpu.memory_space<vmem>>, vector<1x8x128xf32>,
    %c2_334 = arith.constant 2 : index
    %c5_335 = arith.constant 5 : index
    %c0_336 = arith.constant 0 : index
    %c0_337 = arith.constant 0 : index
    %292 = vector.load %arg1[%c2_334, %c5_335, %c0_336, %c0_337] : memref<8x16x8x128xf32, #tpu.memory_space<vmem>>, vector<1x1x8x128xf32>
    %293 = vector.shape_cast %292 : vector<1x1x8x128xf32> to vector<8x128xf32>
    %c2_338 = arith.constant 2 : index
    %c6_339 = arith.constant 6 : index
    %c0_340 = arith.constant 0 : index
    %c0_341 = arith.constant 0 : index
    %294 = vector.load %arg1[%c2_338, %c6_339, %c0_340, %c0_341] : memref<8x16x8x128xf32, #tpu.memory_space<vmem>>, vector<1x1x8x128xf32>
    %295 = vector.shape_cast %294 : vector<1x1x8x128xf32> to vector<8x128xf32>
    %296 = arith.maximumf %293, %295 : vector<8x128xf32>
    %c2_342 = arith.constant 2 : index
    %c7_343 = arith.constant 7 : index
    %c0_344 = arith.constant 0 : index
    %c0_345 = arith.constant 0 : index
    %297 = vector.load %arg1[%c2_342, %c7_343, %c0_344, %c0_345] : memref<8x16x8x128xf32, #tpu.memory_space<vmem>>, vector<1x1x8x128xf32>
    %298 = vector.shape_cast %297 : vector<1x1x8x128xf32> to vector<8x128xf32>
    %299 = arith.maximumf %296, %298 : vector<8x128xf32>
    %c3_346 = arith.constant 3 : index
    %c5_347 = arith.constant 5 : index
    %c0_348 = arith.constant 0 : index
    %c0_349 = arith.constant 0 : index
    %300 = vector.load %arg1[%c3_346, %c5_347, %c0_348, %c0_349] : memref<8x16x8x128xf32, #tpu.memory_space<vmem>>, vector<1x1x8x128xf32>
    %301 = vector.shape_cast %300 : vector<1x1x8x128xf32> to vector<8x128xf32>
    %c3_350 = arith.constant 3 : index
    %c6_351 = arith.constant 6 : index
    %c0_352 = arith.constant 0 : index
    %c0_353 = arith.constant 0 : index
    %302 = vector.load %arg1[%c3_350, %c6_351, %c0_352, %c0_353] : memref<8x16x8x128xf32, #tpu.memory_space<vmem>>, vector<1x1x8x128xf32>
    %303 = vector.shape_cast %302 : vector<1x1x8x128xf32> to vector<8x128xf32>
    %304 = arith.maximumf %301, %303 : vector<8x128xf32>
    %c3_354 = arith.constant 3 : index
    %c7_355 = arith.constant 7 : index
    %c0_356 = arith.constant 0 : index
    %c0_357 = arith.constant 0 : index
    %305 = vector.load %arg1[%c3_354, %c7_355, %c0_356, %c0_357] : memref<8x16x8x128xf32, #tpu.memory_space<vmem>>, vector<1x1x8x128xf32>
    %306 = vector.shape_cast %305 : vector<1x1x8x128xf32> to vector<8x128xf32>
    %307 = arith.maximumf %304, %306 : vector<8x128xf32>
    %c3_358 = arith.constant 3 : index
    %c0_359 = arith.constant 0 : index
    %c0_360 = arith.constant 0 : index
    %308 = vector.load %arg5[%c3_358, %c0_359, %c0_360] : memref<8x8x128xf32, #tpu.memory_space<vmem>>, vector<1x8x128xf32>
    %309 = vector.shape_cast %308 : vector<1x8x128xf32> to vector<8x128xf32>
    %310 = arith.maximumf %309, %299 : vector<8x128xf32>
    %311 = arith.maximumf %310, %307 : vector<8x128xf32>
    %312 = arith.index_cast %216 : i32 to index
    %c3_361 = arith.constant 3 : index
    %c0_362 = arith.constant 0 : index
    %c0_363 = arith.constant 0 : index
    %313 = vector.load %arg6[%312, %c3_361, %c0_362, %c0_363] : memref<8x8x8x128xf32, #tpu.memory_space<vmem>>, vector<1x1x8x128xf32>
    %314 = vector.shape_cast %313 : vector<1x1x8x128xf32> to vector<8x128xf32>
    %315 = vector.shape_cast %311 : vector<8x128xf32> to vector<1x1x8x128xf32>
    tpu.vector_store %arg6[%312, %c3_361, %c0_362, %c0_363], %315 {strides = array<i32>} : memref<8x8x8x128xf32, #tpu.memory_space<vmem>>, vector<1x1x8x128xf32>,
    %c3_364 = arith.constant 3 : index
    %c0_365 = arith.constant 0 : index
    %c0_366 = arith.constant 0 : index
    %316 = vector.load %arg5[%c3_364, %c0_365, %c0_366] : memref<8x8x128xf32, #tpu.memory_space<vmem>>, vector<1x8x128xf32>
    %317 = vector.shape_cast %316 : vector<1x8x128xf32> to vector<8x128xf32>
    %318 = vector.shape_cast %307 : vector<8x128xf32> to vector<1x8x128xf32>
    tpu.vector_store %arg5[%c3_364, %c0_365, %c0_366], %318 {strides = array<i32>} : memref<8x8x128xf32, #tpu.memory_space<vmem>>, vector<1x8x128xf32>,
    %c2_367 = arith.constant 2 : index
    %c7_368 = arith.constant 7 : index
    %c0_369 = arith.constant 0 : index
    %c0_370 = arith.constant 0 : index
    %319 = vector.load %arg1[%c2_367, %c7_368, %c0_369, %c0_370] : memref<8x16x8x128xf32, #tpu.memory_space<vmem>>, vector<1x1x8x128xf32>
    %320 = vector.shape_cast %319 : vector<1x1x8x128xf32> to vector<8x128xf32>
    %c2_371 = arith.constant 2 : index
    %c8_372 = arith.constant 8 : index
    %c0_373 = arith.constant 0 : index
    %c0_374 = arith.constant 0 : index
    %321 = vector.load %arg1[%c2_371, %c8_372, %c0_373, %c0_374] : memref<8x16x8x128xf32, #tpu.memory_space<vmem>>, vector<1x1x8x128xf32>
    %322 = vector.shape_cast %321 : vector<1x1x8x128xf32> to vector<8x128xf32>
    %323 = arith.maximumf %320, %322 : vector<8x128xf32>
    %c2_375 = arith.constant 2 : index
    %c9_376 = arith.constant 9 : index
    %c0_377 = arith.constant 0 : index
    %c0_378 = arith.constant 0 : index
    %324 = vector.load %arg1[%c2_375, %c9_376, %c0_377, %c0_378] : memref<8x16x8x128xf32, #tpu.memory_space<vmem>>, vector<1x1x8x128xf32>
    %325 = vector.shape_cast %324 : vector<1x1x8x128xf32> to vector<8x128xf32>
    %326 = arith.maximumf %323, %325 : vector<8x128xf32>
    %c3_379 = arith.constant 3 : index
    %c7_380 = arith.constant 7 : index
    %c0_381 = arith.constant 0 : index
    %c0_382 = arith.constant 0 : index
    %327 = vector.load %arg1[%c3_379, %c7_380, %c0_381, %c0_382] : memref<8x16x8x128xf32, #tpu.memory_space<vmem>>, vector<1x1x8x128xf32>
    %328 = vector.shape_cast %327 : vector<1x1x8x128xf32> to vector<8x128xf32>
    %c3_383 = arith.constant 3 : index
    %c8_384 = arith.constant 8 : index
    %c0_385 = arith.constant 0 : index
    %c0_386 = arith.constant 0 : index
    %329 = vector.load %arg1[%c3_383, %c8_384, %c0_385, %c0_386] : memref<8x16x8x128xf32, #tpu.memory_space<vmem>>, vector<1x1x8x128xf32>
    %330 = vector.shape_cast %329 : vector<1x1x8x128xf32> to vector<8x128xf32>
    %331 = arith.maximumf %328, %330 : vector<8x128xf32>
    %c3_387 = arith.constant 3 : index
    %c9_388 = arith.constant 9 : index
    %c0_389 = arith.constant 0 : index
    %c0_390 = arith.constant 0 : index
    %332 = vector.load %arg1[%c3_387, %c9_388, %c0_389, %c0_390] : memref<8x16x8x128xf32, #tpu.memory_space<vmem>>, vector<1x1x8x128xf32>
    %333 = vector.shape_cast %332 : vector<1x1x8x128xf32> to vector<8x128xf32>
    %334 = arith.maximumf %331, %333 : vector<8x128xf32>
    %c4_391 = arith.constant 4 : index
    %c0_392 = arith.constant 0 : index
    %c0_393 = arith.constant 0 : index
    %335 = vector.load %arg5[%c4_391, %c0_392, %c0_393] : memref<8x8x128xf32, #tpu.memory_space<vmem>>, vector<1x8x128xf32>
    %336 = vector.shape_cast %335 : vector<1x8x128xf32> to vector<8x128xf32>
    %337 = arith.maximumf %336, %326 : vector<8x128xf32>
    %338 = arith.maximumf %337, %334 : vector<8x128xf32>
    %339 = arith.index_cast %216 : i32 to index
    %c4_394 = arith.constant 4 : index
    %c0_395 = arith.constant 0 : index
    %c0_396 = arith.constant 0 : index
    %340 = vector.load %arg6[%339, %c4_394, %c0_395, %c0_396] : memref<8x8x8x128xf32, #tpu.memory_space<vmem>>, vector<1x1x8x128xf32>
    %341 = vector.shape_cast %340 : vector<1x1x8x128xf32> to vector<8x128xf32>
    %342 = vector.shape_cast %338 : vector<8x128xf32> to vector<1x1x8x128xf32>
    tpu.vector_store %arg6[%339, %c4_394, %c0_395, %c0_396], %342 {strides = array<i32>} : memref<8x8x8x128xf32, #tpu.memory_space<vmem>>, vector<1x1x8x128xf32>,
    %c4_397 = arith.constant 4 : index
    %c0_398 = arith.constant 0 : index
    %c0_399 = arith.constant 0 : index
    %343 = vector.load %arg5[%c4_397, %c0_398, %c0_399] : memref<8x8x128xf32, #tpu.memory_space<vmem>>, vector<1x8x128xf32>
    %344 = vector.shape_cast %343 : vector<1x8x128xf32> to vector<8x128xf32>
    %345 = vector.shape_cast %334 : vector<8x128xf32> to vector<1x8x128xf32>
    tpu.vector_store %arg5[%c4_397, %c0_398, %c0_399], %345 {strides = array<i32>} : memref<8x8x128xf32, #tpu.memory_space<vmem>>, vector<1x8x128xf32>,
    %c2_400 = arith.constant 2 : index
    %c9_401 = arith.constant 9 : index
    %c0_402 = arith.constant 0 : index
    %c0_403 = arith.constant 0 : index
    %346 = vector.load %arg1[%c2_400, %c9_401, %c0_402, %c0_403] : memref<8x16x8x128xf32, #tpu.memory_space<vmem>>, vector<1x1x8x128xf32>
    %347 = vector.shape_cast %346 : vector<1x1x8x128xf32> to vector<8x128xf32>
    %c2_404 = arith.constant 2 : index
    %c10_405 = arith.constant 10 : index
    %c0_406 = arith.constant 0 : index
    %c0_407 = arith.constant 0 : index
    %348 = vector.load %arg1[%c2_404, %c10_405, %c0_406, %c0_407] : memref<8x16x8x128xf32, #tpu.memory_space<vmem>>, vector<1x1x8x128xf32>
    %349 = vector.shape_cast %348 : vector<1x1x8x128xf32> to vector<8x128xf32>
    %350 = arith.maximumf %347, %349 : vector<8x128xf32>
    %c2_408 = arith.constant 2 : index
    %c11_409 = arith.constant 11 : index
    %c0_410 = arith.constant 0 : index
    %c0_411 = arith.constant 0 : index
    %351 = vector.load %arg1[%c2_408, %c11_409, %c0_410, %c0_411] : memref<8x16x8x128xf32, #tpu.memory_space<vmem>>, vector<1x1x8x128xf32>
    %352 = vector.shape_cast %351 : vector<1x1x8x128xf32> to vector<8x128xf32>
    %353 = arith.maximumf %350, %352 : vector<8x128xf32>
    %c3_412 = arith.constant 3 : index
    %c9_413 = arith.constant 9 : index
    %c0_414 = arith.constant 0 : index
    %c0_415 = arith.constant 0 : index
    %354 = vector.load %arg1[%c3_412, %c9_413, %c0_414, %c0_415] : memref<8x16x8x128xf32, #tpu.memory_space<vmem>>, vector<1x1x8x128xf32>
    %355 = vector.shape_cast %354 : vector<1x1x8x128xf32> to vector<8x128xf32>
    %c3_416 = arith.constant 3 : index
    %c10_417 = arith.constant 10 : index
    %c0_418 = arith.constant 0 : index
    %c0_419 = arith.constant 0 : index
    %356 = vector.load %arg1[%c3_416, %c10_417, %c0_418, %c0_419] : memref<8x16x8x128xf32, #tpu.memory_space<vmem>>, vector<1x1x8x128xf32>
    %357 = vector.shape_cast %356 : vector<1x1x8x128xf32> to vector<8x128xf32>
    %358 = arith.maximumf %355, %357 : vector<8x128xf32>
    %c3_420 = arith.constant 3 : index
    %c11_421 = arith.constant 11 : index
    %c0_422 = arith.constant 0 : index
    %c0_423 = arith.constant 0 : index
    %359 = vector.load %arg1[%c3_420, %c11_421, %c0_422, %c0_423] : memref<8x16x8x128xf32, #tpu.memory_space<vmem>>, vector<1x1x8x128xf32>
    %360 = vector.shape_cast %359 : vector<1x1x8x128xf32> to vector<8x128xf32>
    %361 = arith.maximumf %358, %360 : vector<8x128xf32>
    %c5_424 = arith.constant 5 : index
    %c0_425 = arith.constant 0 : index
    %c0_426 = arith.constant 0 : index
    %362 = vector.load %arg5[%c5_424, %c0_425, %c0_426] : memref<8x8x128xf32, #tpu.memory_space<vmem>>, vector<1x8x128xf32>
    %363 = vector.shape_cast %362 : vector<1x8x128xf32> to vector<8x128xf32>
    %364 = arith.maximumf %363, %353 : vector<8x128xf32>
    %365 = arith.maximumf %364, %361 : vector<8x128xf32>
    %366 = arith.index_cast %216 : i32 to index
    %c5_427 = arith.constant 5 : index
    %c0_428 = arith.constant 0 : index
    %c0_429 = arith.constant 0 : index
    %367 = vector.load %arg6[%366, %c5_427, %c0_428, %c0_429] : memref<8x8x8x128xf32, #tpu.memory_space<vmem>>, vector<1x1x8x128xf32>
    %368 = vector.shape_cast %367 : vector<1x1x8x128xf32> to vector<8x128xf32>
    %369 = vector.shape_cast %365 : vector<8x128xf32> to vector<1x1x8x128xf32>
    tpu.vector_store %arg6[%366, %c5_427, %c0_428, %c0_429], %369 {strides = array<i32>} : memref<8x8x8x128xf32, #tpu.memory_space<vmem>>, vector<1x1x8x128xf32>,
    %c5_430 = arith.constant 5 : index
    %c0_431 = arith.constant 0 : index
    %c0_432 = arith.constant 0 : index
    %370 = vector.load %arg5[%c5_430, %c0_431, %c0_432] : memref<8x8x128xf32, #tpu.memory_space<vmem>>, vector<1x8x128xf32>
    %371 = vector.shape_cast %370 : vector<1x8x128xf32> to vector<8x128xf32>
    %372 = vector.shape_cast %361 : vector<8x128xf32> to vector<1x8x128xf32>
    tpu.vector_store %arg5[%c5_430, %c0_431, %c0_432], %372 {strides = array<i32>} : memref<8x8x128xf32, #tpu.memory_space<vmem>>, vector<1x8x128xf32>,
    %c2_433 = arith.constant 2 : index
    %c11_434 = arith.constant 11 : index
    %c0_435 = arith.constant 0 : index
    %c0_436 = arith.constant 0 : index
    %373 = vector.load %arg1[%c2_433, %c11_434, %c0_435, %c0_436] : memref<8x16x8x128xf32, #tpu.memory_space<vmem>>, vector<1x1x8x128xf32>
    %374 = vector.shape_cast %373 : vector<1x1x8x128xf32> to vector<8x128xf32>
    %c2_437 = arith.constant 2 : index
    %c12_438 = arith.constant 12 : index
    %c0_439 = arith.constant 0 : index
    %c0_440 = arith.constant 0 : index
    %375 = vector.load %arg1[%c2_437, %c12_438, %c0_439, %c0_440] : memref<8x16x8x128xf32, #tpu.memory_space<vmem>>, vector<1x1x8x128xf32>
    %376 = vector.shape_cast %375 : vector<1x1x8x128xf32> to vector<8x128xf32>
    %377 = arith.maximumf %374, %376 : vector<8x128xf32>
    %c2_441 = arith.constant 2 : index
    %c13_442 = arith.constant 13 : index
    %c0_443 = arith.constant 0 : index
    %c0_444 = arith.constant 0 : index
    %378 = vector.load %arg1[%c2_441, %c13_442, %c0_443, %c0_444] : memref<8x16x8x128xf32, #tpu.memory_space<vmem>>, vector<1x1x8x128xf32>
    %379 = vector.shape_cast %378 : vector<1x1x8x128xf32> to vector<8x128xf32>
    %380 = arith.maximumf %377, %379 : vector<8x128xf32>
    %c3_445 = arith.constant 3 : index
    %c11_446 = arith.constant 11 : index
    %c0_447 = arith.constant 0 : index
    %c0_448 = arith.constant 0 : index
    %381 = vector.load %arg1[%c3_445, %c11_446, %c0_447, %c0_448] : memref<8x16x8x128xf32, #tpu.memory_space<vmem>>, vector<1x1x8x128xf32>
    %382 = vector.shape_cast %381 : vector<1x1x8x128xf32> to vector<8x128xf32>
    %c3_449 = arith.constant 3 : index
    %c12_450 = arith.constant 12 : index
    %c0_451 = arith.constant 0 : index
    %c0_452 = arith.constant 0 : index
    %383 = vector.load %arg1[%c3_449, %c12_450, %c0_451, %c0_452] : memref<8x16x8x128xf32, #tpu.memory_space<vmem>>, vector<1x1x8x128xf32>
    %384 = vector.shape_cast %383 : vector<1x1x8x128xf32> to vector<8x128xf32>
    %385 = arith.maximumf %382, %384 : vector<8x128xf32>
    %c3_453 = arith.constant 3 : index
    %c13_454 = arith.constant 13 : index
    %c0_455 = arith.constant 0 : index
    %c0_456 = arith.constant 0 : index
    %386 = vector.load %arg1[%c3_453, %c13_454, %c0_455, %c0_456] : memref<8x16x8x128xf32, #tpu.memory_space<vmem>>, vector<1x1x8x128xf32>
    %387 = vector.shape_cast %386 : vector<1x1x8x128xf32> to vector<8x128xf32>
    %388 = arith.maximumf %385, %387 : vector<8x128xf32>
    %c6_457 = arith.constant 6 : index
    %c0_458 = arith.constant 0 : index
    %c0_459 = arith.constant 0 : index
    %389 = vector.load %arg5[%c6_457, %c0_458, %c0_459] : memref<8x8x128xf32, #tpu.memory_space<vmem>>, vector<1x8x128xf32>
    %390 = vector.shape_cast %389 : vector<1x8x128xf32> to vector<8x128xf32>
    %391 = arith.maximumf %390, %380 : vector<8x128xf32>
    %392 = arith.maximumf %391, %388 : vector<8x128xf32>
    %393 = arith.index_cast %216 : i32 to index
    %c6_460 = arith.constant 6 : index
    %c0_461 = arith.constant 0 : index
    %c0_462 = arith.constant 0 : index
    %394 = vector.load %arg6[%393, %c6_460, %c0_461, %c0_462] : memref<8x8x8x128xf32, #tpu.memory_space<vmem>>, vector<1x1x8x128xf32>
    %395 = vector.shape_cast %394 : vector<1x1x8x128xf32> to vector<8x128xf32>
    %396 = vector.shape_cast %392 : vector<8x128xf32> to vector<1x1x8x128xf32>
    tpu.vector_store %arg6[%393, %c6_460, %c0_461, %c0_462], %396 {strides = array<i32>} : memref<8x8x8x128xf32, #tpu.memory_space<vmem>>, vector<1x1x8x128xf32>,
    %c6_463 = arith.constant 6 : index
    %c0_464 = arith.constant 0 : index
    %c0_465 = arith.constant 0 : index
    %397 = vector.load %arg5[%c6_463, %c0_464, %c0_465] : memref<8x8x128xf32, #tpu.memory_space<vmem>>, vector<1x8x128xf32>
    %398 = vector.shape_cast %397 : vector<1x8x128xf32> to vector<8x128xf32>
    %399 = vector.shape_cast %388 : vector<8x128xf32> to vector<1x8x128xf32>
    tpu.vector_store %arg5[%c6_463, %c0_464, %c0_465], %399 {strides = array<i32>} : memref<8x8x128xf32, #tpu.memory_space<vmem>>, vector<1x8x128xf32>,
    %c2_466 = arith.constant 2 : index
    %c13_467 = arith.constant 13 : index
    %c0_468 = arith.constant 0 : index
    %c0_469 = arith.constant 0 : index
    %400 = vector.load %arg1[%c2_466, %c13_467, %c0_468, %c0_469] : memref<8x16x8x128xf32, #tpu.memory_space<vmem>>, vector<1x1x8x128xf32>
    %401 = vector.shape_cast %400 : vector<1x1x8x128xf32> to vector<8x128xf32>
    %c2_470 = arith.constant 2 : index
    %c14_471 = arith.constant 14 : index
    %c0_472 = arith.constant 0 : index
    %c0_473 = arith.constant 0 : index
    %402 = vector.load %arg1[%c2_470, %c14_471, %c0_472, %c0_473] : memref<8x16x8x128xf32, #tpu.memory_space<vmem>>, vector<1x1x8x128xf32>
    %403 = vector.shape_cast %402 : vector<1x1x8x128xf32> to vector<8x128xf32>
    %404 = arith.maximumf %401, %403 : vector<8x128xf32>
    %c2_474 = arith.constant 2 : index
    %c15_475 = arith.constant 15 : index
    %c0_476 = arith.constant 0 : index
    %c0_477 = arith.constant 0 : index
    %405 = vector.load %arg1[%c2_474, %c15_475, %c0_476, %c0_477] : memref<8x16x8x128xf32, #tpu.memory_space<vmem>>, vector<1x1x8x128xf32>
    %406 = vector.shape_cast %405 : vector<1x1x8x128xf32> to vector<8x128xf32>
    %407 = arith.maximumf %404, %406 : vector<8x128xf32>
    %c3_478 = arith.constant 3 : index
    %c13_479 = arith.constant 13 : index
    %c0_480 = arith.constant 0 : index
    %c0_481 = arith.constant 0 : index
    %408 = vector.load %arg1[%c3_478, %c13_479, %c0_480, %c0_481] : memref<8x16x8x128xf32, #tpu.memory_space<vmem>>, vector<1x1x8x128xf32>
    %409 = vector.shape_cast %408 : vector<1x1x8x128xf32> to vector<8x128xf32>
    %c3_482 = arith.constant 3 : index
    %c14_483 = arith.constant 14 : index
    %c0_484 = arith.constant 0 : index
    %c0_485 = arith.constant 0 : index
    %410 = vector.load %arg1[%c3_482, %c14_483, %c0_484, %c0_485] : memref<8x16x8x128xf32, #tpu.memory_space<vmem>>, vector<1x1x8x128xf32>
    %411 = vector.shape_cast %410 : vector<1x1x8x128xf32> to vector<8x128xf32>
    %412 = arith.maximumf %409, %411 : vector<8x128xf32>
    %c3_486 = arith.constant 3 : index
    %c15_487 = arith.constant 15 : index
    %c0_488 = arith.constant 0 : index
    %c0_489 = arith.constant 0 : index
    %413 = vector.load %arg1[%c3_486, %c15_487, %c0_488, %c0_489] : memref<8x16x8x128xf32, #tpu.memory_space<vmem>>, vector<1x1x8x128xf32>
    %414 = vector.shape_cast %413 : vector<1x1x8x128xf32> to vector<8x128xf32>
    %415 = arith.maximumf %412, %414 : vector<8x128xf32>
    %c7_490 = arith.constant 7 : index
    %c0_491 = arith.constant 0 : index
    %c0_492 = arith.constant 0 : index
    %416 = vector.load %arg5[%c7_490, %c0_491, %c0_492] : memref<8x8x128xf32, #tpu.memory_space<vmem>>, vector<1x8x128xf32>
    %417 = vector.shape_cast %416 : vector<1x8x128xf32> to vector<8x128xf32>
    %418 = arith.maximumf %417, %407 : vector<8x128xf32>
    %419 = arith.maximumf %418, %415 : vector<8x128xf32>
    %420 = arith.index_cast %216 : i32 to index
    %c7_493 = arith.constant 7 : index
    %c0_494 = arith.constant 0 : index
    %c0_495 = arith.constant 0 : index
    %421 = vector.load %arg6[%420, %c7_493, %c0_494, %c0_495] : memref<8x8x8x128xf32, #tpu.memory_space<vmem>>, vector<1x1x8x128xf32>
    %422 = vector.shape_cast %421 : vector<1x1x8x128xf32> to vector<8x128xf32>
    %423 = vector.shape_cast %419 : vector<8x128xf32> to vector<1x1x8x128xf32>
    tpu.vector_store %arg6[%420, %c7_493, %c0_494, %c0_495], %423 {strides = array<i32>} : memref<8x8x8x128xf32, #tpu.memory_space<vmem>>, vector<1x1x8x128xf32>,
    %c7_496 = arith.constant 7 : index
    %c0_497 = arith.constant 0 : index
    %c0_498 = arith.constant 0 : index
    %424 = vector.load %arg5[%c7_496, %c0_497, %c0_498] : memref<8x8x128xf32, #tpu.memory_space<vmem>>, vector<1x8x128xf32>
    %425 = vector.shape_cast %424 : vector<1x8x128xf32> to vector<8x128xf32>
    %426 = vector.shape_cast %415 : vector<8x128xf32> to vector<1x8x128xf32>
    tpu.vector_store %arg5[%c7_496, %c0_497, %c0_498], %426 {strides = array<i32>} : memref<8x8x128xf32, #tpu.memory_space<vmem>>, vector<1x8x128xf32>,
    %c4_i32_499 = arith.constant 4 : i32
    %427 = arith.muli %arg0, %c4_i32_499 : i32
    %c2_i32 = arith.constant 2 : i32
    %428 = arith.addi %427, %c2_i32 : i32
    %c4_500 = arith.constant 4 : index
    %c0_501 = arith.constant 0 : index
    %c0_502 = arith.constant 0 : index
    %c0_503 = arith.constant 0 : index
    %429 = vector.load %arg1[%c4_500, %c0_501, %c0_502, %c0_503] : memref<8x16x8x128xf32, #tpu.memory_space<vmem>>, vector<1x1x8x128xf32>
    %430 = vector.shape_cast %429 : vector<1x1x8x128xf32> to vector<8x128xf32>
    %c4_504 = arith.constant 4 : index
    %c1_505 = arith.constant 1 : index
    %c0_506 = arith.constant 0 : index
    %c0_507 = arith.constant 0 : index
    %431 = vector.load %arg1[%c4_504, %c1_505, %c0_506, %c0_507] : memref<8x16x8x128xf32, #tpu.memory_space<vmem>>, vector<1x1x8x128xf32>
    %432 = vector.shape_cast %431 : vector<1x1x8x128xf32> to vector<8x128xf32>
    %433 = arith.maximumf %430, %432 : vector<8x128xf32>
    %c5_508 = arith.constant 5 : index
    %c0_509 = arith.constant 0 : index
    %c0_510 = arith.constant 0 : index
    %c0_511 = arith.constant 0 : index
    %434 = vector.load %arg1[%c5_508, %c0_509, %c0_510, %c0_511] : memref<8x16x8x128xf32, #tpu.memory_space<vmem>>, vector<1x1x8x128xf32>
    %435 = vector.shape_cast %434 : vector<1x1x8x128xf32> to vector<8x128xf32>
    %c5_512 = arith.constant 5 : index
    %c1_513 = arith.constant 1 : index
    %c0_514 = arith.constant 0 : index
    %c0_515 = arith.constant 0 : index
    %436 = vector.load %arg1[%c5_512, %c1_513, %c0_514, %c0_515] : memref<8x16x8x128xf32, #tpu.memory_space<vmem>>, vector<1x1x8x128xf32>
    %437 = vector.shape_cast %436 : vector<1x1x8x128xf32> to vector<8x128xf32>
    %438 = arith.maximumf %435, %437 : vector<8x128xf32>
    %c0_516 = arith.constant 0 : index
    %c0_517 = arith.constant 0 : index
    %c0_518 = arith.constant 0 : index
    %439 = vector.load %arg5[%c0_516, %c0_517, %c0_518] : memref<8x8x128xf32, #tpu.memory_space<vmem>>, vector<1x8x128xf32>
    %440 = vector.shape_cast %439 : vector<1x8x128xf32> to vector<8x128xf32>
    %441 = arith.maximumf %440, %433 : vector<8x128xf32>
    %442 = arith.maximumf %441, %438 : vector<8x128xf32>
    %443 = arith.index_cast %428 : i32 to index
    %c0_519 = arith.constant 0 : index
    %c0_520 = arith.constant 0 : index
    %c0_521 = arith.constant 0 : index
    %444 = vector.load %arg6[%443, %c0_519, %c0_520, %c0_521] : memref<8x8x8x128xf32, #tpu.memory_space<vmem>>, vector<1x1x8x128xf32>
    %445 = vector.shape_cast %444 : vector<1x1x8x128xf32> to vector<8x128xf32>
    %446 = vector.shape_cast %442 : vector<8x128xf32> to vector<1x1x8x128xf32>
    tpu.vector_store %arg6[%443, %c0_519, %c0_520, %c0_521], %446 {strides = array<i32>} : memref<8x8x8x128xf32, #tpu.memory_space<vmem>>, vector<1x1x8x128xf32>,
    %c0_522 = arith.constant 0 : index
    %c0_523 = arith.constant 0 : index
    %c0_524 = arith.constant 0 : index
    %447 = vector.load %arg5[%c0_522, %c0_523, %c0_524] : memref<8x8x128xf32, #tpu.memory_space<vmem>>, vector<1x8x128xf32>
    %448 = vector.shape_cast %447 : vector<1x8x128xf32> to vector<8x128xf32>
    %449 = vector.shape_cast %438 : vector<8x128xf32> to vector<1x8x128xf32>
    tpu.vector_store %arg5[%c0_522, %c0_523, %c0_524], %449 {strides = array<i32>} : memref<8x8x128xf32, #tpu.memory_space<vmem>>, vector<1x8x128xf32>,
    %c4_525 = arith.constant 4 : index
    %c1_526 = arith.constant 1 : index
    %c0_527 = arith.constant 0 : index
    %c0_528 = arith.constant 0 : index
    %450 = vector.load %arg1[%c4_525, %c1_526, %c0_527, %c0_528] : memref<8x16x8x128xf32, #tpu.memory_space<vmem>>, vector<1x1x8x128xf32>
    %451 = vector.shape_cast %450 : vector<1x1x8x128xf32> to vector<8x128xf32>
    %c4_529 = arith.constant 4 : index
    %c2_530 = arith.constant 2 : index
    %c0_531 = arith.constant 0 : index
    %c0_532 = arith.constant 0 : index
    %452 = vector.load %arg1[%c4_529, %c2_530, %c0_531, %c0_532] : memref<8x16x8x128xf32, #tpu.memory_space<vmem>>, vector<1x1x8x128xf32>
    %453 = vector.shape_cast %452 : vector<1x1x8x128xf32> to vector<8x128xf32>
    %454 = arith.maximumf %451, %453 : vector<8x128xf32>
    %c4_533 = arith.constant 4 : index
    %c3_534 = arith.constant 3 : index
    %c0_535 = arith.constant 0 : index
    %c0_536 = arith.constant 0 : index
    %455 = vector.load %arg1[%c4_533, %c3_534, %c0_535, %c0_536] : memref<8x16x8x128xf32, #tpu.memory_space<vmem>>, vector<1x1x8x128xf32>
    %456 = vector.shape_cast %455 : vector<1x1x8x128xf32> to vector<8x128xf32>
    %457 = arith.maximumf %454, %456 : vector<8x128xf32>
    %c5_537 = arith.constant 5 : index
    %c1_538 = arith.constant 1 : index
    %c0_539 = arith.constant 0 : index
    %c0_540 = arith.constant 0 : index
    %458 = vector.load %arg1[%c5_537, %c1_538, %c0_539, %c0_540] : memref<8x16x8x128xf32, #tpu.memory_space<vmem>>, vector<1x1x8x128xf32>
    %459 = vector.shape_cast %458 : vector<1x1x8x128xf32> to vector<8x128xf32>
    %c5_541 = arith.constant 5 : index
    %c2_542 = arith.constant 2 : index
    %c0_543 = arith.constant 0 : index
    %c0_544 = arith.constant 0 : index
    %460 = vector.load %arg1[%c5_541, %c2_542, %c0_543, %c0_544] : memref<8x16x8x128xf32, #tpu.memory_space<vmem>>, vector<1x1x8x128xf32>
    %461 = vector.shape_cast %460 : vector<1x1x8x128xf32> to vector<8x128xf32>
    %462 = arith.maximumf %459, %461 : vector<8x128xf32>
    %c5_545 = arith.constant 5 : index
    %c3_546 = arith.constant 3 : index
    %c0_547 = arith.constant 0 : index
    %c0_548 = arith.constant 0 : index
    %463 = vector.load %arg1[%c5_545, %c3_546, %c0_547, %c0_548] : memref<8x16x8x128xf32, #tpu.memory_space<vmem>>, vector<1x1x8x128xf32>
    %464 = vector.shape_cast %463 : vector<1x1x8x128xf32> to vector<8x128xf32>
    %465 = arith.maximumf %462, %464 : vector<8x128xf32>
    %c1_549 = arith.constant 1 : index
    %c0_550 = arith.constant 0 : index
    %c0_551 = arith.constant 0 : index
    %466 = vector.load %arg5[%c1_549, %c0_550, %c0_551] : memref<8x8x128xf32, #tpu.memory_space<vmem>>, vector<1x8x128xf32>
    %467 = vector.shape_cast %466 : vector<1x8x128xf32> to vector<8x128xf32>
    %468 = arith.maximumf %467, %457 : vector<8x128xf32>
    %469 = arith.maximumf %468, %465 : vector<8x128xf32>
    %470 = arith.index_cast %428 : i32 to index
    %c1_552 = arith.constant 1 : index
    %c0_553 = arith.constant 0 : index
    %c0_554 = arith.constant 0 : index
    %471 = vector.load %arg6[%470, %c1_552, %c0_553, %c0_554] : memref<8x8x8x128xf32, #tpu.memory_space<vmem>>, vector<1x1x8x128xf32>
    %472 = vector.shape_cast %471 : vector<1x1x8x128xf32> to vector<8x128xf32>
    %473 = vector.shape_cast %469 : vector<8x128xf32> to vector<1x1x8x128xf32>
    tpu.vector_store %arg6[%470, %c1_552, %c0_553, %c0_554], %473 {strides = array<i32>} : memref<8x8x8x128xf32, #tpu.memory_space<vmem>>, vector<1x1x8x128xf32>,
    %c1_555 = arith.constant 1 : index
    %c0_556 = arith.constant 0 : index
    %c0_557 = arith.constant 0 : index
    %474 = vector.load %arg5[%c1_555, %c0_556, %c0_557] : memref<8x8x128xf32, #tpu.memory_space<vmem>>, vector<1x8x128xf32>
    %475 = vector.shape_cast %474 : vector<1x8x128xf32> to vector<8x128xf32>
    %476 = vector.shape_cast %465 : vector<8x128xf32> to vector<1x8x128xf32>
    tpu.vector_store %arg5[%c1_555, %c0_556, %c0_557], %476 {strides = array<i32>} : memref<8x8x128xf32, #tpu.memory_space<vmem>>, vector<1x8x128xf32>,
    %c4_558 = arith.constant 4 : index
    %c3_559 = arith.constant 3 : index
    %c0_560 = arith.constant 0 : index
    %c0_561 = arith.constant 0 : index
    %477 = vector.load %arg1[%c4_558, %c3_559, %c0_560, %c0_561] : memref<8x16x8x128xf32, #tpu.memory_space<vmem>>, vector<1x1x8x128xf32>
    %478 = vector.shape_cast %477 : vector<1x1x8x128xf32> to vector<8x128xf32>
    %c4_562 = arith.constant 4 : index
    %c4_563 = arith.constant 4 : index
    %c0_564 = arith.constant 0 : index
    %c0_565 = arith.constant 0 : index
    %479 = vector.load %arg1[%c4_562, %c4_563, %c0_564, %c0_565] : memref<8x16x8x128xf32, #tpu.memory_space<vmem>>, vector<1x1x8x128xf32>
    %480 = vector.shape_cast %479 : vector<1x1x8x128xf32> to vector<8x128xf32>
    %481 = arith.maximumf %478, %480 : vector<8x128xf32>
    %c4_566 = arith.constant 4 : index
    %c5_567 = arith.constant 5 : index
    %c0_568 = arith.constant 0 : index
    %c0_569 = arith.constant 0 : index
    %482 = vector.load %arg1[%c4_566, %c5_567, %c0_568, %c0_569] : memref<8x16x8x128xf32, #tpu.memory_space<vmem>>, vector<1x1x8x128xf32>
    %483 = vector.shape_cast %482 : vector<1x1x8x128xf32> to vector<8x128xf32>
    %484 = arith.maximumf %481, %483 : vector<8x128xf32>
    %c5_570 = arith.constant 5 : index
    %c3_571 = arith.constant 3 : index
    %c0_572 = arith.constant 0 : index
    %c0_573 = arith.constant 0 : index
    %485 = vector.load %arg1[%c5_570, %c3_571, %c0_572, %c0_573] : memref<8x16x8x128xf32, #tpu.memory_space<vmem>>, vector<1x1x8x128xf32>
    %486 = vector.shape_cast %485 : vector<1x1x8x128xf32> to vector<8x128xf32>
    %c5_574 = arith.constant 5 : index
    %c4_575 = arith.constant 4 : index
    %c0_576 = arith.constant 0 : index
    %c0_577 = arith.constant 0 : index
    %487 = vector.load %arg1[%c5_574, %c4_575, %c0_576, %c0_577] : memref<8x16x8x128xf32, #tpu.memory_space<vmem>>, vector<1x1x8x128xf32>
    %488 = vector.shape_cast %487 : vector<1x1x8x128xf32> to vector<8x128xf32>
    %489 = arith.maximumf %486, %488 : vector<8x128xf32>
    %c5_578 = arith.constant 5 : index
    %c5_579 = arith.constant 5 : index
    %c0_580 = arith.constant 0 : index
    %c0_581 = arith.constant 0 : index
    %490 = vector.load %arg1[%c5_578, %c5_579, %c0_580, %c0_581] : memref<8x16x8x128xf32, #tpu.memory_space<vmem>>, vector<1x1x8x128xf32>
    %491 = vector.shape_cast %490 : vector<1x1x8x128xf32> to vector<8x128xf32>
    %492 = arith.maximumf %489, %491 : vector<8x128xf32>
    %c2_582 = arith.constant 2 : index
    %c0_583 = arith.constant 0 : index
    %c0_584 = arith.constant 0 : index
    %493 = vector.load %arg5[%c2_582, %c0_583, %c0_584] : memref<8x8x128xf32, #tpu.memory_space<vmem>>, vector<1x8x128xf32>
    %494 = vector.shape_cast %493 : vector<1x8x128xf32> to vector<8x128xf32>
    %495 = arith.maximumf %494, %484 : vector<8x128xf32>
    %496 = arith.maximumf %495, %492 : vector<8x128xf32>
    %497 = arith.index_cast %428 : i32 to index
    %c2_585 = arith.constant 2 : index
    %c0_586 = arith.constant 0 : index
    %c0_587 = arith.constant 0 : index
    %498 = vector.load %arg6[%497, %c2_585, %c0_586, %c0_587] : memref<8x8x8x128xf32, #tpu.memory_space<vmem>>, vector<1x1x8x128xf32>
    %499 = vector.shape_cast %498 : vector<1x1x8x128xf32> to vector<8x128xf32>
    %500 = vector.shape_cast %496 : vector<8x128xf32> to vector<1x1x8x128xf32>
    tpu.vector_store %arg6[%497, %c2_585, %c0_586, %c0_587], %500 {strides = array<i32>} : memref<8x8x8x128xf32, #tpu.memory_space<vmem>>, vector<1x1x8x128xf32>,
    %c2_588 = arith.constant 2 : index
    %c0_589 = arith.constant 0 : index
    %c0_590 = arith.constant 0 : index
    %501 = vector.load %arg5[%c2_588, %c0_589, %c0_590] : memref<8x8x128xf32, #tpu.memory_space<vmem>>, vector<1x8x128xf32>
    %502 = vector.shape_cast %501 : vector<1x8x128xf32> to vector<8x128xf32>
    %503 = vector.shape_cast %492 : vector<8x128xf32> to vector<1x8x128xf32>
    tpu.vector_store %arg5[%c2_588, %c0_589, %c0_590], %503 {strides = array<i32>} : memref<8x8x128xf32, #tpu.memory_space<vmem>>, vector<1x8x128xf32>,
    %c4_591 = arith.constant 4 : index
    %c5_592 = arith.constant 5 : index
    %c0_593 = arith.constant 0 : index
    %c0_594 = arith.constant 0 : index
    %504 = vector.load %arg1[%c4_591, %c5_592, %c0_593, %c0_594] : memref<8x16x8x128xf32, #tpu.memory_space<vmem>>, vector<1x1x8x128xf32>
    %505 = vector.shape_cast %504 : vector<1x1x8x128xf32> to vector<8x128xf32>
    %c4_595 = arith.constant 4 : index
    %c6_596 = arith.constant 6 : index
    %c0_597 = arith.constant 0 : index
    %c0_598 = arith.constant 0 : index
    %506 = vector.load %arg1[%c4_595, %c6_596, %c0_597, %c0_598] : memref<8x16x8x128xf32, #tpu.memory_space<vmem>>, vector<1x1x8x128xf32>
    %507 = vector.shape_cast %506 : vector<1x1x8x128xf32> to vector<8x128xf32>
    %508 = arith.maximumf %505, %507 : vector<8x128xf32>
    %c4_599 = arith.constant 4 : index
    %c7_600 = arith.constant 7 : index
    %c0_601 = arith.constant 0 : index
    %c0_602 = arith.constant 0 : index
    %509 = vector.load %arg1[%c4_599, %c7_600, %c0_601, %c0_602] : memref<8x16x8x128xf32, #tpu.memory_space<vmem>>, vector<1x1x8x128xf32>
    %510 = vector.shape_cast %509 : vector<1x1x8x128xf32> to vector<8x128xf32>
    %511 = arith.maximumf %508, %510 : vector<8x128xf32>
    %c5_603 = arith.constant 5 : index
    %c5_604 = arith.constant 5 : index
    %c0_605 = arith.constant 0 : index
    %c0_606 = arith.constant 0 : index
    %512 = vector.load %arg1[%c5_603, %c5_604, %c0_605, %c0_606] : memref<8x16x8x128xf32, #tpu.memory_space<vmem>>, vector<1x1x8x128xf32>
    %513 = vector.shape_cast %512 : vector<1x1x8x128xf32> to vector<8x128xf32>
    %c5_607 = arith.constant 5 : index
    %c6_608 = arith.constant 6 : index
    %c0_609 = arith.constant 0 : index
    %c0_610 = arith.constant 0 : index
    %514 = vector.load %arg1[%c5_607, %c6_608, %c0_609, %c0_610] : memref<8x16x8x128xf32, #tpu.memory_space<vmem>>, vector<1x1x8x128xf32>
    %515 = vector.shape_cast %514 : vector<1x1x8x128xf32> to vector<8x128xf32>
    %516 = arith.maximumf %513, %515 : vector<8x128xf32>
    %c5_611 = arith.constant 5 : index
    %c7_612 = arith.constant 7 : index
    %c0_613 = arith.constant 0 : index
    %c0_614 = arith.constant 0 : index
    %517 = vector.load %arg1[%c5_611, %c7_612, %c0_613, %c0_614] : memref<8x16x8x128xf32, #tpu.memory_space<vmem>>, vector<1x1x8x128xf32>
    %518 = vector.shape_cast %517 : vector<1x1x8x128xf32> to vector<8x128xf32>
    %519 = arith.maximumf %516, %518 : vector<8x128xf32>
    %c3_615 = arith.constant 3 : index
    %c0_616 = arith.constant 0 : index
    %c0_617 = arith.constant 0 : index
    %520 = vector.load %arg5[%c3_615, %c0_616, %c0_617] : memref<8x8x128xf32, #tpu.memory_space<vmem>>, vector<1x8x128xf32>
    %521 = vector.shape_cast %520 : vector<1x8x128xf32> to vector<8x128xf32>
    %522 = arith.maximumf %521, %511 : vector<8x128xf32>
    %523 = arith.maximumf %522, %519 : vector<8x128xf32>
    %524 = arith.index_cast %428 : i32 to index
    %c3_618 = arith.constant 3 : index
    %c0_619 = arith.constant 0 : index
    %c0_620 = arith.constant 0 : index
    %525 = vector.load %arg6[%524, %c3_618, %c0_619, %c0_620] : memref<8x8x8x128xf32, #tpu.memory_space<vmem>>, vector<1x1x8x128xf32>
    %526 = vector.shape_cast %525 : vector<1x1x8x128xf32> to vector<8x128xf32>
    %527 = vector.shape_cast %523 : vector<8x128xf32> to vector<1x1x8x128xf32>
    tpu.vector_store %arg6[%524, %c3_618, %c0_619, %c0_620], %527 {strides = array<i32>} : memref<8x8x8x128xf32, #tpu.memory_space<vmem>>, vector<1x1x8x128xf32>,
    %c3_621 = arith.constant 3 : index
    %c0_622 = arith.constant 0 : index
    %c0_623 = arith.constant 0 : index
    %528 = vector.load %arg5[%c3_621, %c0_622, %c0_623] : memref<8x8x128xf32, #tpu.memory_space<vmem>>, vector<1x8x128xf32>
    %529 = vector.shape_cast %528 : vector<1x8x128xf32> to vector<8x128xf32>
    %530 = vector.shape_cast %519 : vector<8x128xf32> to vector<1x8x128xf32>
    tpu.vector_store %arg5[%c3_621, %c0_622, %c0_623], %530 {strides = array<i32>} : memref<8x8x128xf32, #tpu.memory_space<vmem>>, vector<1x8x128xf32>,
    %c4_624 = arith.constant 4 : index
    %c7_625 = arith.constant 7 : index
    %c0_626 = arith.constant 0 : index
    %c0_627 = arith.constant 0 : index
    %531 = vector.load %arg1[%c4_624, %c7_625, %c0_626, %c0_627] : memref<8x16x8x128xf32, #tpu.memory_space<vmem>>, vector<1x1x8x128xf32>
    %532 = vector.shape_cast %531 : vector<1x1x8x128xf32> to vector<8x128xf32>
    %c4_628 = arith.constant 4 : index
    %c8_629 = arith.constant 8 : index
    %c0_630 = arith.constant 0 : index
    %c0_631 = arith.constant 0 : index
    %533 = vector.load %arg1[%c4_628, %c8_629, %c0_630, %c0_631] : memref<8x16x8x128xf32, #tpu.memory_space<vmem>>, vector<1x1x8x128xf32>
    %534 = vector.shape_cast %533 : vector<1x1x8x128xf32> to vector<8x128xf32>
    %535 = arith.maximumf %532, %534 : vector<8x128xf32>
    %c4_632 = arith.constant 4 : index
    %c9_633 = arith.constant 9 : index
    %c0_634 = arith.constant 0 : index
    %c0_635 = arith.constant 0 : index
    %536 = vector.load %arg1[%c4_632, %c9_633, %c0_634, %c0_635] : memref<8x16x8x128xf32, #tpu.memory_space<vmem>>, vector<1x1x8x128xf32>
    %537 = vector.shape_cast %536 : vector<1x1x8x128xf32> to vector<8x128xf32>
    %538 = arith.maximumf %535, %537 : vector<8x128xf32>
    %c5_636 = arith.constant 5 : index
    %c7_637 = arith.constant 7 : index
    %c0_638 = arith.constant 0 : index
    %c0_639 = arith.constant 0 : index
    %539 = vector.load %arg1[%c5_636, %c7_637, %c0_638, %c0_639] : memref<8x16x8x128xf32, #tpu.memory_space<vmem>>, vector<1x1x8x128xf32>
    %540 = vector.shape_cast %539 : vector<1x1x8x128xf32> to vector<8x128xf32>
    %c5_640 = arith.constant 5 : index
    %c8_641 = arith.constant 8 : index
    %c0_642 = arith.constant 0 : index
    %c0_643 = arith.constant 0 : index
    %541 = vector.load %arg1[%c5_640, %c8_641, %c0_642, %c0_643] : memref<8x16x8x128xf32, #tpu.memory_space<vmem>>, vector<1x1x8x128xf32>
    %542 = vector.shape_cast %541 : vector<1x1x8x128xf32> to vector<8x128xf32>
    %543 = arith.maximumf %540, %542 : vector<8x128xf32>
    %c5_644 = arith.constant 5 : index
    %c9_645 = arith.constant 9 : index
    %c0_646 = arith.constant 0 : index
    %c0_647 = arith.constant 0 : index
    %544 = vector.load %arg1[%c5_644, %c9_645, %c0_646, %c0_647] : memref<8x16x8x128xf32, #tpu.memory_space<vmem>>, vector<1x1x8x128xf32>
    %545 = vector.shape_cast %544 : vector<1x1x8x128xf32> to vector<8x128xf32>
    %546 = arith.maximumf %543, %545 : vector<8x128xf32>
    %c4_648 = arith.constant 4 : index
    %c0_649 = arith.constant 0 : index
    %c0_650 = arith.constant 0 : index
    %547 = vector.load %arg5[%c4_648, %c0_649, %c0_650] : memref<8x8x128xf32, #tpu.memory_space<vmem>>, vector<1x8x128xf32>
    %548 = vector.shape_cast %547 : vector<1x8x128xf32> to vector<8x128xf32>
    %549 = arith.maximumf %548, %538 : vector<8x128xf32>
    %550 = arith.maximumf %549, %546 : vector<8x128xf32>
    %551 = arith.index_cast %428 : i32 to index
    %c4_651 = arith.constant 4 : index
    %c0_652 = arith.constant 0 : index
    %c0_653 = arith.constant 0 : index
    %552 = vector.load %arg6[%551, %c4_651, %c0_652, %c0_653] : memref<8x8x8x128xf32, #tpu.memory_space<vmem>>, vector<1x1x8x128xf32>
    %553 = vector.shape_cast %552 : vector<1x1x8x128xf32> to vector<8x128xf32>
    %554 = vector.shape_cast %550 : vector<8x128xf32> to vector<1x1x8x128xf32>
    tpu.vector_store %arg6[%551, %c4_651, %c0_652, %c0_653], %554 {strides = array<i32>} : memref<8x8x8x128xf32, #tpu.memory_space<vmem>>, vector<1x1x8x128xf32>,
    %c4_654 = arith.constant 4 : index
    %c0_655 = arith.constant 0 : index
    %c0_656 = arith.constant 0 : index
    %555 = vector.load %arg5[%c4_654, %c0_655, %c0_656] : memref<8x8x128xf32, #tpu.memory_space<vmem>>, vector<1x8x128xf32>
    %556 = vector.shape_cast %555 : vector<1x8x128xf32> to vector<8x128xf32>
    %557 = vector.shape_cast %546 : vector<8x128xf32> to vector<1x8x128xf32>
    tpu.vector_store %arg5[%c4_654, %c0_655, %c0_656], %557 {strides = array<i32>} : memref<8x8x128xf32, #tpu.memory_space<vmem>>, vector<1x8x128xf32>,
    %c4_657 = arith.constant 4 : index
    %c9_658 = arith.constant 9 : index
    %c0_659 = arith.constant 0 : index
    %c0_660 = arith.constant 0 : index
    %558 = vector.load %arg1[%c4_657, %c9_658, %c0_659, %c0_660] : memref<8x16x8x128xf32, #tpu.memory_space<vmem>>, vector<1x1x8x128xf32>
    %559 = vector.shape_cast %558 : vector<1x1x8x128xf32> to vector<8x128xf32>
    %c4_661 = arith.constant 4 : index
    %c10_662 = arith.constant 10 : index
    %c0_663 = arith.constant 0 : index
    %c0_664 = arith.constant 0 : index
    %560 = vector.load %arg1[%c4_661, %c10_662, %c0_663, %c0_664] : memref<8x16x8x128xf32, #tpu.memory_space<vmem>>, vector<1x1x8x128xf32>
    %561 = vector.shape_cast %560 : vector<1x1x8x128xf32> to vector<8x128xf32>
    %562 = arith.maximumf %559, %561 : vector<8x128xf32>
    %c4_665 = arith.constant 4 : index
    %c11_666 = arith.constant 11 : index
    %c0_667 = arith.constant 0 : index
    %c0_668 = arith.constant 0 : index
    %563 = vector.load %arg1[%c4_665, %c11_666, %c0_667, %c0_668] : memref<8x16x8x128xf32, #tpu.memory_space<vmem>>, vector<1x1x8x128xf32>
    %564 = vector.shape_cast %563 : vector<1x1x8x128xf32> to vector<8x128xf32>
    %565 = arith.maximumf %562, %564 : vector<8x128xf32>
    %c5_669 = arith.constant 5 : index
    %c9_670 = arith.constant 9 : index
    %c0_671 = arith.constant 0 : index
    %c0_672 = arith.constant 0 : index
    %566 = vector.load %arg1[%c5_669, %c9_670, %c0_671, %c0_672] : memref<8x16x8x128xf32, #tpu.memory_space<vmem>>, vector<1x1x8x128xf32>
    %567 = vector.shape_cast %566 : vector<1x1x8x128xf32> to vector<8x128xf32>
    %c5_673 = arith.constant 5 : index
    %c10_674 = arith.constant 10 : index
    %c0_675 = arith.constant 0 : index
    %c0_676 = arith.constant 0 : index
    %568 = vector.load %arg1[%c5_673, %c10_674, %c0_675, %c0_676] : memref<8x16x8x128xf32, #tpu.memory_space<vmem>>, vector<1x1x8x128xf32>
    %569 = vector.shape_cast %568 : vector<1x1x8x128xf32> to vector<8x128xf32>
    %570 = arith.maximumf %567, %569 : vector<8x128xf32>
    %c5_677 = arith.constant 5 : index
    %c11_678 = arith.constant 11 : index
    %c0_679 = arith.constant 0 : index
    %c0_680 = arith.constant 0 : index
    %571 = vector.load %arg1[%c5_677, %c11_678, %c0_679, %c0_680] : memref<8x16x8x128xf32, #tpu.memory_space<vmem>>, vector<1x1x8x128xf32>
    %572 = vector.shape_cast %571 : vector<1x1x8x128xf32> to vector<8x128xf32>
    %573 = arith.maximumf %570, %572 : vector<8x128xf32>
    %c5_681 = arith.constant 5 : index
    %c0_682 = arith.constant 0 : index
    %c0_683 = arith.constant 0 : index
    %574 = vector.load %arg5[%c5_681, %c0_682, %c0_683] : memref<8x8x128xf32, #tpu.memory_space<vmem>>, vector<1x8x128xf32>
    %575 = vector.shape_cast %574 : vector<1x8x128xf32> to vector<8x128xf32>
    %576 = arith.maximumf %575, %565 : vector<8x128xf32>
    %577 = arith.maximumf %576, %573 : vector<8x128xf32>
    %578 = arith.index_cast %428 : i32 to index
    %c5_684 = arith.constant 5 : index
    %c0_685 = arith.constant 0 : index
    %c0_686 = arith.constant 0 : index
    %579 = vector.load %arg6[%578, %c5_684, %c0_685, %c0_686] : memref<8x8x8x128xf32, #tpu.memory_space<vmem>>, vector<1x1x8x128xf32>
    %580 = vector.shape_cast %579 : vector<1x1x8x128xf32> to vector<8x128xf32>
    %581 = vector.shape_cast %577 : vector<8x128xf32> to vector<1x1x8x128xf32>
    tpu.vector_store %arg6[%578, %c5_684, %c0_685, %c0_686], %581 {strides = array<i32>} : memref<8x8x8x128xf32, #tpu.memory_space<vmem>>, vector<1x1x8x128xf32>,
    %c5_687 = arith.constant 5 : index
    %c0_688 = arith.constant 0 : index
    %c0_689 = arith.constant 0 : index
    %582 = vector.load %arg5[%c5_687, %c0_688, %c0_689] : memref<8x8x128xf32, #tpu.memory_space<vmem>>, vector<1x8x128xf32>
    %583 = vector.shape_cast %582 : vector<1x8x128xf32> to vector<8x128xf32>
    %584 = vector.shape_cast %573 : vector<8x128xf32> to vector<1x8x128xf32>
    tpu.vector_store %arg5[%c5_687, %c0_688, %c0_689], %584 {strides = array<i32>} : memref<8x8x128xf32, #tpu.memory_space<vmem>>, vector<1x8x128xf32>,
    %c4_690 = arith.constant 4 : index
    %c11_691 = arith.constant 11 : index
    %c0_692 = arith.constant 0 : index
    %c0_693 = arith.constant 0 : index
    %585 = vector.load %arg1[%c4_690, %c11_691, %c0_692, %c0_693] : memref<8x16x8x128xf32, #tpu.memory_space<vmem>>, vector<1x1x8x128xf32>
    %586 = vector.shape_cast %585 : vector<1x1x8x128xf32> to vector<8x128xf32>
    %c4_694 = arith.constant 4 : index
    %c12_695 = arith.constant 12 : index
    %c0_696 = arith.constant 0 : index
    %c0_697 = arith.constant 0 : index
    %587 = vector.load %arg1[%c4_694, %c12_695, %c0_696, %c0_697] : memref<8x16x8x128xf32, #tpu.memory_space<vmem>>, vector<1x1x8x128xf32>
    %588 = vector.shape_cast %587 : vector<1x1x8x128xf32> to vector<8x128xf32>
    %589 = arith.maximumf %586, %588 : vector<8x128xf32>
    %c4_698 = arith.constant 4 : index
    %c13_699 = arith.constant 13 : index
    %c0_700 = arith.constant 0 : index
    %c0_701 = arith.constant 0 : index
    %590 = vector.load %arg1[%c4_698, %c13_699, %c0_700, %c0_701] : memref<8x16x8x128xf32, #tpu.memory_space<vmem>>, vector<1x1x8x128xf32>
    %591 = vector.shape_cast %590 : vector<1x1x8x128xf32> to vector<8x128xf32>
    %592 = arith.maximumf %589, %591 : vector<8x128xf32>
    %c5_702 = arith.constant 5 : index
    %c11_703 = arith.constant 11 : index
    %c0_704 = arith.constant 0 : index
    %c0_705 = arith.constant 0 : index
    %593 = vector.load %arg1[%c5_702, %c11_703, %c0_704, %c0_705] : memref<8x16x8x128xf32, #tpu.memory_space<vmem>>, vector<1x1x8x128xf32>
    %594 = vector.shape_cast %593 : vector<1x1x8x128xf32> to vector<8x128xf32>
    %c5_706 = arith.constant 5 : index
    %c12_707 = arith.constant 12 : index
    %c0_708 = arith.constant 0 : index
    %c0_709 = arith.constant 0 : index
    %595 = vector.load %arg1[%c5_706, %c12_707, %c0_708, %c0_709] : memref<8x16x8x128xf32, #tpu.memory_space<vmem>>, vector<1x1x8x128xf32>
    %596 = vector.shape_cast %595 : vector<1x1x8x128xf32> to vector<8x128xf32>
    %597 = arith.maximumf %594, %596 : vector<8x128xf32>
    %c5_710 = arith.constant 5 : index
    %c13_711 = arith.constant 13 : index
    %c0_712 = arith.constant 0 : index
    %c0_713 = arith.constant 0 : index
    %598 = vector.load %arg1[%c5_710, %c13_711, %c0_712, %c0_713] : memref<8x16x8x128xf32, #tpu.memory_space<vmem>>, vector<1x1x8x128xf32>
    %599 = vector.shape_cast %598 : vector<1x1x8x128xf32> to vector<8x128xf32>
    %600 = arith.maximumf %597, %599 : vector<8x128xf32>
    %c6_714 = arith.constant 6 : index
    %c0_715 = arith.constant 0 : index
    %c0_716 = arith.constant 0 : index
    %601 = vector.load %arg5[%c6_714, %c0_715, %c0_716] : memref<8x8x128xf32, #tpu.memory_space<vmem>>, vector<1x8x128xf32>
    %602 = vector.shape_cast %601 : vector<1x8x128xf32> to vector<8x128xf32>
    %603 = arith.maximumf %602, %592 : vector<8x128xf32>
    %604 = arith.maximumf %603, %600 : vector<8x128xf32>
    %605 = arith.index_cast %428 : i32 to index
    %c6_717 = arith.constant 6 : index
    %c0_718 = arith.constant 0 : index
    %c0_719 = arith.constant 0 : index
    %606 = vector.load %arg6[%605, %c6_717, %c0_718, %c0_719] : memref<8x8x8x128xf32, #tpu.memory_space<vmem>>, vector<1x1x8x128xf32>
    %607 = vector.shape_cast %606 : vector<1x1x8x128xf32> to vector<8x128xf32>
    %608 = vector.shape_cast %604 : vector<8x128xf32> to vector<1x1x8x128xf32>
    tpu.vector_store %arg6[%605, %c6_717, %c0_718, %c0_719], %608 {strides = array<i32>} : memref<8x8x8x128xf32, #tpu.memory_space<vmem>>, vector<1x1x8x128xf32>,
    %c6_720 = arith.constant 6 : index
    %c0_721 = arith.constant 0 : index
    %c0_722 = arith.constant 0 : index
    %609 = vector.load %arg5[%c6_720, %c0_721, %c0_722] : memref<8x8x128xf32, #tpu.memory_space<vmem>>, vector<1x8x128xf32>
    %610 = vector.shape_cast %609 : vector<1x8x128xf32> to vector<8x128xf32>
    %611 = vector.shape_cast %600 : vector<8x128xf32> to vector<1x8x128xf32>
    tpu.vector_store %arg5[%c6_720, %c0_721, %c0_722], %611 {strides = array<i32>} : memref<8x8x128xf32, #tpu.memory_space<vmem>>, vector<1x8x128xf32>,
    %c4_723 = arith.constant 4 : index
    %c13_724 = arith.constant 13 : index
    %c0_725 = arith.constant 0 : index
    %c0_726 = arith.constant 0 : index
    %612 = vector.load %arg1[%c4_723, %c13_724, %c0_725, %c0_726] : memref<8x16x8x128xf32, #tpu.memory_space<vmem>>, vector<1x1x8x128xf32>
    %613 = vector.shape_cast %612 : vector<1x1x8x128xf32> to vector<8x128xf32>
    %c4_727 = arith.constant 4 : index
    %c14_728 = arith.constant 14 : index
    %c0_729 = arith.constant 0 : index
    %c0_730 = arith.constant 0 : index
    %614 = vector.load %arg1[%c4_727, %c14_728, %c0_729, %c0_730] : memref<8x16x8x128xf32, #tpu.memory_space<vmem>>, vector<1x1x8x128xf32>
    %615 = vector.shape_cast %614 : vector<1x1x8x128xf32> to vector<8x128xf32>
    %616 = arith.maximumf %613, %615 : vector<8x128xf32>
    %c4_731 = arith.constant 4 : index
    %c15_732 = arith.constant 15 : index
    %c0_733 = arith.constant 0 : index
    %c0_734 = arith.constant 0 : index
    %617 = vector.load %arg1[%c4_731, %c15_732, %c0_733, %c0_734] : memref<8x16x8x128xf32, #tpu.memory_space<vmem>>, vector<1x1x8x128xf32>
    %618 = vector.shape_cast %617 : vector<1x1x8x128xf32> to vector<8x128xf32>
    %619 = arith.maximumf %616, %618 : vector<8x128xf32>
    %c5_735 = arith.constant 5 : index
    %c13_736 = arith.constant 13 : index
    %c0_737 = arith.constant 0 : index
    %c0_738 = arith.constant 0 : index
    %620 = vector.load %arg1[%c5_735, %c13_736, %c0_737, %c0_738] : memref<8x16x8x128xf32, #tpu.memory_space<vmem>>, vector<1x1x8x128xf32>
    %621 = vector.shape_cast %620 : vector<1x1x8x128xf32> to vector<8x128xf32>
    %c5_739 = arith.constant 5 : index
    %c14_740 = arith.constant 14 : index
    %c0_741 = arith.constant 0 : index
    %c0_742 = arith.constant 0 : index
    %622 = vector.load %arg1[%c5_739, %c14_740, %c0_741, %c0_742] : memref<8x16x8x128xf32, #tpu.memory_space<vmem>>, vector<1x1x8x128xf32>
    %623 = vector.shape_cast %622 : vector<1x1x8x128xf32> to vector<8x128xf32>
    %624 = arith.maximumf %621, %623 : vector<8x128xf32>
    %c5_743 = arith.constant 5 : index
    %c15_744 = arith.constant 15 : index
    %c0_745 = arith.constant 0 : index
    %c0_746 = arith.constant 0 : index
    %625 = vector.load %arg1[%c5_743, %c15_744, %c0_745, %c0_746] : memref<8x16x8x128xf32, #tpu.memory_space<vmem>>, vector<1x1x8x128xf32>
    %626 = vector.shape_cast %625 : vector<1x1x8x128xf32> to vector<8x128xf32>
    %627 = arith.maximumf %624, %626 : vector<8x128xf32>
    %c7_747 = arith.constant 7 : index
    %c0_748 = arith.constant 0 : index
    %c0_749 = arith.constant 0 : index
    %628 = vector.load %arg5[%c7_747, %c0_748, %c0_749] : memref<8x8x128xf32, #tpu.memory_space<vmem>>, vector<1x8x128xf32>
    %629 = vector.shape_cast %628 : vector<1x8x128xf32> to vector<8x128xf32>
    %630 = arith.maximumf %629, %619 : vector<8x128xf32>
    %631 = arith.maximumf %630, %627 : vector<8x128xf32>
    %632 = arith.index_cast %428 : i32 to index
    %c7_750 = arith.constant 7 : index
    %c0_751 = arith.constant 0 : index
    %c0_752 = arith.constant 0 : index
    %633 = vector.load %arg6[%632, %c7_750, %c0_751, %c0_752] : memref<8x8x8x128xf32, #tpu.memory_space<vmem>>, vector<1x1x8x128xf32>
    %634 = vector.shape_cast %633 : vector<1x1x8x128xf32> to vector<8x128xf32>
    %635 = vector.shape_cast %631 : vector<8x128xf32> to vector<1x1x8x128xf32>
    tpu.vector_store %arg6[%632, %c7_750, %c0_751, %c0_752], %635 {strides = array<i32>} : memref<8x8x8x128xf32, #tpu.memory_space<vmem>>, vector<1x1x8x128xf32>,
    %c7_753 = arith.constant 7 : index
    %c0_754 = arith.constant 0 : index
    %c0_755 = arith.constant 0 : index
    %636 = vector.load %arg5[%c7_753, %c0_754, %c0_755] : memref<8x8x128xf32, #tpu.memory_space<vmem>>, vector<1x8x128xf32>
    %637 = vector.shape_cast %636 : vector<1x8x128xf32> to vector<8x128xf32>
    %638 = vector.shape_cast %627 : vector<8x128xf32> to vector<1x8x128xf32>
    tpu.vector_store %arg5[%c7_753, %c0_754, %c0_755], %638 {strides = array<i32>} : memref<8x8x128xf32, #tpu.memory_space<vmem>>, vector<1x8x128xf32>,
    %c4_i32_756 = arith.constant 4 : i32
    %639 = arith.muli %arg0, %c4_i32_756 : i32
    %c3_i32 = arith.constant 3 : i32
    %640 = arith.addi %639, %c3_i32 : i32
    %c6_757 = arith.constant 6 : index
    %c0_758 = arith.constant 0 : index
    %c0_759 = arith.constant 0 : index
    %c0_760 = arith.constant 0 : index
    %641 = vector.load %arg1[%c6_757, %c0_758, %c0_759, %c0_760] : memref<8x16x8x128xf32, #tpu.memory_space<vmem>>, vector<1x1x8x128xf32>
    %642 = vector.shape_cast %641 : vector<1x1x8x128xf32> to vector<8x128xf32>
    %c6_761 = arith.constant 6 : index
    %c1_762 = arith.constant 1 : index
    %c0_763 = arith.constant 0 : index
    %c0_764 = arith.constant 0 : index
    %643 = vector.load %arg1[%c6_761, %c1_762, %c0_763, %c0_764] : memref<8x16x8x128xf32, #tpu.memory_space<vmem>>, vector<1x1x8x128xf32>
    %644 = vector.shape_cast %643 : vector<1x1x8x128xf32> to vector<8x128xf32>
    %645 = arith.maximumf %642, %644 : vector<8x128xf32>
    %c7_765 = arith.constant 7 : index
    %c0_766 = arith.constant 0 : index
    %c0_767 = arith.constant 0 : index
    %c0_768 = arith.constant 0 : index
    %646 = vector.load %arg1[%c7_765, %c0_766, %c0_767, %c0_768] : memref<8x16x8x128xf32, #tpu.memory_space<vmem>>, vector<1x1x8x128xf32>
    %647 = vector.shape_cast %646 : vector<1x1x8x128xf32> to vector<8x128xf32>
    %c7_769 = arith.constant 7 : index
    %c1_770 = arith.constant 1 : index
    %c0_771 = arith.constant 0 : index
    %c0_772 = arith.constant 0 : index
    %648 = vector.load %arg1[%c7_769, %c1_770, %c0_771, %c0_772] : memref<8x16x8x128xf32, #tpu.memory_space<vmem>>, vector<1x1x8x128xf32>
    %649 = vector.shape_cast %648 : vector<1x1x8x128xf32> to vector<8x128xf32>
    %650 = arith.maximumf %647, %649 : vector<8x128xf32>
    %c0_773 = arith.constant 0 : index
    %c0_774 = arith.constant 0 : index
    %c0_775 = arith.constant 0 : index
    %651 = vector.load %arg5[%c0_773, %c0_774, %c0_775] : memref<8x8x128xf32, #tpu.memory_space<vmem>>, vector<1x8x128xf32>
    %652 = vector.shape_cast %651 : vector<1x8x128xf32> to vector<8x128xf32>
    %653 = arith.maximumf %652, %645 : vector<8x128xf32>
    %654 = arith.maximumf %653, %650 : vector<8x128xf32>
    %655 = arith.index_cast %640 : i32 to index
    %c0_776 = arith.constant 0 : index
    %c0_777 = arith.constant 0 : index
    %c0_778 = arith.constant 0 : index
    %656 = vector.load %arg6[%655, %c0_776, %c0_777, %c0_778] : memref<8x8x8x128xf32, #tpu.memory_space<vmem>>, vector<1x1x8x128xf32>
    %657 = vector.shape_cast %656 : vector<1x1x8x128xf32> to vector<8x128xf32>
    %658 = vector.shape_cast %654 : vector<8x128xf32> to vector<1x1x8x128xf32>
    tpu.vector_store %arg6[%655, %c0_776, %c0_777, %c0_778], %658 {strides = array<i32>} : memref<8x8x8x128xf32, #tpu.memory_space<vmem>>, vector<1x1x8x128xf32>,
    %c0_779 = arith.constant 0 : index
    %c0_780 = arith.constant 0 : index
    %c0_781 = arith.constant 0 : index
    %659 = vector.load %arg5[%c0_779, %c0_780, %c0_781] : memref<8x8x128xf32, #tpu.memory_space<vmem>>, vector<1x8x128xf32>
    %660 = vector.shape_cast %659 : vector<1x8x128xf32> to vector<8x128xf32>
    %661 = vector.shape_cast %650 : vector<8x128xf32> to vector<1x8x128xf32>
    tpu.vector_store %arg5[%c0_779, %c0_780, %c0_781], %661 {strides = array<i32>} : memref<8x8x128xf32, #tpu.memory_space<vmem>>, vector<1x8x128xf32>,
    %c6_782 = arith.constant 6 : index
    %c1_783 = arith.constant 1 : index
    %c0_784 = arith.constant 0 : index
    %c0_785 = arith.constant 0 : index
    %662 = vector.load %arg1[%c6_782, %c1_783, %c0_784, %c0_785] : memref<8x16x8x128xf32, #tpu.memory_space<vmem>>, vector<1x1x8x128xf32>
    %663 = vector.shape_cast %662 : vector<1x1x8x128xf32> to vector<8x128xf32>
    %c6_786 = arith.constant 6 : index
    %c2_787 = arith.constant 2 : index
    %c0_788 = arith.constant 0 : index
    %c0_789 = arith.constant 0 : index
    %664 = vector.load %arg1[%c6_786, %c2_787, %c0_788, %c0_789] : memref<8x16x8x128xf32, #tpu.memory_space<vmem>>, vector<1x1x8x128xf32>
    %665 = vector.shape_cast %664 : vector<1x1x8x128xf32> to vector<8x128xf32>
    %666 = arith.maximumf %663, %665 : vector<8x128xf32>
    %c6_790 = arith.constant 6 : index
    %c3_791 = arith.constant 3 : index
    %c0_792 = arith.constant 0 : index
    %c0_793 = arith.constant 0 : index
    %667 = vector.load %arg1[%c6_790, %c3_791, %c0_792, %c0_793] : memref<8x16x8x128xf32, #tpu.memory_space<vmem>>, vector<1x1x8x128xf32>
    %668 = vector.shape_cast %667 : vector<1x1x8x128xf32> to vector<8x128xf32>
    %669 = arith.maximumf %666, %668 : vector<8x128xf32>
    %c7_794 = arith.constant 7 : index
    %c1_795 = arith.constant 1 : index
    %c0_796 = arith.constant 0 : index
    %c0_797 = arith.constant 0 : index
    %670 = vector.load %arg1[%c7_794, %c1_795, %c0_796, %c0_797] : memref<8x16x8x128xf32, #tpu.memory_space<vmem>>, vector<1x1x8x128xf32>
    %671 = vector.shape_cast %670 : vector<1x1x8x128xf32> to vector<8x128xf32>
    %c7_798 = arith.constant 7 : index
    %c2_799 = arith.constant 2 : index
    %c0_800 = arith.constant 0 : index
    %c0_801 = arith.constant 0 : index
    %672 = vector.load %arg1[%c7_798, %c2_799, %c0_800, %c0_801] : memref<8x16x8x128xf32, #tpu.memory_space<vmem>>, vector<1x1x8x128xf32>
    %673 = vector.shape_cast %672 : vector<1x1x8x128xf32> to vector<8x128xf32>
    %674 = arith.maximumf %671, %673 : vector<8x128xf32>
    %c7_802 = arith.constant 7 : index
    %c3_803 = arith.constant 3 : index
    %c0_804 = arith.constant 0 : index
    %c0_805 = arith.constant 0 : index
    %675 = vector.load %arg1[%c7_802, %c3_803, %c0_804, %c0_805] : memref<8x16x8x128xf32, #tpu.memory_space<vmem>>, vector<1x1x8x128xf32>
    %676 = vector.shape_cast %675 : vector<1x1x8x128xf32> to vector<8x128xf32>
    %677 = arith.maximumf %674, %676 : vector<8x128xf32>
    %c1_806 = arith.constant 1 : index
    %c0_807 = arith.constant 0 : index
    %c0_808 = arith.constant 0 : index
    %678 = vector.load %arg5[%c1_806, %c0_807, %c0_808] : memref<8x8x128xf32, #tpu.memory_space<vmem>>, vector<1x8x128xf32>
    %679 = vector.shape_cast %678 : vector<1x8x128xf32> to vector<8x128xf32>
    %680 = arith.maximumf %679, %669 : vector<8x128xf32>
    %681 = arith.maximumf %680, %677 : vector<8x128xf32>
    %682 = arith.index_cast %640 : i32 to index
    %c1_809 = arith.constant 1 : index
    %c0_810 = arith.constant 0 : index
    %c0_811 = arith.constant 0 : index
    %683 = vector.load %arg6[%682, %c1_809, %c0_810, %c0_811] : memref<8x8x8x128xf32, #tpu.memory_space<vmem>>, vector<1x1x8x128xf32>
    %684 = vector.shape_cast %683 : vector<1x1x8x128xf32> to vector<8x128xf32>
    %685 = vector.shape_cast %681 : vector<8x128xf32> to vector<1x1x8x128xf32>
    tpu.vector_store %arg6[%682, %c1_809, %c0_810, %c0_811], %685 {strides = array<i32>} : memref<8x8x8x128xf32, #tpu.memory_space<vmem>>, vector<1x1x8x128xf32>,
    %c1_812 = arith.constant 1 : index
    %c0_813 = arith.constant 0 : index
    %c0_814 = arith.constant 0 : index
    %686 = vector.load %arg5[%c1_812, %c0_813, %c0_814] : memref<8x8x128xf32, #tpu.memory_space<vmem>>, vector<1x8x128xf32>
    %687 = vector.shape_cast %686 : vector<1x8x128xf32> to vector<8x128xf32>
    %688 = vector.shape_cast %677 : vector<8x128xf32> to vector<1x8x128xf32>
    tpu.vector_store %arg5[%c1_812, %c0_813, %c0_814], %688 {strides = array<i32>} : memref<8x8x128xf32, #tpu.memory_space<vmem>>, vector<1x8x128xf32>,
    %c6_815 = arith.constant 6 : index
    %c3_816 = arith.constant 3 : index
    %c0_817 = arith.constant 0 : index
    %c0_818 = arith.constant 0 : index
    %689 = vector.load %arg1[%c6_815, %c3_816, %c0_817, %c0_818] : memref<8x16x8x128xf32, #tpu.memory_space<vmem>>, vector<1x1x8x128xf32>
    %690 = vector.shape_cast %689 : vector<1x1x8x128xf32> to vector<8x128xf32>
    %c6_819 = arith.constant 6 : index
    %c4_820 = arith.constant 4 : index
    %c0_821 = arith.constant 0 : index
    %c0_822 = arith.constant 0 : index
    %691 = vector.load %arg1[%c6_819, %c4_820, %c0_821, %c0_822] : memref<8x16x8x128xf32, #tpu.memory_space<vmem>>, vector<1x1x8x128xf32>
    %692 = vector.shape_cast %691 : vector<1x1x8x128xf32> to vector<8x128xf32>
    %693 = arith.maximumf %690, %692 : vector<8x128xf32>
    %c6_823 = arith.constant 6 : index
    %c5_824 = arith.constant 5 : index
    %c0_825 = arith.constant 0 : index
    %c0_826 = arith.constant 0 : index
    %694 = vector.load %arg1[%c6_823, %c5_824, %c0_825, %c0_826] : memref<8x16x8x128xf32, #tpu.memory_space<vmem>>, vector<1x1x8x128xf32>
    %695 = vector.shape_cast %694 : vector<1x1x8x128xf32> to vector<8x128xf32>
    %696 = arith.maximumf %693, %695 : vector<8x128xf32>
    %c7_827 = arith.constant 7 : index
    %c3_828 = arith.constant 3 : index
    %c0_829 = arith.constant 0 : index
    %c0_830 = arith.constant 0 : index
    %697 = vector.load %arg1[%c7_827, %c3_828, %c0_829, %c0_830] : memref<8x16x8x128xf32, #tpu.memory_space<vmem>>, vector<1x1x8x128xf32>
    %698 = vector.shape_cast %697 : vector<1x1x8x128xf32> to vector<8x128xf32>
    %c7_831 = arith.constant 7 : index
    %c4_832 = arith.constant 4 : index
    %c0_833 = arith.constant 0 : index
    %c0_834 = arith.constant 0 : index
    %699 = vector.load %arg1[%c7_831, %c4_832, %c0_833, %c0_834] : memref<8x16x8x128xf32, #tpu.memory_space<vmem>>, vector<1x1x8x128xf32>
    %700 = vector.shape_cast %699 : vector<1x1x8x128xf32> to vector<8x128xf32>
    %701 = arith.maximumf %698, %700 : vector<8x128xf32>
    %c7_835 = arith.constant 7 : index
    %c5_836 = arith.constant 5 : index
    %c0_837 = arith.constant 0 : index
    %c0_838 = arith.constant 0 : index
    %702 = vector.load %arg1[%c7_835, %c5_836, %c0_837, %c0_838] : memref<8x16x8x128xf32, #tpu.memory_space<vmem>>, vector<1x1x8x128xf32>
    %703 = vector.shape_cast %702 : vector<1x1x8x128xf32> to vector<8x128xf32>
    %704 = arith.maximumf %701, %703 : vector<8x128xf32>
    %c2_839 = arith.constant 2 : index
    %c0_840 = arith.constant 0 : index
    %c0_841 = arith.constant 0 : index
    %705 = vector.load %arg5[%c2_839, %c0_840, %c0_841] : memref<8x8x128xf32, #tpu.memory_space<vmem>>, vector<1x8x128xf32>
    %706 = vector.shape_cast %705 : vector<1x8x128xf32> to vector<8x128xf32>
    %707 = arith.maximumf %706, %696 : vector<8x128xf32>
    %708 = arith.maximumf %707, %704 : vector<8x128xf32>
    %709 = arith.index_cast %640 : i32 to index
    %c2_842 = arith.constant 2 : index
    %c0_843 = arith.constant 0 : index
    %c0_844 = arith.constant 0 : index
    %710 = vector.load %arg6[%709, %c2_842, %c0_843, %c0_844] : memref<8x8x8x128xf32, #tpu.memory_space<vmem>>, vector<1x1x8x128xf32>
    %711 = vector.shape_cast %710 : vector<1x1x8x128xf32> to vector<8x128xf32>
    %712 = vector.shape_cast %708 : vector<8x128xf32> to vector<1x1x8x128xf32>
    tpu.vector_store %arg6[%709, %c2_842, %c0_843, %c0_844], %712 {strides = array<i32>} : memref<8x8x8x128xf32, #tpu.memory_space<vmem>>, vector<1x1x8x128xf32>,
    %c2_845 = arith.constant 2 : index
    %c0_846 = arith.constant 0 : index
    %c0_847 = arith.constant 0 : index
    %713 = vector.load %arg5[%c2_845, %c0_846, %c0_847] : memref<8x8x128xf32, #tpu.memory_space<vmem>>, vector<1x8x128xf32>
    %714 = vector.shape_cast %713 : vector<1x8x128xf32> to vector<8x128xf32>
    %715 = vector.shape_cast %704 : vector<8x128xf32> to vector<1x8x128xf32>
    tpu.vector_store %arg5[%c2_845, %c0_846, %c0_847], %715 {strides = array<i32>} : memref<8x8x128xf32, #tpu.memory_space<vmem>>, vector<1x8x128xf32>,
    %c6_848 = arith.constant 6 : index
    %c5_849 = arith.constant 5 : index
    %c0_850 = arith.constant 0 : index
    %c0_851 = arith.constant 0 : index
    %716 = vector.load %arg1[%c6_848, %c5_849, %c0_850, %c0_851] : memref<8x16x8x128xf32, #tpu.memory_space<vmem>>, vector<1x1x8x128xf32>
    %717 = vector.shape_cast %716 : vector<1x1x8x128xf32> to vector<8x128xf32>
    %c6_852 = arith.constant 6 : index
    %c6_853 = arith.constant 6 : index
    %c0_854 = arith.constant 0 : index
    %c0_855 = arith.constant 0 : index
    %718 = vector.load %arg1[%c6_852, %c6_853, %c0_854, %c0_855] : memref<8x16x8x128xf32, #tpu.memory_space<vmem>>, vector<1x1x8x128xf32>
    %719 = vector.shape_cast %718 : vector<1x1x8x128xf32> to vector<8x128xf32>
    %720 = arith.maximumf %717, %719 : vector<8x128xf32>
    %c6_856 = arith.constant 6 : index
    %c7_857 = arith.constant 7 : index
    %c0_858 = arith.constant 0 : index
    %c0_859 = arith.constant 0 : index
    %721 = vector.load %arg1[%c6_856, %c7_857, %c0_858, %c0_859] : memref<8x16x8x128xf32, #tpu.memory_space<vmem>>, vector<1x1x8x128xf32>
    %722 = vector.shape_cast %721 : vector<1x1x8x128xf32> to vector<8x128xf32>
    %723 = arith.maximumf %720, %722 : vector<8x128xf32>
    %c7_860 = arith.constant 7 : index
    %c5_861 = arith.constant 5 : index
    %c0_862 = arith.constant 0 : index
    %c0_863 = arith.constant 0 : index
    %724 = vector.load %arg1[%c7_860, %c5_861, %c0_862, %c0_863] : memref<8x16x8x128xf32, #tpu.memory_space<vmem>>, vector<1x1x8x128xf32>
    %725 = vector.shape_cast %724 : vector<1x1x8x128xf32> to vector<8x128xf32>
    %c7_864 = arith.constant 7 : index
    %c6_865 = arith.constant 6 : index
    %c0_866 = arith.constant 0 : index
    %c0_867 = arith.constant 0 : index
    %726 = vector.load %arg1[%c7_864, %c6_865, %c0_866, %c0_867] : memref<8x16x8x128xf32, #tpu.memory_space<vmem>>, vector<1x1x8x128xf32>
    %727 = vector.shape_cast %726 : vector<1x1x8x128xf32> to vector<8x128xf32>
    %728 = arith.maximumf %725, %727 : vector<8x128xf32>
    %c7_868 = arith.constant 7 : index
    %c7_869 = arith.constant 7 : index
    %c0_870 = arith.constant 0 : index
    %c0_871 = arith.constant 0 : index
    %729 = vector.load %arg1[%c7_868, %c7_869, %c0_870, %c0_871] : memref<8x16x8x128xf32, #tpu.memory_space<vmem>>, vector<1x1x8x128xf32>
    %730 = vector.shape_cast %729 : vector<1x1x8x128xf32> to vector<8x128xf32>
    %731 = arith.maximumf %728, %730 : vector<8x128xf32>
    %c3_872 = arith.constant 3 : index
    %c0_873 = arith.constant 0 : index
    %c0_874 = arith.constant 0 : index
    %732 = vector.load %arg5[%c3_872, %c0_873, %c0_874] : memref<8x8x128xf32, #tpu.memory_space<vmem>>, vector<1x8x128xf32>
    %733 = vector.shape_cast %732 : vector<1x8x128xf32> to vector<8x128xf32>
    %734 = arith.maximumf %733, %723 : vector<8x128xf32>
    %735 = arith.maximumf %734, %731 : vector<8x128xf32>
    %736 = arith.index_cast %640 : i32 to index
    %c3_875 = arith.constant 3 : index
    %c0_876 = arith.constant 0 : index
    %c0_877 = arith.constant 0 : index
    %737 = vector.load %arg6[%736, %c3_875, %c0_876, %c0_877] : memref<8x8x8x128xf32, #tpu.memory_space<vmem>>, vector<1x1x8x128xf32>
    %738 = vector.shape_cast %737 : vector<1x1x8x128xf32> to vector<8x128xf32>
    %739 = vector.shape_cast %735 : vector<8x128xf32> to vector<1x1x8x128xf32>
    tpu.vector_store %arg6[%736, %c3_875, %c0_876, %c0_877], %739 {strides = array<i32>} : memref<8x8x8x128xf32, #tpu.memory_space<vmem>>, vector<1x1x8x128xf32>,
    %c3_878 = arith.constant 3 : index
    %c0_879 = arith.constant 0 : index
    %c0_880 = arith.constant 0 : index
    %740 = vector.load %arg5[%c3_878, %c0_879, %c0_880] : memref<8x8x128xf32, #tpu.memory_space<vmem>>, vector<1x8x128xf32>
    %741 = vector.shape_cast %740 : vector<1x8x128xf32> to vector<8x128xf32>
    %742 = vector.shape_cast %731 : vector<8x128xf32> to vector<1x8x128xf32>
    tpu.vector_store %arg5[%c3_878, %c0_879, %c0_880], %742 {strides = array<i32>} : memref<8x8x128xf32, #tpu.memory_space<vmem>>, vector<1x8x128xf32>,
    %c6_881 = arith.constant 6 : index
    %c7_882 = arith.constant 7 : index
    %c0_883 = arith.constant 0 : index
    %c0_884 = arith.constant 0 : index
    %743 = vector.load %arg1[%c6_881, %c7_882, %c0_883, %c0_884] : memref<8x16x8x128xf32, #tpu.memory_space<vmem>>, vector<1x1x8x128xf32>
    %744 = vector.shape_cast %743 : vector<1x1x8x128xf32> to vector<8x128xf32>
    %c6_885 = arith.constant 6 : index
    %c8_886 = arith.constant 8 : index
    %c0_887 = arith.constant 0 : index
    %c0_888 = arith.constant 0 : index
    %745 = vector.load %arg1[%c6_885, %c8_886, %c0_887, %c0_888] : memref<8x16x8x128xf32, #tpu.memory_space<vmem>>, vector<1x1x8x128xf32>
    %746 = vector.shape_cast %745 : vector<1x1x8x128xf32> to vector<8x128xf32>
    %747 = arith.maximumf %744, %746 : vector<8x128xf32>
    %c6_889 = arith.constant 6 : index
    %c9_890 = arith.constant 9 : index
    %c0_891 = arith.constant 0 : index
    %c0_892 = arith.constant 0 : index
    %748 = vector.load %arg1[%c6_889, %c9_890, %c0_891, %c0_892] : memref<8x16x8x128xf32, #tpu.memory_space<vmem>>, vector<1x1x8x128xf32>
    %749 = vector.shape_cast %748 : vector<1x1x8x128xf32> to vector<8x128xf32>
    %750 = arith.maximumf %747, %749 : vector<8x128xf32>
    %c7_893 = arith.constant 7 : index
    %c7_894 = arith.constant 7 : index
    %c0_895 = arith.constant 0 : index
    %c0_896 = arith.constant 0 : index
    %751 = vector.load %arg1[%c7_893, %c7_894, %c0_895, %c0_896] : memref<8x16x8x128xf32, #tpu.memory_space<vmem>>, vector<1x1x8x128xf32>
    %752 = vector.shape_cast %751 : vector<1x1x8x128xf32> to vector<8x128xf32>
    %c7_897 = arith.constant 7 : index
    %c8_898 = arith.constant 8 : index
    %c0_899 = arith.constant 0 : index
    %c0_900 = arith.constant 0 : index
    %753 = vector.load %arg1[%c7_897, %c8_898, %c0_899, %c0_900] : memref<8x16x8x128xf32, #tpu.memory_space<vmem>>, vector<1x1x8x128xf32>
    %754 = vector.shape_cast %753 : vector<1x1x8x128xf32> to vector<8x128xf32>
    %755 = arith.maximumf %752, %754 : vector<8x128xf32>
    %c7_901 = arith.constant 7 : index
    %c9_902 = arith.constant 9 : index
    %c0_903 = arith.constant 0 : index
    %c0_904 = arith.constant 0 : index
    %756 = vector.load %arg1[%c7_901, %c9_902, %c0_903, %c0_904] : memref<8x16x8x128xf32, #tpu.memory_space<vmem>>, vector<1x1x8x128xf32>
    %757 = vector.shape_cast %756 : vector<1x1x8x128xf32> to vector<8x128xf32>
    %758 = arith.maximumf %755, %757 : vector<8x128xf32>
    %c4_905 = arith.constant 4 : index
    %c0_906 = arith.constant 0 : index
    %c0_907 = arith.constant 0 : index
    %759 = vector.load %arg5[%c4_905, %c0_906, %c0_907] : memref<8x8x128xf32, #tpu.memory_space<vmem>>, vector<1x8x128xf32>
    %760 = vector.shape_cast %759 : vector<1x8x128xf32> to vector<8x128xf32>
    %761 = arith.maximumf %760, %750 : vector<8x128xf32>
    %762 = arith.maximumf %761, %758 : vector<8x128xf32>
    %763 = arith.index_cast %640 : i32 to index
    %c4_908 = arith.constant 4 : index
    %c0_909 = arith.constant 0 : index
    %c0_910 = arith.constant 0 : index
    %764 = vector.load %arg6[%763, %c4_908, %c0_909, %c0_910] : memref<8x8x8x128xf32, #tpu.memory_space<vmem>>, vector<1x1x8x128xf32>
    %765 = vector.shape_cast %764 : vector<1x1x8x128xf32> to vector<8x128xf32>
    %766 = vector.shape_cast %762 : vector<8x128xf32> to vector<1x1x8x128xf32>
    tpu.vector_store %arg6[%763, %c4_908, %c0_909, %c0_910], %766 {strides = array<i32>} : memref<8x8x8x128xf32, #tpu.memory_space<vmem>>, vector<1x1x8x128xf32>,
    %c4_911 = arith.constant 4 : index
    %c0_912 = arith.constant 0 : index
    %c0_913 = arith.constant 0 : index
    %767 = vector.load %arg5[%c4_911, %c0_912, %c0_913] : memref<8x8x128xf32, #tpu.memory_space<vmem>>, vector<1x8x128xf32>
    %768 = vector.shape_cast %767 : vector<1x8x128xf32> to vector<8x128xf32>
    %769 = vector.shape_cast %758 : vector<8x128xf32> to vector<1x8x128xf32>
    tpu.vector_store %arg5[%c4_911, %c0_912, %c0_913], %769 {strides = array<i32>} : memref<8x8x128xf32, #tpu.memory_space<vmem>>, vector<1x8x128xf32>,
    %c6_914 = arith.constant 6 : index
    %c9_915 = arith.constant 9 : index
    %c0_916 = arith.constant 0 : index
    %c0_917 = arith.constant 0 : index
    %770 = vector.load %arg1[%c6_914, %c9_915, %c0_916, %c0_917] : memref<8x16x8x128xf32, #tpu.memory_space<vmem>>, vector<1x1x8x128xf32>
    %771 = vector.shape_cast %770 : vector<1x1x8x128xf32> to vector<8x128xf32>
    %c6_918 = arith.constant 6 : index
    %c10_919 = arith.constant 10 : index
    %c0_920 = arith.constant 0 : index
    %c0_921 = arith.constant 0 : index
    %772 = vector.load %arg1[%c6_918, %c10_919, %c0_920, %c0_921] : memref<8x16x8x128xf32, #tpu.memory_space<vmem>>, vector<1x1x8x128xf32>
    %773 = vector.shape_cast %772 : vector<1x1x8x128xf32> to vector<8x128xf32>
    %774 = arith.maximumf %771, %773 : vector<8x128xf32>
    %c6_922 = arith.constant 6 : index
    %c11_923 = arith.constant 11 : index
    %c0_924 = arith.constant 0 : index
    %c0_925 = arith.constant 0 : index
    %775 = vector.load %arg1[%c6_922, %c11_923, %c0_924, %c0_925] : memref<8x16x8x128xf32, #tpu.memory_space<vmem>>, vector<1x1x8x128xf32>
    %776 = vector.shape_cast %775 : vector<1x1x8x128xf32> to vector<8x128xf32>
    %777 = arith.maximumf %774, %776 : vector<8x128xf32>
    %c7_926 = arith.constant 7 : index
    %c9_927 = arith.constant 9 : index
    %c0_928 = arith.constant 0 : index
    %c0_929 = arith.constant 0 : index
    %778 = vector.load %arg1[%c7_926, %c9_927, %c0_928, %c0_929] : memref<8x16x8x128xf32, #tpu.memory_space<vmem>>, vector<1x1x8x128xf32>
    %779 = vector.shape_cast %778 : vector<1x1x8x128xf32> to vector<8x128xf32>
    %c7_930 = arith.constant 7 : index
    %c10_931 = arith.constant 10 : index
    %c0_932 = arith.constant 0 : index
    %c0_933 = arith.constant 0 : index
    %780 = vector.load %arg1[%c7_930, %c10_931, %c0_932, %c0_933] : memref<8x16x8x128xf32, #tpu.memory_space<vmem>>, vector<1x1x8x128xf32>
    %781 = vector.shape_cast %780 : vector<1x1x8x128xf32> to vector<8x128xf32>
    %782 = arith.maximumf %779, %781 : vector<8x128xf32>
    %c7_934 = arith.constant 7 : index
    %c11_935 = arith.constant 11 : index
    %c0_936 = arith.constant 0 : index
    %c0_937 = arith.constant 0 : index
    %783 = vector.load %arg1[%c7_934, %c11_935, %c0_936, %c0_937] : memref<8x16x8x128xf32, #tpu.memory_space<vmem>>, vector<1x1x8x128xf32>
    %784 = vector.shape_cast %783 : vector<1x1x8x128xf32> to vector<8x128xf32>
    %785 = arith.maximumf %782, %784 : vector<8x128xf32>
    %c5_938 = arith.constant 5 : index
    %c0_939 = arith.constant 0 : index
    %c0_940 = arith.constant 0 : index
    %786 = vector.load %arg5[%c5_938, %c0_939, %c0_940] : memref<8x8x128xf32, #tpu.memory_space<vmem>>, vector<1x8x128xf32>
    %787 = vector.shape_cast %786 : vector<1x8x128xf32> to vector<8x128xf32>
    %788 = arith.maximumf %787, %777 : vector<8x128xf32>
    %789 = arith.maximumf %788, %785 : vector<8x128xf32>
    %790 = arith.index_cast %640 : i32 to index
    %c5_941 = arith.constant 5 : index
    %c0_942 = arith.constant 0 : index
    %c0_943 = arith.constant 0 : index
    %791 = vector.load %arg6[%790, %c5_941, %c0_942, %c0_943] : memref<8x8x8x128xf32, #tpu.memory_space<vmem>>, vector<1x1x8x128xf32>
    %792 = vector.shape_cast %791 : vector<1x1x8x128xf32> to vector<8x128xf32>
    %793 = vector.shape_cast %789 : vector<8x128xf32> to vector<1x1x8x128xf32>
    tpu.vector_store %arg6[%790, %c5_941, %c0_942, %c0_943], %793 {strides = array<i32>} : memref<8x8x8x128xf32, #tpu.memory_space<vmem>>, vector<1x1x8x128xf32>,
    %c5_944 = arith.constant 5 : index
    %c0_945 = arith.constant 0 : index
    %c0_946 = arith.constant 0 : index
    %794 = vector.load %arg5[%c5_944, %c0_945, %c0_946] : memref<8x8x128xf32, #tpu.memory_space<vmem>>, vector<1x8x128xf32>
    %795 = vector.shape_cast %794 : vector<1x8x128xf32> to vector<8x128xf32>
    %796 = vector.shape_cast %785 : vector<8x128xf32> to vector<1x8x128xf32>
    tpu.vector_store %arg5[%c5_944, %c0_945, %c0_946], %796 {strides = array<i32>} : memref<8x8x128xf32, #tpu.memory_space<vmem>>, vector<1x8x128xf32>,
    %c6_947 = arith.constant 6 : index
    %c11_948 = arith.constant 11 : index
    %c0_949 = arith.constant 0 : index
    %c0_950 = arith.constant 0 : index
    %797 = vector.load %arg1[%c6_947, %c11_948, %c0_949, %c0_950] : memref<8x16x8x128xf32, #tpu.memory_space<vmem>>, vector<1x1x8x128xf32>
    %798 = vector.shape_cast %797 : vector<1x1x8x128xf32> to vector<8x128xf32>
    %c6_951 = arith.constant 6 : index
    %c12_952 = arith.constant 12 : index
    %c0_953 = arith.constant 0 : index
    %c0_954 = arith.constant 0 : index
    %799 = vector.load %arg1[%c6_951, %c12_952, %c0_953, %c0_954] : memref<8x16x8x128xf32, #tpu.memory_space<vmem>>, vector<1x1x8x128xf32>
    %800 = vector.shape_cast %799 : vector<1x1x8x128xf32> to vector<8x128xf32>
    %801 = arith.maximumf %798, %800 : vector<8x128xf32>
    %c6_955 = arith.constant 6 : index
    %c13_956 = arith.constant 13 : index
    %c0_957 = arith.constant 0 : index
    %c0_958 = arith.constant 0 : index
    %802 = vector.load %arg1[%c6_955, %c13_956, %c0_957, %c0_958] : memref<8x16x8x128xf32, #tpu.memory_space<vmem>>, vector<1x1x8x128xf32>
    %803 = vector.shape_cast %802 : vector<1x1x8x128xf32> to vector<8x128xf32>
    %804 = arith.maximumf %801, %803 : vector<8x128xf32>
    %c7_959 = arith.constant 7 : index
    %c11_960 = arith.constant 11 : index
    %c0_961 = arith.constant 0 : index
    %c0_962 = arith.constant 0 : index
    %805 = vector.load %arg1[%c7_959, %c11_960, %c0_961, %c0_962] : memref<8x16x8x128xf32, #tpu.memory_space<vmem>>, vector<1x1x8x128xf32>
    %806 = vector.shape_cast %805 : vector<1x1x8x128xf32> to vector<8x128xf32>
    %c7_963 = arith.constant 7 : index
    %c12_964 = arith.constant 12 : index
    %c0_965 = arith.constant 0 : index
    %c0_966 = arith.constant 0 : index
    %807 = vector.load %arg1[%c7_963, %c12_964, %c0_965, %c0_966] : memref<8x16x8x128xf32, #tpu.memory_space<vmem>>, vector<1x1x8x128xf32>
    %808 = vector.shape_cast %807 : vector<1x1x8x128xf32> to vector<8x128xf32>
    %809 = arith.maximumf %806, %808 : vector<8x128xf32>
    %c7_967 = arith.constant 7 : index
    %c13_968 = arith.constant 13 : index
    %c0_969 = arith.constant 0 : index
    %c0_970 = arith.constant 0 : index
    %810 = vector.load %arg1[%c7_967, %c13_968, %c0_969, %c0_970] : memref<8x16x8x128xf32, #tpu.memory_space<vmem>>, vector<1x1x8x128xf32>
    %811 = vector.shape_cast %810 : vector<1x1x8x128xf32> to vector<8x128xf32>
    %812 = arith.maximumf %809, %811 : vector<8x128xf32>
    %c6_971 = arith.constant 6 : index
    %c0_972 = arith.constant 0 : index
    %c0_973 = arith.constant 0 : index
    %813 = vector.load %arg5[%c6_971, %c0_972, %c0_973] : memref<8x8x128xf32, #tpu.memory_space<vmem>>, vector<1x8x128xf32>
    %814 = vector.shape_cast %813 : vector<1x8x128xf32> to vector<8x128xf32>
    %815 = arith.maximumf %814, %804 : vector<8x128xf32>
    %816 = arith.maximumf %815, %812 : vector<8x128xf32>
    %817 = arith.index_cast %640 : i32 to index
    %c6_974 = arith.constant 6 : index
    %c0_975 = arith.constant 0 : index
    %c0_976 = arith.constant 0 : index
    %818 = vector.load %arg6[%817, %c6_974, %c0_975, %c0_976] : memref<8x8x8x128xf32, #tpu.memory_space<vmem>>, vector<1x1x8x128xf32>
    %819 = vector.shape_cast %818 : vector<1x1x8x128xf32> to vector<8x128xf32>
    %820 = vector.shape_cast %816 : vector<8x128xf32> to vector<1x1x8x128xf32>
    tpu.vector_store %arg6[%817, %c6_974, %c0_975, %c0_976], %820 {strides = array<i32>} : memref<8x8x8x128xf32, #tpu.memory_space<vmem>>, vector<1x1x8x128xf32>,
    %c6_977 = arith.constant 6 : index
    %c0_978 = arith.constant 0 : index
    %c0_979 = arith.constant 0 : index
    %821 = vector.load %arg5[%c6_977, %c0_978, %c0_979] : memref<8x8x128xf32, #tpu.memory_space<vmem>>, vector<1x8x128xf32>
    %822 = vector.shape_cast %821 : vector<1x8x128xf32> to vector<8x128xf32>
    %823 = vector.shape_cast %812 : vector<8x128xf32> to vector<1x8x128xf32>
    tpu.vector_store %arg5[%c6_977, %c0_978, %c0_979], %823 {strides = array<i32>} : memref<8x8x128xf32, #tpu.memory_space<vmem>>, vector<1x8x128xf32>,
    %c6_980 = arith.constant 6 : index
    %c13_981 = arith.constant 13 : index
    %c0_982 = arith.constant 0 : index
    %c0_983 = arith.constant 0 : index
    %824 = vector.load %arg1[%c6_980, %c13_981, %c0_982, %c0_983] : memref<8x16x8x128xf32, #tpu.memory_space<vmem>>, vector<1x1x8x128xf32>
    %825 = vector.shape_cast %824 : vector<1x1x8x128xf32> to vector<8x128xf32>
    %c6_984 = arith.constant 6 : index
    %c14_985 = arith.constant 14 : index
    %c0_986 = arith.constant 0 : index
    %c0_987 = arith.constant 0 : index
    %826 = vector.load %arg1[%c6_984, %c14_985, %c0_986, %c0_987] : memref<8x16x8x128xf32, #tpu.memory_space<vmem>>, vector<1x1x8x128xf32>
    %827 = vector.shape_cast %826 : vector<1x1x8x128xf32> to vector<8x128xf32>
    %828 = arith.maximumf %825, %827 : vector<8x128xf32>
    %c6_988 = arith.constant 6 : index
    %c15_989 = arith.constant 15 : index
    %c0_990 = arith.constant 0 : index
    %c0_991 = arith.constant 0 : index
    %829 = vector.load %arg1[%c6_988, %c15_989, %c0_990, %c0_991] : memref<8x16x8x128xf32, #tpu.memory_space<vmem>>, vector<1x1x8x128xf32>
    %830 = vector.shape_cast %829 : vector<1x1x8x128xf32> to vector<8x128xf32>
    %831 = arith.maximumf %828, %830 : vector<8x128xf32>
    %c7_992 = arith.constant 7 : index
    %c13_993 = arith.constant 13 : index
    %c0_994 = arith.constant 0 : index
    %c0_995 = arith.constant 0 : index
    %832 = vector.load %arg1[%c7_992, %c13_993, %c0_994, %c0_995] : memref<8x16x8x128xf32, #tpu.memory_space<vmem>>, vector<1x1x8x128xf32>
    %833 = vector.shape_cast %832 : vector<1x1x8x128xf32> to vector<8x128xf32>
    %c7_996 = arith.constant 7 : index
    %c14_997 = arith.constant 14 : index
    %c0_998 = arith.constant 0 : index
    %c0_999 = arith.constant 0 : index
    %834 = vector.load %arg1[%c7_996, %c14_997, %c0_998, %c0_999] : memref<8x16x8x128xf32, #tpu.memory_space<vmem>>, vector<1x1x8x128xf32>
    %835 = vector.shape_cast %834 : vector<1x1x8x128xf32> to vector<8x128xf32>
    %836 = arith.maximumf %833, %835 : vector<8x128xf32>
    %c7_1000 = arith.constant 7 : index
    %c15_1001 = arith.constant 15 : index
    %c0_1002 = arith.constant 0 : index
    %c0_1003 = arith.constant 0 : index
    %837 = vector.load %arg1[%c7_1000, %c15_1001, %c0_1002, %c0_1003] : memref<8x16x8x128xf32, #tpu.memory_space<vmem>>, vector<1x1x8x128xf32>
    %838 = vector.shape_cast %837 : vector<1x1x8x128xf32> to vector<8x128xf32>
    %839 = arith.maximumf %836, %838 : vector<8x128xf32>
    %c7_1004 = arith.constant 7 : index
    %c0_1005 = arith.constant 0 : index
    %c0_1006 = arith.constant 0 : index
    %840 = vector.load %arg5[%c7_1004, %c0_1005, %c0_1006] : memref<8x8x128xf32, #tpu.memory_space<vmem>>, vector<1x8x128xf32>
    %841 = vector.shape_cast %840 : vector<1x8x128xf32> to vector<8x128xf32>
    %842 = arith.maximumf %841, %831 : vector<8x128xf32>
    %843 = arith.maximumf %842, %839 : vector<8x128xf32>
    %844 = arith.index_cast %640 : i32 to index
    %c7_1007 = arith.constant 7 : index
    %c0_1008 = arith.constant 0 : index
    %c0_1009 = arith.constant 0 : index
    %845 = vector.load %arg6[%844, %c7_1007, %c0_1008, %c0_1009] : memref<8x8x8x128xf32, #tpu.memory_space<vmem>>, vector<1x1x8x128xf32>
    %846 = vector.shape_cast %845 : vector<1x1x8x128xf32> to vector<8x128xf32>
    %847 = vector.shape_cast %843 : vector<8x128xf32> to vector<1x1x8x128xf32>
    tpu.vector_store %arg6[%844, %c7_1007, %c0_1008, %c0_1009], %847 {strides = array<i32>} : memref<8x8x8x128xf32, #tpu.memory_space<vmem>>, vector<1x1x8x128xf32>,
    %c7_1010 = arith.constant 7 : index
    %c0_1011 = arith.constant 0 : index
    %c0_1012 = arith.constant 0 : index
    %848 = vector.load %arg5[%c7_1010, %c0_1011, %c0_1012] : memref<8x8x128xf32, #tpu.memory_space<vmem>>, vector<1x8x128xf32>
    %849 = vector.shape_cast %848 : vector<1x8x128xf32> to vector<8x128xf32>
    %850 = vector.shape_cast %839 : vector<8x128xf32> to vector<1x8x128xf32>
    tpu.vector_store %arg5[%c7_1010, %c0_1011, %c0_1012], %850 {strides = array<i32>} : memref<8x8x128xf32, #tpu.memory_space<vmem>>, vector<1x8x128xf32>,
    %c1_i32_1013 = arith.constant 1 : i32
    %851 = arith.cmpi eq, %arg0, %c1_i32_1013 : i32
    %852 = arith.extui %851 : i1 to i32
    %c0_i32_1014 = arith.constant 0 : i32
    %853 = arith.cmpi ne, %852, %c0_i32_1014 : i32
    scf.if %853 {
      %c0_1015 = arith.constant 0 : index
      %c0_1016 = arith.constant 0 : index
      %c0_1017 = arith.constant 0 : index
      %c0_1018 = arith.constant 0 : index
      %854 = vector.load %arg6[%c0_1015, %c0_1016, %c0_1017, %c0_1018] : memref<8x8x8x128xf32, #tpu.memory_space<vmem>>, vector<1x1x8x128xf32>
      %855 = vector.shape_cast %854 : vector<1x1x8x128xf32> to vector<8x128xf32>
      %c0_1019 = arith.constant 0 : index
      %c1_1020 = arith.constant 1 : index
      %c0_1021 = arith.constant 0 : index
      %c0_1022 = arith.constant 0 : index
      %856 = vector.load %arg6[%c0_1019, %c1_1020, %c0_1021, %c0_1022] : memref<8x8x8x128xf32, #tpu.memory_space<vmem>>, vector<1x1x8x128xf32>
      %857 = vector.shape_cast %856 : vector<1x1x8x128xf32> to vector<8x128xf32>
      %858 = arith.maximumf %855, %857 : vector<8x128xf32>
      %c1_1023 = arith.constant 1 : index
      %c0_1024 = arith.constant 0 : index
      %c0_1025 = arith.constant 0 : index
      %c0_1026 = arith.constant 0 : index
      %859 = vector.load %arg6[%c1_1023, %c0_1024, %c0_1025, %c0_1026] : memref<8x8x8x128xf32, #tpu.memory_space<vmem>>, vector<1x1x8x128xf32>
      %860 = vector.shape_cast %859 : vector<1x1x8x128xf32> to vector<8x128xf32>
      %861 = arith.maximumf %858, %860 : vector<8x128xf32>
      %c1_1027 = arith.constant 1 : index
      %c1_1028 = arith.constant 1 : index
      %c0_1029 = arith.constant 0 : index
      %c0_1030 = arith.constant 0 : index
      %862 = vector.load %arg6[%c1_1027, %c1_1028, %c0_1029, %c0_1030] : memref<8x8x8x128xf32, #tpu.memory_space<vmem>>, vector<1x1x8x128xf32>
      %863 = vector.shape_cast %862 : vector<1x1x8x128xf32> to vector<8x128xf32>
      %864 = arith.maximumf %861, %863 : vector<8x128xf32>
      %c0_1031 = arith.constant 0 : index
      %c0_1032 = arith.constant 0 : index
      %c0_1033 = arith.constant 0 : index
      %c0_1034 = arith.constant 0 : index
      %865 = vector.load %arg7[%c0_1031, %c0_1032, %c0_1033, %c0_1034] : memref<4x4x8x128xf32, #tpu.memory_space<vmem>>, vector<1x1x8x128xf32>
      %866 = vector.shape_cast %865 : vector<1x1x8x128xf32> to vector<8x128xf32>
      %867 = vector.shape_cast %864 : vector<8x128xf32> to vector<1x1x8x128xf32>
      tpu.vector_store %arg7[%c0_1031, %c0_1032, %c0_1033, %c0_1034], %867 {strides = array<i32>} : memref<4x4x8x128xf32, #tpu.memory_space<vmem>>, vector<1x1x8x128xf32>,
      %c0_1035 = arith.constant 0 : index
      %c1_1036 = arith.constant 1 : index
      %c0_1037 = arith.constant 0 : index
      %c0_1038 = arith.constant 0 : index
      %868 = vector.load %arg6[%c0_1035, %c1_1036, %c0_1037, %c0_1038] : memref<8x8x8x128xf32, #tpu.memory_space<vmem>>, vector<1x1x8x128xf32>
      %869 = vector.shape_cast %868 : vector<1x1x8x128xf32> to vector<8x128xf32>
      %c0_1039 = arith.constant 0 : index
      %c2_1040 = arith.constant 2 : index
      %c0_1041 = arith.constant 0 : index
      %c0_1042 = arith.constant 0 : index
      %870 = vector.load %arg6[%c0_1039, %c2_1040, %c0_1041, %c0_1042] : memref<8x8x8x128xf32, #tpu.memory_space<vmem>>, vector<1x1x8x128xf32>
      %871 = vector.shape_cast %870 : vector<1x1x8x128xf32> to vector<8x128xf32>
      %872 = arith.maximumf %869, %871 : vector<8x128xf32>
      %c0_1043 = arith.constant 0 : index
      %c3_1044 = arith.constant 3 : index
      %c0_1045 = arith.constant 0 : index
      %c0_1046 = arith.constant 0 : index
      %873 = vector.load %arg6[%c0_1043, %c3_1044, %c0_1045, %c0_1046] : memref<8x8x8x128xf32, #tpu.memory_space<vmem>>, vector<1x1x8x128xf32>
      %874 = vector.shape_cast %873 : vector<1x1x8x128xf32> to vector<8x128xf32>
      %875 = arith.maximumf %872, %874 : vector<8x128xf32>
      %c1_1047 = arith.constant 1 : index
      %c1_1048 = arith.constant 1 : index
      %c0_1049 = arith.constant 0 : index
      %c0_1050 = arith.constant 0 : index
      %876 = vector.load %arg6[%c1_1047, %c1_1048, %c0_1049, %c0_1050] : memref<8x8x8x128xf32, #tpu.memory_space<vmem>>, vector<1x1x8x128xf32>
      %877 = vector.shape_cast %876 : vector<1x1x8x128xf32> to vector<8x128xf32>
      %878 = arith.maximumf %875, %877 : vector<8x128xf32>
      %c1_1051 = arith.constant 1 : index
      %c2_1052 = arith.constant 2 : index
      %c0_1053 = arith.constant 0 : index
      %c0_1054 = arith.constant 0 : index
      %879 = vector.load %arg6[%c1_1051, %c2_1052, %c0_1053, %c0_1054] : memref<8x8x8x128xf32, #tpu.memory_space<vmem>>, vector<1x1x8x128xf32>
      %880 = vector.shape_cast %879 : vector<1x1x8x128xf32> to vector<8x128xf32>
      %881 = arith.maximumf %878, %880 : vector<8x128xf32>
      %c1_1055 = arith.constant 1 : index
      %c3_1056 = arith.constant 3 : index
      %c0_1057 = arith.constant 0 : index
      %c0_1058 = arith.constant 0 : index
      %882 = vector.load %arg6[%c1_1055, %c3_1056, %c0_1057, %c0_1058] : memref<8x8x8x128xf32, #tpu.memory_space<vmem>>, vector<1x1x8x128xf32>
      %883 = vector.shape_cast %882 : vector<1x1x8x128xf32> to vector<8x128xf32>
      %884 = arith.maximumf %881, %883 : vector<8x128xf32>
      %c0_1059 = arith.constant 0 : index
      %c1_1060 = arith.constant 1 : index
      %c0_1061 = arith.constant 0 : index
      %c0_1062 = arith.constant 0 : index
      %885 = vector.load %arg7[%c0_1059, %c1_1060, %c0_1061, %c0_1062] : memref<4x4x8x128xf32, #tpu.memory_space<vmem>>, vector<1x1x8x128xf32>
      %886 = vector.shape_cast %885 : vector<1x1x8x128xf32> to vector<8x128xf32>
      %887 = vector.shape_cast %884 : vector<8x128xf32> to vector<1x1x8x128xf32>
      tpu.vector_store %arg7[%c0_1059, %c1_1060, %c0_1061, %c0_1062], %887 {strides = array<i32>} : memref<4x4x8x128xf32, #tpu.memory_space<vmem>>, vector<1x1x8x128xf32>,
      %c0_1063 = arith.constant 0 : index
      %c3_1064 = arith.constant 3 : index
      %c0_1065 = arith.constant 0 : index
      %c0_1066 = arith.constant 0 : index
      %888 = vector.load %arg6[%c0_1063, %c3_1064, %c0_1065, %c0_1066] : memref<8x8x8x128xf32, #tpu.memory_space<vmem>>, vector<1x1x8x128xf32>
      %889 = vector.shape_cast %888 : vector<1x1x8x128xf32> to vector<8x128xf32>
      %c0_1067 = arith.constant 0 : index
      %c4_1068 = arith.constant 4 : index
      %c0_1069 = arith.constant 0 : index
      %c0_1070 = arith.constant 0 : index
      %890 = vector.load %arg6[%c0_1067, %c4_1068, %c0_1069, %c0_1070] : memref<8x8x8x128xf32, #tpu.memory_space<vmem>>, vector<1x1x8x128xf32>
      %891 = vector.shape_cast %890 : vector<1x1x8x128xf32> to vector<8x128xf32>
      %892 = arith.maximumf %889, %891 : vector<8x128xf32>
      %c0_1071 = arith.constant 0 : index
      %c5_1072 = arith.constant 5 : index
      %c0_1073 = arith.constant 0 : index
      %c0_1074 = arith.constant 0 : index
      %893 = vector.load %arg6[%c0_1071, %c5_1072, %c0_1073, %c0_1074] : memref<8x8x8x128xf32, #tpu.memory_space<vmem>>, vector<1x1x8x128xf32>
      %894 = vector.shape_cast %893 : vector<1x1x8x128xf32> to vector<8x128xf32>
      %895 = arith.maximumf %892, %894 : vector<8x128xf32>
      %c1_1075 = arith.constant 1 : index
      %c3_1076 = arith.constant 3 : index
      %c0_1077 = arith.constant 0 : index
      %c0_1078 = arith.constant 0 : index
      %896 = vector.load %arg6[%c1_1075, %c3_1076, %c0_1077, %c0_1078] : memref<8x8x8x128xf32, #tpu.memory_space<vmem>>, vector<1x1x8x128xf32>
      %897 = vector.shape_cast %896 : vector<1x1x8x128xf32> to vector<8x128xf32>
      %898 = arith.maximumf %895, %897 : vector<8x128xf32>
      %c1_1079 = arith.constant 1 : index
      %c4_1080 = arith.constant 4 : index
      %c0_1081 = arith.constant 0 : index
      %c0_1082 = arith.constant 0 : index
      %899 = vector.load %arg6[%c1_1079, %c4_1080, %c0_1081, %c0_1082] : memref<8x8x8x128xf32, #tpu.memory_space<vmem>>, vector<1x1x8x128xf32>
      %900 = vector.shape_cast %899 : vector<1x1x8x128xf32> to vector<8x128xf32>
      %901 = arith.maximumf %898, %900 : vector<8x128xf32>
      %c1_1083 = arith.constant 1 : index
      %c5_1084 = arith.constant 5 : index
      %c0_1085 = arith.constant 0 : index
      %c0_1086 = arith.constant 0 : index
      %902 = vector.load %arg6[%c1_1083, %c5_1084, %c0_1085, %c0_1086] : memref<8x8x8x128xf32, #tpu.memory_space<vmem>>, vector<1x1x8x128xf32>
      %903 = vector.shape_cast %902 : vector<1x1x8x128xf32> to vector<8x128xf32>
      %904 = arith.maximumf %901, %903 : vector<8x128xf32>
      %c0_1087 = arith.constant 0 : index
      %c2_1088 = arith.constant 2 : index
      %c0_1089 = arith.constant 0 : index
      %c0_1090 = arith.constant 0 : index
      %905 = vector.load %arg7[%c0_1087, %c2_1088, %c0_1089, %c0_1090] : memref<4x4x8x128xf32, #tpu.memory_space<vmem>>, vector<1x1x8x128xf32>
      %906 = vector.shape_cast %905 : vector<1x1x8x128xf32> to vector<8x128xf32>
      %907 = vector.shape_cast %904 : vector<8x128xf32> to vector<1x1x8x128xf32>
      tpu.vector_store %arg7[%c0_1087, %c2_1088, %c0_1089, %c0_1090], %907 {strides = array<i32>} : memref<4x4x8x128xf32, #tpu.memory_space<vmem>>, vector<1x1x8x128xf32>,
      %c0_1091 = arith.constant 0 : index
      %c5_1092 = arith.constant 5 : index
      %c0_1093 = arith.constant 0 : index
      %c0_1094 = arith.constant 0 : index
      %908 = vector.load %arg6[%c0_1091, %c5_1092, %c0_1093, %c0_1094] : memref<8x8x8x128xf32, #tpu.memory_space<vmem>>, vector<1x1x8x128xf32>
      %909 = vector.shape_cast %908 : vector<1x1x8x128xf32> to vector<8x128xf32>
      %c0_1095 = arith.constant 0 : index
      %c6_1096 = arith.constant 6 : index
      %c0_1097 = arith.constant 0 : index
      %c0_1098 = arith.constant 0 : index
      %910 = vector.load %arg6[%c0_1095, %c6_1096, %c0_1097, %c0_1098] : memref<8x8x8x128xf32, #tpu.memory_space<vmem>>, vector<1x1x8x128xf32>
      %911 = vector.shape_cast %910 : vector<1x1x8x128xf32> to vector<8x128xf32>
      %912 = arith.maximumf %909, %911 : vector<8x128xf32>
      %c0_1099 = arith.constant 0 : index
      %c7_1100 = arith.constant 7 : index
      %c0_1101 = arith.constant 0 : index
      %c0_1102 = arith.constant 0 : index
      %913 = vector.load %arg6[%c0_1099, %c7_1100, %c0_1101, %c0_1102] : memref<8x8x8x128xf32, #tpu.memory_space<vmem>>, vector<1x1x8x128xf32>
      %914 = vector.shape_cast %913 : vector<1x1x8x128xf32> to vector<8x128xf32>
      %915 = arith.maximumf %912, %914 : vector<8x128xf32>
      %c1_1103 = arith.constant 1 : index
      %c5_1104 = arith.constant 5 : index
      %c0_1105 = arith.constant 0 : index
      %c0_1106 = arith.constant 0 : index
      %916 = vector.load %arg6[%c1_1103, %c5_1104, %c0_1105, %c0_1106] : memref<8x8x8x128xf32, #tpu.memory_space<vmem>>, vector<1x1x8x128xf32>
      %917 = vector.shape_cast %916 : vector<1x1x8x128xf32> to vector<8x128xf32>
      %918 = arith.maximumf %915, %917 : vector<8x128xf32>
      %c1_1107 = arith.constant 1 : index
      %c6_1108 = arith.constant 6 : index
      %c0_1109 = arith.constant 0 : index
      %c0_1110 = arith.constant 0 : index
      %919 = vector.load %arg6[%c1_1107, %c6_1108, %c0_1109, %c0_1110] : memref<8x8x8x128xf32, #tpu.memory_space<vmem>>, vector<1x1x8x128xf32>
      %920 = vector.shape_cast %919 : vector<1x1x8x128xf32> to vector<8x128xf32>
      %921 = arith.maximumf %918, %920 : vector<8x128xf32>
      %c1_1111 = arith.constant 1 : index
      %c7_1112 = arith.constant 7 : index
      %c0_1113 = arith.constant 0 : index
      %c0_1114 = arith.constant 0 : index
      %922 = vector.load %arg6[%c1_1111, %c7_1112, %c0_1113, %c0_1114] : memref<8x8x8x128xf32, #tpu.memory_space<vmem>>, vector<1x1x8x128xf32>
      %923 = vector.shape_cast %922 : vector<1x1x8x128xf32> to vector<8x128xf32>
      %924 = arith.maximumf %921, %923 : vector<8x128xf32>
      %c0_1115 = arith.constant 0 : index
      %c3_1116 = arith.constant 3 : index
      %c0_1117 = arith.constant 0 : index
      %c0_1118 = arith.constant 0 : index
      %925 = vector.load %arg7[%c0_1115, %c3_1116, %c0_1117, %c0_1118] : memref<4x4x8x128xf32, #tpu.memory_space<vmem>>, vector<1x1x8x128xf32>
      %926 = vector.shape_cast %925 : vector<1x1x8x128xf32> to vector<8x128xf32>
      %927 = vector.shape_cast %924 : vector<8x128xf32> to vector<1x1x8x128xf32>
      tpu.vector_store %arg7[%c0_1115, %c3_1116, %c0_1117, %c0_1118], %927 {strides = array<i32>} : memref<4x4x8x128xf32, #tpu.memory_space<vmem>>, vector<1x1x8x128xf32>,
      %c1_1119 = arith.constant 1 : index
      %c0_1120 = arith.constant 0 : index
      %c0_1121 = arith.constant 0 : index
      %c0_1122 = arith.constant 0 : index
      %928 = vector.load %arg6[%c1_1119, %c0_1120, %c0_1121, %c0_1122] : memref<8x8x8x128xf32, #tpu.memory_space<vmem>>, vector<1x1x8x128xf32>
      %929 = vector.shape_cast %928 : vector<1x1x8x128xf32> to vector<8x128xf32>
      %c1_1123 = arith.constant 1 : index
      %c1_1124 = arith.constant 1 : index
      %c0_1125 = arith.constant 0 : index
      %c0_1126 = arith.constant 0 : index
      %930 = vector.load %arg6[%c1_1123, %c1_1124, %c0_1125, %c0_1126] : memref<8x8x8x128xf32, #tpu.memory_space<vmem>>, vector<1x1x8x128xf32>
      %931 = vector.shape_cast %930 : vector<1x1x8x128xf32> to vector<8x128xf32>
      %932 = arith.maximumf %929, %931 : vector<8x128xf32>
      %c2_1127 = arith.constant 2 : index
      %c0_1128 = arith.constant 0 : index
      %c0_1129 = arith.constant 0 : index
      %c0_1130 = arith.constant 0 : index
      %933 = vector.load %arg6[%c2_1127, %c0_1128, %c0_1129, %c0_1130] : memref<8x8x8x128xf32, #tpu.memory_space<vmem>>, vector<1x1x8x128xf32>
      %934 = vector.shape_cast %933 : vector<1x1x8x128xf32> to vector<8x128xf32>
      %935 = arith.maximumf %932, %934 : vector<8x128xf32>
      %c2_1131 = arith.constant 2 : index
      %c1_1132 = arith.constant 1 : index
      %c0_1133 = arith.constant 0 : index
      %c0_1134 = arith.constant 0 : index
      %936 = vector.load %arg6[%c2_1131, %c1_1132, %c0_1133, %c0_1134] : memref<8x8x8x128xf32, #tpu.memory_space<vmem>>, vector<1x1x8x128xf32>
      %937 = vector.shape_cast %936 : vector<1x1x8x128xf32> to vector<8x128xf32>
      %938 = arith.maximumf %935, %937 : vector<8x128xf32>
      %c3_1135 = arith.constant 3 : index
      %c0_1136 = arith.constant 0 : index
      %c0_1137 = arith.constant 0 : index
      %c0_1138 = arith.constant 0 : index
      %939 = vector.load %arg6[%c3_1135, %c0_1136, %c0_1137, %c0_1138] : memref<8x8x8x128xf32, #tpu.memory_space<vmem>>, vector<1x1x8x128xf32>
      %940 = vector.shape_cast %939 : vector<1x1x8x128xf32> to vector<8x128xf32>
      %941 = arith.maximumf %938, %940 : vector<8x128xf32>
      %c3_1139 = arith.constant 3 : index
      %c1_1140 = arith.constant 1 : index
      %c0_1141 = arith.constant 0 : index
      %c0_1142 = arith.constant 0 : index
      %942 = vector.load %arg6[%c3_1139, %c1_1140, %c0_1141, %c0_1142] : memref<8x8x8x128xf32, #tpu.memory_space<vmem>>, vector<1x1x8x128xf32>
      %943 = vector.shape_cast %942 : vector<1x1x8x128xf32> to vector<8x128xf32>
      %944 = arith.maximumf %941, %943 : vector<8x128xf32>
      %c1_1143 = arith.constant 1 : index
      %c0_1144 = arith.constant 0 : index
      %c0_1145 = arith.constant 0 : index
      %c0_1146 = arith.constant 0 : index
      %945 = vector.load %arg7[%c1_1143, %c0_1144, %c0_1145, %c0_1146] : memref<4x4x8x128xf32, #tpu.memory_space<vmem>>, vector<1x1x8x128xf32>
      %946 = vector.shape_cast %945 : vector<1x1x8x128xf32> to vector<8x128xf32>
      %947 = vector.shape_cast %944 : vector<8x128xf32> to vector<1x1x8x128xf32>
      tpu.vector_store %arg7[%c1_1143, %c0_1144, %c0_1145, %c0_1146], %947 {strides = array<i32>} : memref<4x4x8x128xf32, #tpu.memory_space<vmem>>, vector<1x1x8x128xf32>,
      %c1_1147 = arith.constant 1 : index
      %c1_1148 = arith.constant 1 : index
      %c0_1149 = arith.constant 0 : index
      %c0_1150 = arith.constant 0 : index
      %948 = vector.load %arg6[%c1_1147, %c1_1148, %c0_1149, %c0_1150] : memref<8x8x8x128xf32, #tpu.memory_space<vmem>>, vector<1x1x8x128xf32>
      %949 = vector.shape_cast %948 : vector<1x1x8x128xf32> to vector<8x128xf32>
      %c1_1151 = arith.constant 1 : index
      %c2_1152 = arith.constant 2 : index
      %c0_1153 = arith.constant 0 : index
      %c0_1154 = arith.constant 0 : index
      %950 = vector.load %arg6[%c1_1151, %c2_1152, %c0_1153, %c0_1154] : memref<8x8x8x128xf32, #tpu.memory_space<vmem>>, vector<1x1x8x128xf32>
      %951 = vector.shape_cast %950 : vector<1x1x8x128xf32> to vector<8x128xf32>
      %952 = arith.maximumf %949, %951 : vector<8x128xf32>
      %c1_1155 = arith.constant 1 : index
      %c3_1156 = arith.constant 3 : index
      %c0_1157 = arith.constant 0 : index
      %c0_1158 = arith.constant 0 : index
      %953 = vector.load %arg6[%c1_1155, %c3_1156, %c0_1157, %c0_1158] : memref<8x8x8x128xf32, #tpu.memory_space<vmem>>, vector<1x1x8x128xf32>
      %954 = vector.shape_cast %953 : vector<1x1x8x128xf32> to vector<8x128xf32>
      %955 = arith.maximumf %952, %954 : vector<8x128xf32>
      %c2_1159 = arith.constant 2 : index
      %c1_1160 = arith.constant 1 : index
      %c0_1161 = arith.constant 0 : index
      %c0_1162 = arith.constant 0 : index
      %956 = vector.load %arg6[%c2_1159, %c1_1160, %c0_1161, %c0_1162] : memref<8x8x8x128xf32, #tpu.memory_space<vmem>>, vector<1x1x8x128xf32>
      %957 = vector.shape_cast %956 : vector<1x1x8x128xf32> to vector<8x128xf32>
      %958 = arith.maximumf %955, %957 : vector<8x128xf32>
      %c2_1163 = arith.constant 2 : index
      %c2_1164 = arith.constant 2 : index
      %c0_1165 = arith.constant 0 : index
      %c0_1166 = arith.constant 0 : index
      %959 = vector.load %arg6[%c2_1163, %c2_1164, %c0_1165, %c0_1166] : memref<8x8x8x128xf32, #tpu.memory_space<vmem>>, vector<1x1x8x128xf32>
      %960 = vector.shape_cast %959 : vector<1x1x8x128xf32> to vector<8x128xf32>
      %961 = arith.maximumf %958, %960 : vector<8x128xf32>
      %c2_1167 = arith.constant 2 : index
      %c3_1168 = arith.constant 3 : index
      %c0_1169 = arith.constant 0 : index
      %c0_1170 = arith.constant 0 : index
      %962 = vector.load %arg6[%c2_1167, %c3_1168, %c0_1169, %c0_1170] : memref<8x8x8x128xf32, #tpu.memory_space<vmem>>, vector<1x1x8x128xf32>
      %963 = vector.shape_cast %962 : vector<1x1x8x128xf32> to vector<8x128xf32>
      %964 = arith.maximumf %961, %963 : vector<8x128xf32>
      %c3_1171 = arith.constant 3 : index
      %c1_1172 = arith.constant 1 : index
      %c0_1173 = arith.constant 0 : index
      %c0_1174 = arith.constant 0 : index
      %965 = vector.load %arg6[%c3_1171, %c1_1172, %c0_1173, %c0_1174] : memref<8x8x8x128xf32, #tpu.memory_space<vmem>>, vector<1x1x8x128xf32>
      %966 = vector.shape_cast %965 : vector<1x1x8x128xf32> to vector<8x128xf32>
      %967 = arith.maximumf %964, %966 : vector<8x128xf32>
      %c3_1175 = arith.constant 3 : index
      %c2_1176 = arith.constant 2 : index
      %c0_1177 = arith.constant 0 : index
      %c0_1178 = arith.constant 0 : index
      %968 = vector.load %arg6[%c3_1175, %c2_1176, %c0_1177, %c0_1178] : memref<8x8x8x128xf32, #tpu.memory_space<vmem>>, vector<1x1x8x128xf32>
      %969 = vector.shape_cast %968 : vector<1x1x8x128xf32> to vector<8x128xf32>
      %970 = arith.maximumf %967, %969 : vector<8x128xf32>
      %c3_1179 = arith.constant 3 : index
      %c3_1180 = arith.constant 3 : index
      %c0_1181 = arith.constant 0 : index
      %c0_1182 = arith.constant 0 : index
      %971 = vector.load %arg6[%c3_1179, %c3_1180, %c0_1181, %c0_1182] : memref<8x8x8x128xf32, #tpu.memory_space<vmem>>, vector<1x1x8x128xf32>
      %972 = vector.shape_cast %971 : vector<1x1x8x128xf32> to vector<8x128xf32>
      %973 = arith.maximumf %970, %972 : vector<8x128xf32>
      %c1_1183 = arith.constant 1 : index
      %c1_1184 = arith.constant 1 : index
      %c0_1185 = arith.constant 0 : index
      %c0_1186 = arith.constant 0 : index
      %974 = vector.load %arg7[%c1_1183, %c1_1184, %c0_1185, %c0_1186] : memref<4x4x8x128xf32, #tpu.memory_space<vmem>>, vector<1x1x8x128xf32>
      %975 = vector.shape_cast %974 : vector<1x1x8x128xf32> to vector<8x128xf32>
      %976 = vector.shape_cast %973 : vector<8x128xf32> to vector<1x1x8x128xf32>
      tpu.vector_store %arg7[%c1_1183, %c1_1184, %c0_1185, %c0_1186], %976 {strides = array<i32>} : memref<4x4x8x128xf32, #tpu.memory_space<vmem>>, vector<1x1x8x128xf32>,
      %c1_1187 = arith.constant 1 : index
      %c3_1188 = arith.constant 3 : index
      %c0_1189 = arith.constant 0 : index
      %c0_1190 = arith.constant 0 : index
      %977 = vector.load %arg6[%c1_1187, %c3_1188, %c0_1189, %c0_1190] : memref<8x8x8x128xf32, #tpu.memory_space<vmem>>, vector<1x1x8x128xf32>
      %978 = vector.shape_cast %977 : vector<1x1x8x128xf32> to vector<8x128xf32>
      %c1_1191 = arith.constant 1 : index
      %c4_1192 = arith.constant 4 : index
      %c0_1193 = arith.constant 0 : index
      %c0_1194 = arith.constant 0 : index
      %979 = vector.load %arg6[%c1_1191, %c4_1192, %c0_1193, %c0_1194] : memref<8x8x8x128xf32, #tpu.memory_space<vmem>>, vector<1x1x8x128xf32>
      %980 = vector.shape_cast %979 : vector<1x1x8x128xf32> to vector<8x128xf32>
      %981 = arith.maximumf %978, %980 : vector<8x128xf32>
      %c1_1195 = arith.constant 1 : index
      %c5_1196 = arith.constant 5 : index
      %c0_1197 = arith.constant 0 : index
      %c0_1198 = arith.constant 0 : index
      %982 = vector.load %arg6[%c1_1195, %c5_1196, %c0_1197, %c0_1198] : memref<8x8x8x128xf32, #tpu.memory_space<vmem>>, vector<1x1x8x128xf32>
      %983 = vector.shape_cast %982 : vector<1x1x8x128xf32> to vector<8x128xf32>
      %984 = arith.maximumf %981, %983 : vector<8x128xf32>
      %c2_1199 = arith.constant 2 : index
      %c3_1200 = arith.constant 3 : index
      %c0_1201 = arith.constant 0 : index
      %c0_1202 = arith.constant 0 : index
      %985 = vector.load %arg6[%c2_1199, %c3_1200, %c0_1201, %c0_1202] : memref<8x8x8x128xf32, #tpu.memory_space<vmem>>, vector<1x1x8x128xf32>
      %986 = vector.shape_cast %985 : vector<1x1x8x128xf32> to vector<8x128xf32>
      %987 = arith.maximumf %984, %986 : vector<8x128xf32>
      %c2_1203 = arith.constant 2 : index
      %c4_1204 = arith.constant 4 : index
      %c0_1205 = arith.constant 0 : index
      %c0_1206 = arith.constant 0 : index
      %988 = vector.load %arg6[%c2_1203, %c4_1204, %c0_1205, %c0_1206] : memref<8x8x8x128xf32, #tpu.memory_space<vmem>>, vector<1x1x8x128xf32>
      %989 = vector.shape_cast %988 : vector<1x1x8x128xf32> to vector<8x128xf32>
      %990 = arith.maximumf %987, %989 : vector<8x128xf32>
      %c2_1207 = arith.constant 2 : index
      %c5_1208 = arith.constant 5 : index
      %c0_1209 = arith.constant 0 : index
      %c0_1210 = arith.constant 0 : index
      %991 = vector.load %arg6[%c2_1207, %c5_1208, %c0_1209, %c0_1210] : memref<8x8x8x128xf32, #tpu.memory_space<vmem>>, vector<1x1x8x128xf32>
      %992 = vector.shape_cast %991 : vector<1x1x8x128xf32> to vector<8x128xf32>
      %993 = arith.maximumf %990, %992 : vector<8x128xf32>
      %c3_1211 = arith.constant 3 : index
      %c3_1212 = arith.constant 3 : index
      %c0_1213 = arith.constant 0 : index
      %c0_1214 = arith.constant 0 : index
      %994 = vector.load %arg6[%c3_1211, %c3_1212, %c0_1213, %c0_1214] : memref<8x8x8x128xf32, #tpu.memory_space<vmem>>, vector<1x1x8x128xf32>
      %995 = vector.shape_cast %994 : vector<1x1x8x128xf32> to vector<8x128xf32>
      %996 = arith.maximumf %993, %995 : vector<8x128xf32>
      %c3_1215 = arith.constant 3 : index
      %c4_1216 = arith.constant 4 : index
      %c0_1217 = arith.constant 0 : index
      %c0_1218 = arith.constant 0 : index
      %997 = vector.load %arg6[%c3_1215, %c4_1216, %c0_1217, %c0_1218] : memref<8x8x8x128xf32, #tpu.memory_space<vmem>>, vector<1x1x8x128xf32>
      %998 = vector.shape_cast %997 : vector<1x1x8x128xf32> to vector<8x128xf32>
      %999 = arith.maximumf %996, %998 : vector<8x128xf32>
      %c3_1219 = arith.constant 3 : index
      %c5_1220 = arith.constant 5 : index
      %c0_1221 = arith.constant 0 : index
      %c0_1222 = arith.constant 0 : index
      %1000 = vector.load %arg6[%c3_1219, %c5_1220, %c0_1221, %c0_1222] : memref<8x8x8x128xf32, #tpu.memory_space<vmem>>, vector<1x1x8x128xf32>
      %1001 = vector.shape_cast %1000 : vector<1x1x8x128xf32> to vector<8x128xf32>
      %1002 = arith.maximumf %999, %1001 : vector<8x128xf32>
      %c1_1223 = arith.constant 1 : index
      %c2_1224 = arith.constant 2 : index
      %c0_1225 = arith.constant 0 : index
      %c0_1226 = arith.constant 0 : index
      %1003 = vector.load %arg7[%c1_1223, %c2_1224, %c0_1225, %c0_1226] : memref<4x4x8x128xf32, #tpu.memory_space<vmem>>, vector<1x1x8x128xf32>
      %1004 = vector.shape_cast %1003 : vector<1x1x8x128xf32> to vector<8x128xf32>
      %1005 = vector.shape_cast %1002 : vector<8x128xf32> to vector<1x1x8x128xf32>
      tpu.vector_store %arg7[%c1_1223, %c2_1224, %c0_1225, %c0_1226], %1005 {strides = array<i32>} : memref<4x4x8x128xf32, #tpu.memory_space<vmem>>, vector<1x1x8x128xf32>,
      %c1_1227 = arith.constant 1 : index
      %c5_1228 = arith.constant 5 : index
      %c0_1229 = arith.constant 0 : index
      %c0_1230 = arith.constant 0 : index
      %1006 = vector.load %arg6[%c1_1227, %c5_1228, %c0_1229, %c0_1230] : memref<8x8x8x128xf32, #tpu.memory_space<vmem>>, vector<1x1x8x128xf32>
      %1007 = vector.shape_cast %1006 : vector<1x1x8x128xf32> to vector<8x128xf32>
      %c1_1231 = arith.constant 1 : index
      %c6_1232 = arith.constant 6 : index
      %c0_1233 = arith.constant 0 : index
      %c0_1234 = arith.constant 0 : index
      %1008 = vector.load %arg6[%c1_1231, %c6_1232, %c0_1233, %c0_1234] : memref<8x8x8x128xf32, #tpu.memory_space<vmem>>, vector<1x1x8x128xf32>
      %1009 = vector.shape_cast %1008 : vector<1x1x8x128xf32> to vector<8x128xf32>
      %1010 = arith.maximumf %1007, %1009 : vector<8x128xf32>
      %c1_1235 = arith.constant 1 : index
      %c7_1236 = arith.constant 7 : index
      %c0_1237 = arith.constant 0 : index
      %c0_1238 = arith.constant 0 : index
      %1011 = vector.load %arg6[%c1_1235, %c7_1236, %c0_1237, %c0_1238] : memref<8x8x8x128xf32, #tpu.memory_space<vmem>>, vector<1x1x8x128xf32>
      %1012 = vector.shape_cast %1011 : vector<1x1x8x128xf32> to vector<8x128xf32>
      %1013 = arith.maximumf %1010, %1012 : vector<8x128xf32>
      %c2_1239 = arith.constant 2 : index
      %c5_1240 = arith.constant 5 : index
      %c0_1241 = arith.constant 0 : index
      %c0_1242 = arith.constant 0 : index
      %1014 = vector.load %arg6[%c2_1239, %c5_1240, %c0_1241, %c0_1242] : memref<8x8x8x128xf32, #tpu.memory_space<vmem>>, vector<1x1x8x128xf32>
      %1015 = vector.shape_cast %1014 : vector<1x1x8x128xf32> to vector<8x128xf32>
      %1016 = arith.maximumf %1013, %1015 : vector<8x128xf32>
      %c2_1243 = arith.constant 2 : index
      %c6_1244 = arith.constant 6 : index
      %c0_1245 = arith.constant 0 : index
      %c0_1246 = arith.constant 0 : index
      %1017 = vector.load %arg6[%c2_1243, %c6_1244, %c0_1245, %c0_1246] : memref<8x8x8x128xf32, #tpu.memory_space<vmem>>, vector<1x1x8x128xf32>
      %1018 = vector.shape_cast %1017 : vector<1x1x8x128xf32> to vector<8x128xf32>
      %1019 = arith.maximumf %1016, %1018 : vector<8x128xf32>
      %c2_1247 = arith.constant 2 : index
      %c7_1248 = arith.constant 7 : index
      %c0_1249 = arith.constant 0 : index
      %c0_1250 = arith.constant 0 : index
      %1020 = vector.load %arg6[%c2_1247, %c7_1248, %c0_1249, %c0_1250] : memref<8x8x8x128xf32, #tpu.memory_space<vmem>>, vector<1x1x8x128xf32>
      %1021 = vector.shape_cast %1020 : vector<1x1x8x128xf32> to vector<8x128xf32>
      %1022 = arith.maximumf %1019, %1021 : vector<8x128xf32>
      %c3_1251 = arith.constant 3 : index
      %c5_1252 = arith.constant 5 : index
      %c0_1253 = arith.constant 0 : index
      %c0_1254 = arith.constant 0 : index
      %1023 = vector.load %arg6[%c3_1251, %c5_1252, %c0_1253, %c0_1254] : memref<8x8x8x128xf32, #tpu.memory_space<vmem>>, vector<1x1x8x128xf32>
      %1024 = vector.shape_cast %1023 : vector<1x1x8x128xf32> to vector<8x128xf32>
      %1025 = arith.maximumf %1022, %1024 : vector<8x128xf32>
      %c3_1255 = arith.constant 3 : index
      %c6_1256 = arith.constant 6 : index
      %c0_1257 = arith.constant 0 : index
      %c0_1258 = arith.constant 0 : index
      %1026 = vector.load %arg6[%c3_1255, %c6_1256, %c0_1257, %c0_1258] : memref<8x8x8x128xf32, #tpu.memory_space<vmem>>, vector<1x1x8x128xf32>
      %1027 = vector.shape_cast %1026 : vector<1x1x8x128xf32> to vector<8x128xf32>
      %1028 = arith.maximumf %1025, %1027 : vector<8x128xf32>
      %c3_1259 = arith.constant 3 : index
      %c7_1260 = arith.constant 7 : index
      %c0_1261 = arith.constant 0 : index
      %c0_1262 = arith.constant 0 : index
      %1029 = vector.load %arg6[%c3_1259, %c7_1260, %c0_1261, %c0_1262] : memref<8x8x8x128xf32, #tpu.memory_space<vmem>>, vector<1x1x8x128xf32>
      %1030 = vector.shape_cast %1029 : vector<1x1x8x128xf32> to vector<8x128xf32>
      %1031 = arith.maximumf %1028, %1030 : vector<8x128xf32>
      %c1_1263 = arith.constant 1 : index
      %c3_1264 = arith.constant 3 : index
      %c0_1265 = arith.constant 0 : index
      %c0_1266 = arith.constant 0 : index
      %1032 = vector.load %arg7[%c1_1263, %c3_1264, %c0_1265, %c0_1266] : memref<4x4x8x128xf32, #tpu.memory_space<vmem>>, vector<1x1x8x128xf32>
      %1033 = vector.shape_cast %1032 : vector<1x1x8x128xf32> to vector<8x128xf32>
      %1034 = vector.shape_cast %1031 : vector<8x128xf32> to vector<1x1x8x128xf32>
      tpu.vector_store %arg7[%c1_1263, %c3_1264, %c0_1265, %c0_1266], %1034 {strides = array<i32>} : memref<4x4x8x128xf32, #tpu.memory_space<vmem>>, vector<1x1x8x128xf32>,
      %c3_1267 = arith.constant 3 : index
      %c0_1268 = arith.constant 0 : index
      %c0_1269 = arith.constant 0 : index
      %c0_1270 = arith.constant 0 : index
      %1035 = vector.load %arg6[%c3_1267, %c0_1268, %c0_1269, %c0_1270] : memref<8x8x8x128xf32, #tpu.memory_space<vmem>>, vector<1x1x8x128xf32>
      %1036 = vector.shape_cast %1035 : vector<1x1x8x128xf32> to vector<8x128xf32>
      %c3_1271 = arith.constant 3 : index
      %c1_1272 = arith.constant 1 : index
      %c0_1273 = arith.constant 0 : index
      %c0_1274 = arith.constant 0 : index
      %1037 = vector.load %arg6[%c3_1271, %c1_1272, %c0_1273, %c0_1274] : memref<8x8x8x128xf32, #tpu.memory_space<vmem>>, vector<1x1x8x128xf32>
      %1038 = vector.shape_cast %1037 : vector<1x1x8x128xf32> to vector<8x128xf32>
      %1039 = arith.maximumf %1036, %1038 : vector<8x128xf32>
      %c4_1275 = arith.constant 4 : index
      %c0_1276 = arith.constant 0 : index
      %c0_1277 = arith.constant 0 : index
      %c0_1278 = arith.constant 0 : index
      %1040 = vector.load %arg6[%c4_1275, %c0_1276, %c0_1277, %c0_1278] : memref<8x8x8x128xf32, #tpu.memory_space<vmem>>, vector<1x1x8x128xf32>
      %1041 = vector.shape_cast %1040 : vector<1x1x8x128xf32> to vector<8x128xf32>
      %1042 = arith.maximumf %1039, %1041 : vector<8x128xf32>
      %c4_1279 = arith.constant 4 : index
      %c1_1280 = arith.constant 1 : index
      %c0_1281 = arith.constant 0 : index
      %c0_1282 = arith.constant 0 : index
      %1043 = vector.load %arg6[%c4_1279, %c1_1280, %c0_1281, %c0_1282] : memref<8x8x8x128xf32, #tpu.memory_space<vmem>>, vector<1x1x8x128xf32>
      %1044 = vector.shape_cast %1043 : vector<1x1x8x128xf32> to vector<8x128xf32>
      %1045 = arith.maximumf %1042, %1044 : vector<8x128xf32>
      %c5_1283 = arith.constant 5 : index
      %c0_1284 = arith.constant 0 : index
      %c0_1285 = arith.constant 0 : index
      %c0_1286 = arith.constant 0 : index
      %1046 = vector.load %arg6[%c5_1283, %c0_1284, %c0_1285, %c0_1286] : memref<8x8x8x128xf32, #tpu.memory_space<vmem>>, vector<1x1x8x128xf32>
      %1047 = vector.shape_cast %1046 : vector<1x1x8x128xf32> to vector<8x128xf32>
      %1048 = arith.maximumf %1045, %1047 : vector<8x128xf32>
      %c5_1287 = arith.constant 5 : index
      %c1_1288 = arith.constant 1 : index
      %c0_1289 = arith.constant 0 : index
      %c0_1290 = arith.constant 0 : index
      %1049 = vector.load %arg6[%c5_1287, %c1_1288, %c0_1289, %c0_1290] : memref<8x8x8x128xf32, #tpu.memory_space<vmem>>, vector<1x1x8x128xf32>
      %1050 = vector.shape_cast %1049 : vector<1x1x8x128xf32> to vector<8x128xf32>
      %1051 = arith.maximumf %1048, %1050 : vector<8x128xf32>
      %c2_1291 = arith.constant 2 : index
      %c0_1292 = arith.constant 0 : index
      %c0_1293 = arith.constant 0 : index
      %c0_1294 = arith.constant 0 : index
      %1052 = vector.load %arg7[%c2_1291, %c0_1292, %c0_1293, %c0_1294] : memref<4x4x8x128xf32, #tpu.memory_space<vmem>>, vector<1x1x8x128xf32>
      %1053 = vector.shape_cast %1052 : vector<1x1x8x128xf32> to vector<8x128xf32>
      %1054 = vector.shape_cast %1051 : vector<8x128xf32> to vector<1x1x8x128xf32>
      tpu.vector_store %arg7[%c2_1291, %c0_1292, %c0_1293, %c0_1294], %1054 {strides = array<i32>} : memref<4x4x8x128xf32, #tpu.memory_space<vmem>>, vector<1x1x8x128xf32>,
      %c3_1295 = arith.constant 3 : index
      %c1_1296 = arith.constant 1 : index
      %c0_1297 = arith.constant 0 : index
      %c0_1298 = arith.constant 0 : index
      %1055 = vector.load %arg6[%c3_1295, %c1_1296, %c0_1297, %c0_1298] : memref<8x8x8x128xf32, #tpu.memory_space<vmem>>, vector<1x1x8x128xf32>
      %1056 = vector.shape_cast %1055 : vector<1x1x8x128xf32> to vector<8x128xf32>
      %c3_1299 = arith.constant 3 : index
      %c2_1300 = arith.constant 2 : index
      %c0_1301 = arith.constant 0 : index
      %c0_1302 = arith.constant 0 : index
      %1057 = vector.load %arg6[%c3_1299, %c2_1300, %c0_1301, %c0_1302] : memref<8x8x8x128xf32, #tpu.memory_space<vmem>>, vector<1x1x8x128xf32>
      %1058 = vector.shape_cast %1057 : vector<1x1x8x128xf32> to vector<8x128xf32>
      %1059 = arith.maximumf %1056, %1058 : vector<8x128xf32>
      %c3_1303 = arith.constant 3 : index
      %c3_1304 = arith.constant 3 : index
      %c0_1305 = arith.constant 0 : index
      %c0_1306 = arith.constant 0 : index
      %1060 = vector.load %arg6[%c3_1303, %c3_1304, %c0_1305, %c0_1306] : memref<8x8x8x128xf32, #tpu.memory_space<vmem>>, vector<1x1x8x128xf32>
      %1061 = vector.shape_cast %1060 : vector<1x1x8x128xf32> to vector<8x128xf32>
      %1062 = arith.maximumf %1059, %1061 : vector<8x128xf32>
      %c4_1307 = arith.constant 4 : index
      %c1_1308 = arith.constant 1 : index
      %c0_1309 = arith.constant 0 : index
      %c0_1310 = arith.constant 0 : index
      %1063 = vector.load %arg6[%c4_1307, %c1_1308, %c0_1309, %c0_1310] : memref<8x8x8x128xf32, #tpu.memory_space<vmem>>, vector<1x1x8x128xf32>
      %1064 = vector.shape_cast %1063 : vector<1x1x8x128xf32> to vector<8x128xf32>
      %1065 = arith.maximumf %1062, %1064 : vector<8x128xf32>
      %c4_1311 = arith.constant 4 : index
      %c2_1312 = arith.constant 2 : index
      %c0_1313 = arith.constant 0 : index
      %c0_1314 = arith.constant 0 : index
      %1066 = vector.load %arg6[%c4_1311, %c2_1312, %c0_1313, %c0_1314] : memref<8x8x8x128xf32, #tpu.memory_space<vmem>>, vector<1x1x8x128xf32>
      %1067 = vector.shape_cast %1066 : vector<1x1x8x128xf32> to vector<8x128xf32>
      %1068 = arith.maximumf %1065, %1067 : vector<8x128xf32>
      %c4_1315 = arith.constant 4 : index
      %c3_1316 = arith.constant 3 : index
      %c0_1317 = arith.constant 0 : index
      %c0_1318 = arith.constant 0 : index
      %1069 = vector.load %arg6[%c4_1315, %c3_1316, %c0_1317, %c0_1318] : memref<8x8x8x128xf32, #tpu.memory_space<vmem>>, vector<1x1x8x128xf32>
      %1070 = vector.shape_cast %1069 : vector<1x1x8x128xf32> to vector<8x128xf32>
      %1071 = arith.maximumf %1068, %1070 : vector<8x128xf32>
      %c5_1319 = arith.constant 5 : index
      %c1_1320 = arith.constant 1 : index
      %c0_1321 = arith.constant 0 : index
      %c0_1322 = arith.constant 0 : index
      %1072 = vector.load %arg6[%c5_1319, %c1_1320, %c0_1321, %c0_1322] : memref<8x8x8x128xf32, #tpu.memory_space<vmem>>, vector<1x1x8x128xf32>
      %1073 = vector.shape_cast %1072 : vector<1x1x8x128xf32> to vector<8x128xf32>
      %1074 = arith.maximumf %1071, %1073 : vector<8x128xf32>
      %c5_1323 = arith.constant 5 : index
      %c2_1324 = arith.constant 2 : index
      %c0_1325 = arith.constant 0 : index
      %c0_1326 = arith.constant 0 : index
      %1075 = vector.load %arg6[%c5_1323, %c2_1324, %c0_1325, %c0_1326] : memref<8x8x8x128xf32, #tpu.memory_space<vmem>>, vector<1x1x8x128xf32>
      %1076 = vector.shape_cast %1075 : vector<1x1x8x128xf32> to vector<8x128xf32>
      %1077 = arith.maximumf %1074, %1076 : vector<8x128xf32>
      %c5_1327 = arith.constant 5 : index
      %c3_1328 = arith.constant 3 : index
      %c0_1329 = arith.constant 0 : index
      %c0_1330 = arith.constant 0 : index
      %1078 = vector.load %arg6[%c5_1327, %c3_1328, %c0_1329, %c0_1330] : memref<8x8x8x128xf32, #tpu.memory_space<vmem>>, vector<1x1x8x128xf32>
      %1079 = vector.shape_cast %1078 : vector<1x1x8x128xf32> to vector<8x128xf32>
      %1080 = arith.maximumf %1077, %1079 : vector<8x128xf32>
      %c2_1331 = arith.constant 2 : index
      %c1_1332 = arith.constant 1 : index
      %c0_1333 = arith.constant 0 : index
      %c0_1334 = arith.constant 0 : index
      %1081 = vector.load %arg7[%c2_1331, %c1_1332, %c0_1333, %c0_1334] : memref<4x4x8x128xf32, #tpu.memory_space<vmem>>, vector<1x1x8x128xf32>
      %1082 = vector.shape_cast %1081 : vector<1x1x8x128xf32> to vector<8x128xf32>
      %1083 = vector.shape_cast %1080 : vector<8x128xf32> to vector<1x1x8x128xf32>
      tpu.vector_store %arg7[%c2_1331, %c1_1332, %c0_1333, %c0_1334], %1083 {strides = array<i32>} : memref<4x4x8x128xf32, #tpu.memory_space<vmem>>, vector<1x1x8x128xf32>,
      %c3_1335 = arith.constant 3 : index
      %c3_1336 = arith.constant 3 : index
      %c0_1337 = arith.constant 0 : index
      %c0_1338 = arith.constant 0 : index
      %1084 = vector.load %arg6[%c3_1335, %c3_1336, %c0_1337, %c0_1338] : memref<8x8x8x128xf32, #tpu.memory_space<vmem>>, vector<1x1x8x128xf32>
      %1085 = vector.shape_cast %1084 : vector<1x1x8x128xf32> to vector<8x128xf32>
      %c3_1339 = arith.constant 3 : index
      %c4_1340 = arith.constant 4 : index
      %c0_1341 = arith.constant 0 : index
      %c0_1342 = arith.constant 0 : index
      %1086 = vector.load %arg6[%c3_1339, %c4_1340, %c0_1341, %c0_1342] : memref<8x8x8x128xf32, #tpu.memory_space<vmem>>, vector<1x1x8x128xf32>
      %1087 = vector.shape_cast %1086 : vector<1x1x8x128xf32> to vector<8x128xf32>
      %1088 = arith.maximumf %1085, %1087 : vector<8x128xf32>
      %c3_1343 = arith.constant 3 : index
      %c5_1344 = arith.constant 5 : index
      %c0_1345 = arith.constant 0 : index
      %c0_1346 = arith.constant 0 : index
      %1089 = vector.load %arg6[%c3_1343, %c5_1344, %c0_1345, %c0_1346] : memref<8x8x8x128xf32, #tpu.memory_space<vmem>>, vector<1x1x8x128xf32>
      %1090 = vector.shape_cast %1089 : vector<1x1x8x128xf32> to vector<8x128xf32>
      %1091 = arith.maximumf %1088, %1090 : vector<8x128xf32>
      %c4_1347 = arith.constant 4 : index
      %c3_1348 = arith.constant 3 : index
      %c0_1349 = arith.constant 0 : index
      %c0_1350 = arith.constant 0 : index
      %1092 = vector.load %arg6[%c4_1347, %c3_1348, %c0_1349, %c0_1350] : memref<8x8x8x128xf32, #tpu.memory_space<vmem>>, vector<1x1x8x128xf32>
      %1093 = vector.shape_cast %1092 : vector<1x1x8x128xf32> to vector<8x128xf32>
      %1094 = arith.maximumf %1091, %1093 : vector<8x128xf32>
      %c4_1351 = arith.constant 4 : index
      %c4_1352 = arith.constant 4 : index
      %c0_1353 = arith.constant 0 : index
      %c0_1354 = arith.constant 0 : index
      %1095 = vector.load %arg6[%c4_1351, %c4_1352, %c0_1353, %c0_1354] : memref<8x8x8x128xf32, #tpu.memory_space<vmem>>, vector<1x1x8x128xf32>
      %1096 = vector.shape_cast %1095 : vector<1x1x8x128xf32> to vector<8x128xf32>
      %1097 = arith.maximumf %1094, %1096 : vector<8x128xf32>
      %c4_1355 = arith.constant 4 : index
      %c5_1356 = arith.constant 5 : index
      %c0_1357 = arith.constant 0 : index
      %c0_1358 = arith.constant 0 : index
      %1098 = vector.load %arg6[%c4_1355, %c5_1356, %c0_1357, %c0_1358] : memref<8x8x8x128xf32, #tpu.memory_space<vmem>>, vector<1x1x8x128xf32>
      %1099 = vector.shape_cast %1098 : vector<1x1x8x128xf32> to vector<8x128xf32>
      %1100 = arith.maximumf %1097, %1099 : vector<8x128xf32>
      %c5_1359 = arith.constant 5 : index
      %c3_1360 = arith.constant 3 : index
      %c0_1361 = arith.constant 0 : index
      %c0_1362 = arith.constant 0 : index
      %1101 = vector.load %arg6[%c5_1359, %c3_1360, %c0_1361, %c0_1362] : memref<8x8x8x128xf32, #tpu.memory_space<vmem>>, vector<1x1x8x128xf32>
      %1102 = vector.shape_cast %1101 : vector<1x1x8x128xf32> to vector<8x128xf32>
      %1103 = arith.maximumf %1100, %1102 : vector<8x128xf32>
      %c5_1363 = arith.constant 5 : index
      %c4_1364 = arith.constant 4 : index
      %c0_1365 = arith.constant 0 : index
      %c0_1366 = arith.constant 0 : index
      %1104 = vector.load %arg6[%c5_1363, %c4_1364, %c0_1365, %c0_1366] : memref<8x8x8x128xf32, #tpu.memory_space<vmem>>, vector<1x1x8x128xf32>
      %1105 = vector.shape_cast %1104 : vector<1x1x8x128xf32> to vector<8x128xf32>
      %1106 = arith.maximumf %1103, %1105 : vector<8x128xf32>
      %c5_1367 = arith.constant 5 : index
      %c5_1368 = arith.constant 5 : index
      %c0_1369 = arith.constant 0 : index
      %c0_1370 = arith.constant 0 : index
      %1107 = vector.load %arg6[%c5_1367, %c5_1368, %c0_1369, %c0_1370] : memref<8x8x8x128xf32, #tpu.memory_space<vmem>>, vector<1x1x8x128xf32>
      %1108 = vector.shape_cast %1107 : vector<1x1x8x128xf32> to vector<8x128xf32>
      %1109 = arith.maximumf %1106, %1108 : vector<8x128xf32>
      %c2_1371 = arith.constant 2 : index
      %c2_1372 = arith.constant 2 : index
      %c0_1373 = arith.constant 0 : index
      %c0_1374 = arith.constant 0 : index
      %1110 = vector.load %arg7[%c2_1371, %c2_1372, %c0_1373, %c0_1374] : memref<4x4x8x128xf32, #tpu.memory_space<vmem>>, vector<1x1x8x128xf32>
      %1111 = vector.shape_cast %1110 : vector<1x1x8x128xf32> to vector<8x128xf32>
      %1112 = vector.shape_cast %1109 : vector<8x128xf32> to vector<1x1x8x128xf32>
      tpu.vector_store %arg7[%c2_1371, %c2_1372, %c0_1373, %c0_1374], %1112 {strides = array<i32>} : memref<4x4x8x128xf32, #tpu.memory_space<vmem>>, vector<1x1x8x128xf32>,
      %c3_1375 = arith.constant 3 : index
      %c5_1376 = arith.constant 5 : index
      %c0_1377 = arith.constant 0 : index
      %c0_1378 = arith.constant 0 : index
      %1113 = vector.load %arg6[%c3_1375, %c5_1376, %c0_1377, %c0_1378] : memref<8x8x8x128xf32, #tpu.memory_space<vmem>>, vector<1x1x8x128xf32>
      %1114 = vector.shape_cast %1113 : vector<1x1x8x128xf32> to vector<8x128xf32>
      %c3_1379 = arith.constant 3 : index
      %c6_1380 = arith.constant 6 : index
      %c0_1381 = arith.constant 0 : index
      %c0_1382 = arith.constant 0 : index
      %1115 = vector.load %arg6[%c3_1379, %c6_1380, %c0_1381, %c0_1382] : memref<8x8x8x128xf32, #tpu.memory_space<vmem>>, vector<1x1x8x128xf32>
      %1116 = vector.shape_cast %1115 : vector<1x1x8x128xf32> to vector<8x128xf32>
      %1117 = arith.maximumf %1114, %1116 : vector<8x128xf32>
      %c3_1383 = arith.constant 3 : index
      %c7_1384 = arith.constant 7 : index
      %c0_1385 = arith.constant 0 : index
      %c0_1386 = arith.constant 0 : index
      %1118 = vector.load %arg6[%c3_1383, %c7_1384, %c0_1385, %c0_1386] : memref<8x8x8x128xf32, #tpu.memory_space<vmem>>, vector<1x1x8x128xf32>
      %1119 = vector.shape_cast %1118 : vector<1x1x8x128xf32> to vector<8x128xf32>
      %1120 = arith.maximumf %1117, %1119 : vector<8x128xf32>
      %c4_1387 = arith.constant 4 : index
      %c5_1388 = arith.constant 5 : index
      %c0_1389 = arith.constant 0 : index
      %c0_1390 = arith.constant 0 : index
      %1121 = vector.load %arg6[%c4_1387, %c5_1388, %c0_1389, %c0_1390] : memref<8x8x8x128xf32, #tpu.memory_space<vmem>>, vector<1x1x8x128xf32>
      %1122 = vector.shape_cast %1121 : vector<1x1x8x128xf32> to vector<8x128xf32>
      %1123 = arith.maximumf %1120, %1122 : vector<8x128xf32>
      %c4_1391 = arith.constant 4 : index
      %c6_1392 = arith.constant 6 : index
      %c0_1393 = arith.constant 0 : index
      %c0_1394 = arith.constant 0 : index
      %1124 = vector.load %arg6[%c4_1391, %c6_1392, %c0_1393, %c0_1394] : memref<8x8x8x128xf32, #tpu.memory_space<vmem>>, vector<1x1x8x128xf32>
      %1125 = vector.shape_cast %1124 : vector<1x1x8x128xf32> to vector<8x128xf32>
      %1126 = arith.maximumf %1123, %1125 : vector<8x128xf32>
      %c4_1395 = arith.constant 4 : index
      %c7_1396 = arith.constant 7 : index
      %c0_1397 = arith.constant 0 : index
      %c0_1398 = arith.constant 0 : index
      %1127 = vector.load %arg6[%c4_1395, %c7_1396, %c0_1397, %c0_1398] : memref<8x8x8x128xf32, #tpu.memory_space<vmem>>, vector<1x1x8x128xf32>
      %1128 = vector.shape_cast %1127 : vector<1x1x8x128xf32> to vector<8x128xf32>
      %1129 = arith.maximumf %1126, %1128 : vector<8x128xf32>
      %c5_1399 = arith.constant 5 : index
      %c5_1400 = arith.constant 5 : index
      %c0_1401 = arith.constant 0 : index
      %c0_1402 = arith.constant 0 : index
      %1130 = vector.load %arg6[%c5_1399, %c5_1400, %c0_1401, %c0_1402] : memref<8x8x8x128xf32, #tpu.memory_space<vmem>>, vector<1x1x8x128xf32>
      %1131 = vector.shape_cast %1130 : vector<1x1x8x128xf32> to vector<8x128xf32>
      %1132 = arith.maximumf %1129, %1131 : vector<8x128xf32>
      %c5_1403 = arith.constant 5 : index
      %c6_1404 = arith.constant 6 : index
      %c0_1405 = arith.constant 0 : index
      %c0_1406 = arith.constant 0 : index
      %1133 = vector.load %arg6[%c5_1403, %c6_1404, %c0_1405, %c0_1406] : memref<8x8x8x128xf32, #tpu.memory_space<vmem>>, vector<1x1x8x128xf32>
      %1134 = vector.shape_cast %1133 : vector<1x1x8x128xf32> to vector<8x128xf32>
      %1135 = arith.maximumf %1132, %1134 : vector<8x128xf32>
      %c5_1407 = arith.constant 5 : index
      %c7_1408 = arith.constant 7 : index
      %c0_1409 = arith.constant 0 : index
      %c0_1410 = arith.constant 0 : index
      %1136 = vector.load %arg6[%c5_1407, %c7_1408, %c0_1409, %c0_1410] : memref<8x8x8x128xf32, #tpu.memory_space<vmem>>, vector<1x1x8x128xf32>
      %1137 = vector.shape_cast %1136 : vector<1x1x8x128xf32> to vector<8x128xf32>
      %1138 = arith.maximumf %1135, %1137 : vector<8x128xf32>
      %c2_1411 = arith.constant 2 : index
      %c3_1412 = arith.constant 3 : index
      %c0_1413 = arith.constant 0 : index
      %c0_1414 = arith.constant 0 : index
      %1139 = vector.load %arg7[%c2_1411, %c3_1412, %c0_1413, %c0_1414] : memref<4x4x8x128xf32, #tpu.memory_space<vmem>>, vector<1x1x8x128xf32>
      %1140 = vector.shape_cast %1139 : vector<1x1x8x128xf32> to vector<8x128xf32>
      %1141 = vector.shape_cast %1138 : vector<8x128xf32> to vector<1x1x8x128xf32>
      tpu.vector_store %arg7[%c2_1411, %c3_1412, %c0_1413, %c0_1414], %1141 {strides = array<i32>} : memref<4x4x8x128xf32, #tpu.memory_space<vmem>>, vector<1x1x8x128xf32>,
      %c5_1415 = arith.constant 5 : index
      %c0_1416 = arith.constant 0 : index
      %c0_1417 = arith.constant 0 : index
      %c0_1418 = arith.constant 0 : index
      %1142 = vector.load %arg6[%c5_1415, %c0_1416, %c0_1417, %c0_1418] : memref<8x8x8x128xf32, #tpu.memory_space<vmem>>, vector<1x1x8x128xf32>
      %1143 = vector.shape_cast %1142 : vector<1x1x8x128xf32> to vector<8x128xf32>
      %c5_1419 = arith.constant 5 : index
      %c1_1420 = arith.constant 1 : index
      %c0_1421 = arith.constant 0 : index
      %c0_1422 = arith.constant 0 : index
      %1144 = vector.load %arg6[%c5_1419, %c1_1420, %c0_1421, %c0_1422] : memref<8x8x8x128xf32, #tpu.memory_space<vmem>>, vector<1x1x8x128xf32>
      %1145 = vector.shape_cast %1144 : vector<1x1x8x128xf32> to vector<8x128xf32>
      %1146 = arith.maximumf %1143, %1145 : vector<8x128xf32>
      %c6_1423 = arith.constant 6 : index
      %c0_1424 = arith.constant 0 : index
      %c0_1425 = arith.constant 0 : index
      %c0_1426 = arith.constant 0 : index
      %1147 = vector.load %arg6[%c6_1423, %c0_1424, %c0_1425, %c0_1426] : memref<8x8x8x128xf32, #tpu.memory_space<vmem>>, vector<1x1x8x128xf32>
      %1148 = vector.shape_cast %1147 : vector<1x1x8x128xf32> to vector<8x128xf32>
      %1149 = arith.maximumf %1146, %1148 : vector<8x128xf32>
      %c6_1427 = arith.constant 6 : index
      %c1_1428 = arith.constant 1 : index
      %c0_1429 = arith.constant 0 : index
      %c0_1430 = arith.constant 0 : index
      %1150 = vector.load %arg6[%c6_1427, %c1_1428, %c0_1429, %c0_1430] : memref<8x8x8x128xf32, #tpu.memory_space<vmem>>, vector<1x1x8x128xf32>
      %1151 = vector.shape_cast %1150 : vector<1x1x8x128xf32> to vector<8x128xf32>
      %1152 = arith.maximumf %1149, %1151 : vector<8x128xf32>
      %c7_1431 = arith.constant 7 : index
      %c0_1432 = arith.constant 0 : index
      %c0_1433 = arith.constant 0 : index
      %c0_1434 = arith.constant 0 : index
      %1153 = vector.load %arg6[%c7_1431, %c0_1432, %c0_1433, %c0_1434] : memref<8x8x8x128xf32, #tpu.memory_space<vmem>>, vector<1x1x8x128xf32>
      %1154 = vector.shape_cast %1153 : vector<1x1x8x128xf32> to vector<8x128xf32>
      %1155 = arith.maximumf %1152, %1154 : vector<8x128xf32>
      %c7_1435 = arith.constant 7 : index
      %c1_1436 = arith.constant 1 : index
      %c0_1437 = arith.constant 0 : index
      %c0_1438 = arith.constant 0 : index
      %1156 = vector.load %arg6[%c7_1435, %c1_1436, %c0_1437, %c0_1438] : memref<8x8x8x128xf32, #tpu.memory_space<vmem>>, vector<1x1x8x128xf32>
      %1157 = vector.shape_cast %1156 : vector<1x1x8x128xf32> to vector<8x128xf32>
      %1158 = arith.maximumf %1155, %1157 : vector<8x128xf32>
      %c3_1439 = arith.constant 3 : index
      %c0_1440 = arith.constant 0 : index
      %c0_1441 = arith.constant 0 : index
      %c0_1442 = arith.constant 0 : index
      %1159 = vector.load %arg7[%c3_1439, %c0_1440, %c0_1441, %c0_1442] : memref<4x4x8x128xf32, #tpu.memory_space<vmem>>, vector<1x1x8x128xf32>
      %1160 = vector.shape_cast %1159 : vector<1x1x8x128xf32> to vector<8x128xf32>
      %1161 = vector.shape_cast %1158 : vector<8x128xf32> to vector<1x1x8x128xf32>
      tpu.vector_store %arg7[%c3_1439, %c0_1440, %c0_1441, %c0_1442], %1161 {strides = array<i32>} : memref<4x4x8x128xf32, #tpu.memory_space<vmem>>, vector<1x1x8x128xf32>,
      %c5_1443 = arith.constant 5 : index
      %c1_1444 = arith.constant 1 : index
      %c0_1445 = arith.constant 0 : index
      %c0_1446 = arith.constant 0 : index
      %1162 = vector.load %arg6[%c5_1443, %c1_1444, %c0_1445, %c0_1446] : memref<8x8x8x128xf32, #tpu.memory_space<vmem>>, vector<1x1x8x128xf32>
      %1163 = vector.shape_cast %1162 : vector<1x1x8x128xf32> to vector<8x128xf32>
      %c5_1447 = arith.constant 5 : index
      %c2_1448 = arith.constant 2 : index
      %c0_1449 = arith.constant 0 : index
      %c0_1450 = arith.constant 0 : index
      %1164 = vector.load %arg6[%c5_1447, %c2_1448, %c0_1449, %c0_1450] : memref<8x8x8x128xf32, #tpu.memory_space<vmem>>, vector<1x1x8x128xf32>
      %1165 = vector.shape_cast %1164 : vector<1x1x8x128xf32> to vector<8x128xf32>
      %1166 = arith.maximumf %1163, %1165 : vector<8x128xf32>
      %c5_1451 = arith.constant 5 : index
      %c3_1452 = arith.constant 3 : index
      %c0_1453 = arith.constant 0 : index
      %c0_1454 = arith.constant 0 : index
      %1167 = vector.load %arg6[%c5_1451, %c3_1452, %c0_1453, %c0_1454] : memref<8x8x8x128xf32, #tpu.memory_space<vmem>>, vector<1x1x8x128xf32>
      %1168 = vector.shape_cast %1167 : vector<1x1x8x128xf32> to vector<8x128xf32>
      %1169 = arith.maximumf %1166, %1168 : vector<8x128xf32>
      %c6_1455 = arith.constant 6 : index
      %c1_1456 = arith.constant 1 : index
      %c0_1457 = arith.constant 0 : index
      %c0_1458 = arith.constant 0 : index
      %1170 = vector.load %arg6[%c6_1455, %c1_1456, %c0_1457, %c0_1458] : memref<8x8x8x128xf32, #tpu.memory_space<vmem>>, vector<1x1x8x128xf32>
      %1171 = vector.shape_cast %1170 : vector<1x1x8x128xf32> to vector<8x128xf32>
      %1172 = arith.maximumf %1169, %1171 : vector<8x128xf32>
      %c6_1459 = arith.constant 6 : index
      %c2_1460 = arith.constant 2 : index
      %c0_1461 = arith.constant 0 : index
      %c0_1462 = arith.constant 0 : index
      %1173 = vector.load %arg6[%c6_1459, %c2_1460, %c0_1461, %c0_1462] : memref<8x8x8x128xf32, #tpu.memory_space<vmem>>, vector<1x1x8x128xf32>
      %1174 = vector.shape_cast %1173 : vector<1x1x8x128xf32> to vector<8x128xf32>
      %1175 = arith.maximumf %1172, %1174 : vector<8x128xf32>
      %c6_1463 = arith.constant 6 : index
      %c3_1464 = arith.constant 3 : index
      %c0_1465 = arith.constant 0 : index
      %c0_1466 = arith.constant 0 : index
      %1176 = vector.load %arg6[%c6_1463, %c3_1464, %c0_1465, %c0_1466] : memref<8x8x8x128xf32, #tpu.memory_space<vmem>>, vector<1x1x8x128xf32>
      %1177 = vector.shape_cast %1176 : vector<1x1x8x128xf32> to vector<8x128xf32>
      %1178 = arith.maximumf %1175, %1177 : vector<8x128xf32>
      %c7_1467 = arith.constant 7 : index
      %c1_1468 = arith.constant 1 : index
      %c0_1469 = arith.constant 0 : index
      %c0_1470 = arith.constant 0 : index
      %1179 = vector.load %arg6[%c7_1467, %c1_1468, %c0_1469, %c0_1470] : memref<8x8x8x128xf32, #tpu.memory_space<vmem>>, vector<1x1x8x128xf32>
      %1180 = vector.shape_cast %1179 : vector<1x1x8x128xf32> to vector<8x128xf32>
      %1181 = arith.maximumf %1178, %1180 : vector<8x128xf32>
      %c7_1471 = arith.constant 7 : index
      %c2_1472 = arith.constant 2 : index
      %c0_1473 = arith.constant 0 : index
      %c0_1474 = arith.constant 0 : index
      %1182 = vector.load %arg6[%c7_1471, %c2_1472, %c0_1473, %c0_1474] : memref<8x8x8x128xf32, #tpu.memory_space<vmem>>, vector<1x1x8x128xf32>
      %1183 = vector.shape_cast %1182 : vector<1x1x8x128xf32> to vector<8x128xf32>
      %1184 = arith.maximumf %1181, %1183 : vector<8x128xf32>
      %c7_1475 = arith.constant 7 : index
      %c3_1476 = arith.constant 3 : index
      %c0_1477 = arith.constant 0 : index
      %c0_1478 = arith.constant 0 : index
      %1185 = vector.load %arg6[%c7_1475, %c3_1476, %c0_1477, %c0_1478] : memref<8x8x8x128xf32, #tpu.memory_space<vmem>>, vector<1x1x8x128xf32>
      %1186 = vector.shape_cast %1185 : vector<1x1x8x128xf32> to vector<8x128xf32>
      %1187 = arith.maximumf %1184, %1186 : vector<8x128xf32>
      %c3_1479 = arith.constant 3 : index
      %c1_1480 = arith.constant 1 : index
      %c0_1481 = arith.constant 0 : index
      %c0_1482 = arith.constant 0 : index
      %1188 = vector.load %arg7[%c3_1479, %c1_1480, %c0_1481, %c0_1482] : memref<4x4x8x128xf32, #tpu.memory_space<vmem>>, vector<1x1x8x128xf32>
      %1189 = vector.shape_cast %1188 : vector<1x1x8x128xf32> to vector<8x128xf32>
      %1190 = vector.shape_cast %1187 : vector<8x128xf32> to vector<1x1x8x128xf32>
      tpu.vector_store %arg7[%c3_1479, %c1_1480, %c0_1481, %c0_1482], %1190 {strides = array<i32>} : memref<4x4x8x128xf32, #tpu.memory_space<vmem>>, vector<1x1x8x128xf32>,
      %c5_1483 = arith.constant 5 : index
      %c3_1484 = arith.constant 3 : index
      %c0_1485 = arith.constant 0 : index
      %c0_1486 = arith.constant 0 : index
      %1191 = vector.load %arg6[%c5_1483, %c3_1484, %c0_1485, %c0_1486] : memref<8x8x8x128xf32, #tpu.memory_space<vmem>>, vector<1x1x8x128xf32>
      %1192 = vector.shape_cast %1191 : vector<1x1x8x128xf32> to vector<8x128xf32>
      %c5_1487 = arith.constant 5 : index
      %c4_1488 = arith.constant 4 : index
      %c0_1489 = arith.constant 0 : index
      %c0_1490 = arith.constant 0 : index
      %1193 = vector.load %arg6[%c5_1487, %c4_1488, %c0_1489, %c0_1490] : memref<8x8x8x128xf32, #tpu.memory_space<vmem>>, vector<1x1x8x128xf32>
      %1194 = vector.shape_cast %1193 : vector<1x1x8x128xf32> to vector<8x128xf32>
      %1195 = arith.maximumf %1192, %1194 : vector<8x128xf32>
      %c5_1491 = arith.constant 5 : index
      %c5_1492 = arith.constant 5 : index
      %c0_1493 = arith.constant 0 : index
      %c0_1494 = arith.constant 0 : index
      %1196 = vector.load %arg6[%c5_1491, %c5_1492, %c0_1493, %c0_1494] : memref<8x8x8x128xf32, #tpu.memory_space<vmem>>, vector<1x1x8x128xf32>
      %1197 = vector.shape_cast %1196 : vector<1x1x8x128xf32> to vector<8x128xf32>
      %1198 = arith.maximumf %1195, %1197 : vector<8x128xf32>
      %c6_1495 = arith.constant 6 : index
      %c3_1496 = arith.constant 3 : index
      %c0_1497 = arith.constant 0 : index
      %c0_1498 = arith.constant 0 : index
      %1199 = vector.load %arg6[%c6_1495, %c3_1496, %c0_1497, %c0_1498] : memref<8x8x8x128xf32, #tpu.memory_space<vmem>>, vector<1x1x8x128xf32>
      %1200 = vector.shape_cast %1199 : vector<1x1x8x128xf32> to vector<8x128xf32>
      %1201 = arith.maximumf %1198, %1200 : vector<8x128xf32>
      %c6_1499 = arith.constant 6 : index
      %c4_1500 = arith.constant 4 : index
      %c0_1501 = arith.constant 0 : index
      %c0_1502 = arith.constant 0 : index
      %1202 = vector.load %arg6[%c6_1499, %c4_1500, %c0_1501, %c0_1502] : memref<8x8x8x128xf32, #tpu.memory_space<vmem>>, vector<1x1x8x128xf32>
      %1203 = vector.shape_cast %1202 : vector<1x1x8x128xf32> to vector<8x128xf32>
      %1204 = arith.maximumf %1201, %1203 : vector<8x128xf32>
      %c6_1503 = arith.constant 6 : index
      %c5_1504 = arith.constant 5 : index
      %c0_1505 = arith.constant 0 : index
      %c0_1506 = arith.constant 0 : index
      %1205 = vector.load %arg6[%c6_1503, %c5_1504, %c0_1505, %c0_1506] : memref<8x8x8x128xf32, #tpu.memory_space<vmem>>, vector<1x1x8x128xf32>
      %1206 = vector.shape_cast %1205 : vector<1x1x8x128xf32> to vector<8x128xf32>
      %1207 = arith.maximumf %1204, %1206 : vector<8x128xf32>
      %c7_1507 = arith.constant 7 : index
      %c3_1508 = arith.constant 3 : index
      %c0_1509 = arith.constant 0 : index
      %c0_1510 = arith.constant 0 : index
      %1208 = vector.load %arg6[%c7_1507, %c3_1508, %c0_1509, %c0_1510] : memref<8x8x8x128xf32, #tpu.memory_space<vmem>>, vector<1x1x8x128xf32>
      %1209 = vector.shape_cast %1208 : vector<1x1x8x128xf32> to vector<8x128xf32>
      %1210 = arith.maximumf %1207, %1209 : vector<8x128xf32>
      %c7_1511 = arith.constant 7 : index
      %c4_1512 = arith.constant 4 : index
      %c0_1513 = arith.constant 0 : index
      %c0_1514 = arith.constant 0 : index
      %1211 = vector.load %arg6[%c7_1511, %c4_1512, %c0_1513, %c0_1514] : memref<8x8x8x128xf32, #tpu.memory_space<vmem>>, vector<1x1x8x128xf32>
      %1212 = vector.shape_cast %1211 : vector<1x1x8x128xf32> to vector<8x128xf32>
      %1213 = arith.maximumf %1210, %1212 : vector<8x128xf32>
      %c7_1515 = arith.constant 7 : index
      %c5_1516 = arith.constant 5 : index
      %c0_1517 = arith.constant 0 : index
      %c0_1518 = arith.constant 0 : index
      %1214 = vector.load %arg6[%c7_1515, %c5_1516, %c0_1517, %c0_1518] : memref<8x8x8x128xf32, #tpu.memory_space<vmem>>, vector<1x1x8x128xf32>
      %1215 = vector.shape_cast %1214 : vector<1x1x8x128xf32> to vector<8x128xf32>
      %1216 = arith.maximumf %1213, %1215 : vector<8x128xf32>
      %c3_1519 = arith.constant 3 : index
      %c2_1520 = arith.constant 2 : index
      %c0_1521 = arith.constant 0 : index
      %c0_1522 = arith.constant 0 : index
      %1217 = vector.load %arg7[%c3_1519, %c2_1520, %c0_1521, %c0_1522] : memref<4x4x8x128xf32, #tpu.memory_space<vmem>>, vector<1x1x8x128xf32>
      %1218 = vector.shape_cast %1217 : vector<1x1x8x128xf32> to vector<8x128xf32>
      %1219 = vector.shape_cast %1216 : vector<8x128xf32> to vector<1x1x8x128xf32>
      tpu.vector_store %arg7[%c3_1519, %c2_1520, %c0_1521, %c0_1522], %1219 {strides = array<i32>} : memref<4x4x8x128xf32, #tpu.memory_space<vmem>>, vector<1x1x8x128xf32>,
      %c5_1523 = arith.constant 5 : index
      %c5_1524 = arith.constant 5 : index
      %c0_1525 = arith.constant 0 : index
      %c0_1526 = arith.constant 0 : index
      %1220 = vector.load %arg6[%c5_1523, %c5_1524, %c0_1525, %c0_1526] : memref<8x8x8x128xf32, #tpu.memory_space<vmem>>, vector<1x1x8x128xf32>
      %1221 = vector.shape_cast %1220 : vector<1x1x8x128xf32> to vector<8x128xf32>
      %c5_1527 = arith.constant 5 : index
      %c6_1528 = arith.constant 6 : index
      %c0_1529 = arith.constant 0 : index
      %c0_1530 = arith.constant 0 : index
      %1222 = vector.load %arg6[%c5_1527, %c6_1528, %c0_1529, %c0_1530] : memref<8x8x8x128xf32, #tpu.memory_space<vmem>>, vector<1x1x8x128xf32>
      %1223 = vector.shape_cast %1222 : vector<1x1x8x128xf32> to vector<8x128xf32>
      %1224 = arith.maximumf %1221, %1223 : vector<8x128xf32>
      %c5_1531 = arith.constant 5 : index
      %c7_1532 = arith.constant 7 : index
      %c0_1533 = arith.constant 0 : index
      %c0_1534 = arith.constant 0 : index
      %1225 = vector.load %arg6[%c5_1531, %c7_1532, %c0_1533, %c0_1534] : memref<8x8x8x128xf32, #tpu.memory_space<vmem>>, vector<1x1x8x128xf32>
      %1226 = vector.shape_cast %1225 : vector<1x1x8x128xf32> to vector<8x128xf32>
      %1227 = arith.maximumf %1224, %1226 : vector<8x128xf32>
      %c6_1535 = arith.constant 6 : index
      %c5_1536 = arith.constant 5 : index
      %c0_1537 = arith.constant 0 : index
      %c0_1538 = arith.constant 0 : index
      %1228 = vector.load %arg6[%c6_1535, %c5_1536, %c0_1537, %c0_1538] : memref<8x8x8x128xf32, #tpu.memory_space<vmem>>, vector<1x1x8x128xf32>
      %1229 = vector.shape_cast %1228 : vector<1x1x8x128xf32> to vector<8x128xf32>
      %1230 = arith.maximumf %1227, %1229 : vector<8x128xf32>
      %c6_1539 = arith.constant 6 : index
      %c6_1540 = arith.constant 6 : index
      %c0_1541 = arith.constant 0 : index
      %c0_1542 = arith.constant 0 : index
      %1231 = vector.load %arg6[%c6_1539, %c6_1540, %c0_1541, %c0_1542] : memref<8x8x8x128xf32, #tpu.memory_space<vmem>>, vector<1x1x8x128xf32>
      %1232 = vector.shape_cast %1231 : vector<1x1x8x128xf32> to vector<8x128xf32>
      %1233 = arith.maximumf %1230, %1232 : vector<8x128xf32>
      %c6_1543 = arith.constant 6 : index
      %c7_1544 = arith.constant 7 : index
      %c0_1545 = arith.constant 0 : index
      %c0_1546 = arith.constant 0 : index
      %1234 = vector.load %arg6[%c6_1543, %c7_1544, %c0_1545, %c0_1546] : memref<8x8x8x128xf32, #tpu.memory_space<vmem>>, vector<1x1x8x128xf32>
      %1235 = vector.shape_cast %1234 : vector<1x1x8x128xf32> to vector<8x128xf32>
      %1236 = arith.maximumf %1233, %1235 : vector<8x128xf32>
      %c7_1547 = arith.constant 7 : index
      %c5_1548 = arith.constant 5 : index
      %c0_1549 = arith.constant 0 : index
      %c0_1550 = arith.constant 0 : index
      %1237 = vector.load %arg6[%c7_1547, %c5_1548, %c0_1549, %c0_1550] : memref<8x8x8x128xf32, #tpu.memory_space<vmem>>, vector<1x1x8x128xf32>
      %1238 = vector.shape_cast %1237 : vector<1x1x8x128xf32> to vector<8x128xf32>
      %1239 = arith.maximumf %1236, %1238 : vector<8x128xf32>
      %c7_1551 = arith.constant 7 : index
      %c6_1552 = arith.constant 6 : index
      %c0_1553 = arith.constant 0 : index
      %c0_1554 = arith.constant 0 : index
      %1240 = vector.load %arg6[%c7_1551, %c6_1552, %c0_1553, %c0_1554] : memref<8x8x8x128xf32, #tpu.memory_space<vmem>>, vector<1x1x8x128xf32>
      %1241 = vector.shape_cast %1240 : vector<1x1x8x128xf32> to vector<8x128xf32>
      %1242 = arith.maximumf %1239, %1241 : vector<8x128xf32>
      %c7_1555 = arith.constant 7 : index
      %c7_1556 = arith.constant 7 : index
      %c0_1557 = arith.constant 0 : index
      %c0_1558 = arith.constant 0 : index
      %1243 = vector.load %arg6[%c7_1555, %c7_1556, %c0_1557, %c0_1558] : memref<8x8x8x128xf32, #tpu.memory_space<vmem>>, vector<1x1x8x128xf32>
      %1244 = vector.shape_cast %1243 : vector<1x1x8x128xf32> to vector<8x128xf32>
      %1245 = arith.maximumf %1242, %1244 : vector<8x128xf32>
      %c3_1559 = arith.constant 3 : index
      %c3_1560 = arith.constant 3 : index
      %c0_1561 = arith.constant 0 : index
      %c0_1562 = arith.constant 0 : index
      %1246 = vector.load %arg7[%c3_1559, %c3_1560, %c0_1561, %c0_1562] : memref<4x4x8x128xf32, #tpu.memory_space<vmem>>, vector<1x1x8x128xf32>
      %1247 = vector.shape_cast %1246 : vector<1x1x8x128xf32> to vector<8x128xf32>
      %1248 = vector.shape_cast %1245 : vector<8x128xf32> to vector<1x1x8x128xf32>
      tpu.vector_store %arg7[%c3_1559, %c3_1560, %c0_1561, %c0_1562], %1248 {strides = array<i32>} : memref<4x4x8x128xf32, #tpu.memory_space<vmem>>, vector<1x1x8x128xf32>,
      %c0_1563 = arith.constant 0 : index
      %c0_1564 = arith.constant 0 : index
      %c0_1565 = arith.constant 0 : index
      %c0_1566 = arith.constant 0 : index
      %1249 = vector.load %arg7[%c0_1563, %c0_1564, %c0_1565, %c0_1566] : memref<4x4x8x128xf32, #tpu.memory_space<vmem>>, vector<1x1x8x128xf32>
      %1250 = vector.shape_cast %1249 : vector<1x1x8x128xf32> to vector<8x128xf32>
      %c0_1567 = arith.constant 0 : index
      %c1_1568 = arith.constant 1 : index
      %c0_1569 = arith.constant 0 : index
      %c0_1570 = arith.constant 0 : index
      %1251 = vector.load %arg7[%c0_1567, %c1_1568, %c0_1569, %c0_1570] : memref<4x4x8x128xf32, #tpu.memory_space<vmem>>, vector<1x1x8x128xf32>
      %1252 = vector.shape_cast %1251 : vector<1x1x8x128xf32> to vector<8x128xf32>
      %1253 = arith.maximumf %1250, %1252 : vector<8x128xf32>
      %c1_1571 = arith.constant 1 : index
      %c0_1572 = arith.constant 0 : index
      %c0_1573 = arith.constant 0 : index
      %c0_1574 = arith.constant 0 : index
      %1254 = vector.load %arg7[%c1_1571, %c0_1572, %c0_1573, %c0_1574] : memref<4x4x8x128xf32, #tpu.memory_space<vmem>>, vector<1x1x8x128xf32>
      %1255 = vector.shape_cast %1254 : vector<1x1x8x128xf32> to vector<8x128xf32>
      %1256 = arith.maximumf %1253, %1255 : vector<8x128xf32>
      %c1_1575 = arith.constant 1 : index
      %c1_1576 = arith.constant 1 : index
      %c0_1577 = arith.constant 0 : index
      %c0_1578 = arith.constant 0 : index
      %1257 = vector.load %arg7[%c1_1575, %c1_1576, %c0_1577, %c0_1578] : memref<4x4x8x128xf32, #tpu.memory_space<vmem>>, vector<1x1x8x128xf32>
      %1258 = vector.shape_cast %1257 : vector<1x1x8x128xf32> to vector<8x128xf32>
      %1259 = arith.maximumf %1256, %1258 : vector<8x128xf32>
      %c0_1579 = arith.constant 0 : index
      %c0_1580 = arith.constant 0 : index
      %c0_1581 = arith.constant 0 : index
      %c0_1582 = arith.constant 0 : index
      %1260 = vector.load %arg8[%c0_1579, %c0_1580, %c0_1581, %c0_1582] : memref<2x2x8x128xf32, #tpu.memory_space<vmem>>, vector<1x1x8x128xf32>
      %1261 = vector.shape_cast %1260 : vector<1x1x8x128xf32> to vector<8x128xf32>
      %1262 = vector.shape_cast %1259 : vector<8x128xf32> to vector<1x1x8x128xf32>
      tpu.vector_store %arg8[%c0_1579, %c0_1580, %c0_1581, %c0_1582], %1262 {strides = array<i32>} : memref<2x2x8x128xf32, #tpu.memory_space<vmem>>, vector<1x1x8x128xf32>,
      %c0_1583 = arith.constant 0 : index
      %c1_1584 = arith.constant 1 : index
      %c0_1585 = arith.constant 0 : index
      %c0_1586 = arith.constant 0 : index
      %1263 = vector.load %arg7[%c0_1583, %c1_1584, %c0_1585, %c0_1586] : memref<4x4x8x128xf32, #tpu.memory_space<vmem>>, vector<1x1x8x128xf32>
      %1264 = vector.shape_cast %1263 : vector<1x1x8x128xf32> to vector<8x128xf32>
      %c0_1587 = arith.constant 0 : index
      %c2_1588 = arith.constant 2 : index
      %c0_1589 = arith.constant 0 : index
      %c0_1590 = arith.constant 0 : index
      %1265 = vector.load %arg7[%c0_1587, %c2_1588, %c0_1589, %c0_1590] : memref<4x4x8x128xf32, #tpu.memory_space<vmem>>, vector<1x1x8x128xf32>
      %1266 = vector.shape_cast %1265 : vector<1x1x8x128xf32> to vector<8x128xf32>
      %1267 = arith.maximumf %1264, %1266 : vector<8x128xf32>
      %c0_1591 = arith.constant 0 : index
      %c3_1592 = arith.constant 3 : index
      %c0_1593 = arith.constant 0 : index
      %c0_1594 = arith.constant 0 : index
      %1268 = vector.load %arg7[%c0_1591, %c3_1592, %c0_1593, %c0_1594] : memref<4x4x8x128xf32, #tpu.memory_space<vmem>>, vector<1x1x8x128xf32>
      %1269 = vector.shape_cast %1268 : vector<1x1x8x128xf32> to vector<8x128xf32>
      %1270 = arith.maximumf %1267, %1269 : vector<8x128xf32>
      %c1_1595 = arith.constant 1 : index
      %c1_1596 = arith.constant 1 : index
      %c0_1597 = arith.constant 0 : index
      %c0_1598 = arith.constant 0 : index
      %1271 = vector.load %arg7[%c1_1595, %c1_1596, %c0_1597, %c0_1598] : memref<4x4x8x128xf32, #tpu.memory_space<vmem>>, vector<1x1x8x128xf32>
      %1272 = vector.shape_cast %1271 : vector<1x1x8x128xf32> to vector<8x128xf32>
      %1273 = arith.maximumf %1270, %1272 : vector<8x128xf32>
      %c1_1599 = arith.constant 1 : index
      %c2_1600 = arith.constant 2 : index
      %c0_1601 = arith.constant 0 : index
      %c0_1602 = arith.constant 0 : index
      %1274 = vector.load %arg7[%c1_1599, %c2_1600, %c0_1601, %c0_1602] : memref<4x4x8x128xf32, #tpu.memory_space<vmem>>, vector<1x1x8x128xf32>
      %1275 = vector.shape_cast %1274 : vector<1x1x8x128xf32> to vector<8x128xf32>
      %1276 = arith.maximumf %1273, %1275 : vector<8x128xf32>
      %c1_1603 = arith.constant 1 : index
      %c3_1604 = arith.constant 3 : index
      %c0_1605 = arith.constant 0 : index
      %c0_1606 = arith.constant 0 : index
      %1277 = vector.load %arg7[%c1_1603, %c3_1604, %c0_1605, %c0_1606] : memref<4x4x8x128xf32, #tpu.memory_space<vmem>>, vector<1x1x8x128xf32>
      %1278 = vector.shape_cast %1277 : vector<1x1x8x128xf32> to vector<8x128xf32>
      %1279 = arith.maximumf %1276, %1278 : vector<8x128xf32>
      %c0_1607 = arith.constant 0 : index
      %c1_1608 = arith.constant 1 : index
      %c0_1609 = arith.constant 0 : index
      %c0_1610 = arith.constant 0 : index
      %1280 = vector.load %arg8[%c0_1607, %c1_1608, %c0_1609, %c0_1610] : memref<2x2x8x128xf32, #tpu.memory_space<vmem>>, vector<1x1x8x128xf32>
      %1281 = vector.shape_cast %1280 : vector<1x1x8x128xf32> to vector<8x128xf32>
      %1282 = vector.shape_cast %1279 : vector<8x128xf32> to vector<1x1x8x128xf32>
      tpu.vector_store %arg8[%c0_1607, %c1_1608, %c0_1609, %c0_1610], %1282 {strides = array<i32>} : memref<2x2x8x128xf32, #tpu.memory_space<vmem>>, vector<1x1x8x128xf32>,
      %c1_1611 = arith.constant 1 : index
      %c0_1612 = arith.constant 0 : index
      %c0_1613 = arith.constant 0 : index
      %c0_1614 = arith.constant 0 : index
      %1283 = vector.load %arg7[%c1_1611, %c0_1612, %c0_1613, %c0_1614] : memref<4x4x8x128xf32, #tpu.memory_space<vmem>>, vector<1x1x8x128xf32>
      %1284 = vector.shape_cast %1283 : vector<1x1x8x128xf32> to vector<8x128xf32>
      %c1_1615 = arith.constant 1 : index
      %c1_1616 = arith.constant 1 : index
      %c0_1617 = arith.constant 0 : index
      %c0_1618 = arith.constant 0 : index
      %1285 = vector.load %arg7[%c1_1615, %c1_1616, %c0_1617, %c0_1618] : memref<4x4x8x128xf32, #tpu.memory_space<vmem>>, vector<1x1x8x128xf32>
      %1286 = vector.shape_cast %1285 : vector<1x1x8x128xf32> to vector<8x128xf32>
      %1287 = arith.maximumf %1284, %1286 : vector<8x128xf32>
      %c2_1619 = arith.constant 2 : index
      %c0_1620 = arith.constant 0 : index
      %c0_1621 = arith.constant 0 : index
      %c0_1622 = arith.constant 0 : index
      %1288 = vector.load %arg7[%c2_1619, %c0_1620, %c0_1621, %c0_1622] : memref<4x4x8x128xf32, #tpu.memory_space<vmem>>, vector<1x1x8x128xf32>
      %1289 = vector.shape_cast %1288 : vector<1x1x8x128xf32> to vector<8x128xf32>
      %1290 = arith.maximumf %1287, %1289 : vector<8x128xf32>
      %c2_1623 = arith.constant 2 : index
      %c1_1624 = arith.constant 1 : index
      %c0_1625 = arith.constant 0 : index
      %c0_1626 = arith.constant 0 : index
      %1291 = vector.load %arg7[%c2_1623, %c1_1624, %c0_1625, %c0_1626] : memref<4x4x8x128xf32, #tpu.memory_space<vmem>>, vector<1x1x8x128xf32>
      %1292 = vector.shape_cast %1291 : vector<1x1x8x128xf32> to vector<8x128xf32>
      %1293 = arith.maximumf %1290, %1292 : vector<8x128xf32>
      %c3_1627 = arith.constant 3 : index
      %c0_1628 = arith.constant 0 : index
      %c0_1629 = arith.constant 0 : index
      %c0_1630 = arith.constant 0 : index
      %1294 = vector.load %arg7[%c3_1627, %c0_1628, %c0_1629, %c0_1630] : memref<4x4x8x128xf32, #tpu.memory_space<vmem>>, vector<1x1x8x128xf32>
      %1295 = vector.shape_cast %1294 : vector<1x1x8x128xf32> to vector<8x128xf32>
      %1296 = arith.maximumf %1293, %1295 : vector<8x128xf32>
      %c3_1631 = arith.constant 3 : index
      %c1_1632 = arith.constant 1 : index
      %c0_1633 = arith.constant 0 : index
      %c0_1634 = arith.constant 0 : index
      %1297 = vector.load %arg7[%c3_1631, %c1_1632, %c0_1633, %c0_1634] : memref<4x4x8x128xf32, #tpu.memory_space<vmem>>, vector<1x1x8x128xf32>
      %1298 = vector.shape_cast %1297 : vector<1x1x8x128xf32> to vector<8x128xf32>
      %1299 = arith.maximumf %1296, %1298 : vector<8x128xf32>
      %c1_1635 = arith.constant 1 : index
      %c0_1636 = arith.constant 0 : index
      %c0_1637 = arith.constant 0 : index
      %c0_1638 = arith.constant 0 : index
      %1300 = vector.load %arg8[%c1_1635, %c0_1636, %c0_1637, %c0_1638] : memref<2x2x8x128xf32, #tpu.memory_space<vmem>>, vector<1x1x8x128xf32>
      %1301 = vector.shape_cast %1300 : vector<1x1x8x128xf32> to vector<8x128xf32>
      %1302 = vector.shape_cast %1299 : vector<8x128xf32> to vector<1x1x8x128xf32>
      tpu.vector_store %arg8[%c1_1635, %c0_1636, %c0_1637, %c0_1638], %1302 {strides = array<i32>} : memref<2x2x8x128xf32, #tpu.memory_space<vmem>>, vector<1x1x8x128xf32>,
      %c1_1639 = arith.constant 1 : index
      %c1_1640 = arith.constant 1 : index
      %c0_1641 = arith.constant 0 : index
      %c0_1642 = arith.constant 0 : index
      %1303 = vector.load %arg7[%c1_1639, %c1_1640, %c0_1641, %c0_1642] : memref<4x4x8x128xf32, #tpu.memory_space<vmem>>, vector<1x1x8x128xf32>
      %1304 = vector.shape_cast %1303 : vector<1x1x8x128xf32> to vector<8x128xf32>
      %c1_1643 = arith.constant 1 : index
      %c2_1644 = arith.constant 2 : index
      %c0_1645 = arith.constant 0 : index
      %c0_1646 = arith.constant 0 : index
      %1305 = vector.load %arg7[%c1_1643, %c2_1644, %c0_1645, %c0_1646] : memref<4x4x8x128xf32, #tpu.memory_space<vmem>>, vector<1x1x8x128xf32>
      %1306 = vector.shape_cast %1305 : vector<1x1x8x128xf32> to vector<8x128xf32>
      %1307 = arith.maximumf %1304, %1306 : vector<8x128xf32>
      %c1_1647 = arith.constant 1 : index
      %c3_1648 = arith.constant 3 : index
      %c0_1649 = arith.constant 0 : index
      %c0_1650 = arith.constant 0 : index
      %1308 = vector.load %arg7[%c1_1647, %c3_1648, %c0_1649, %c0_1650] : memref<4x4x8x128xf32, #tpu.memory_space<vmem>>, vector<1x1x8x128xf32>
      %1309 = vector.shape_cast %1308 : vector<1x1x8x128xf32> to vector<8x128xf32>
      %1310 = arith.maximumf %1307, %1309 : vector<8x128xf32>
      %c2_1651 = arith.constant 2 : index
      %c1_1652 = arith.constant 1 : index
      %c0_1653 = arith.constant 0 : index
      %c0_1654 = arith.constant 0 : index
      %1311 = vector.load %arg7[%c2_1651, %c1_1652, %c0_1653, %c0_1654] : memref<4x4x8x128xf32, #tpu.memory_space<vmem>>, vector<1x1x8x128xf32>
      %1312 = vector.shape_cast %1311 : vector<1x1x8x128xf32> to vector<8x128xf32>
      %1313 = arith.maximumf %1310, %1312 : vector<8x128xf32>
      %c2_1655 = arith.constant 2 : index
      %c2_1656 = arith.constant 2 : index
      %c0_1657 = arith.constant 0 : index
      %c0_1658 = arith.constant 0 : index
      %1314 = vector.load %arg7[%c2_1655, %c2_1656, %c0_1657, %c0_1658] : memref<4x4x8x128xf32, #tpu.memory_space<vmem>>, vector<1x1x8x128xf32>
      %1315 = vector.shape_cast %1314 : vector<1x1x8x128xf32> to vector<8x128xf32>
      %1316 = arith.maximumf %1313, %1315 : vector<8x128xf32>
      %c2_1659 = arith.constant 2 : index
      %c3_1660 = arith.constant 3 : index
      %c0_1661 = arith.constant 0 : index
      %c0_1662 = arith.constant 0 : index
      %1317 = vector.load %arg7[%c2_1659, %c3_1660, %c0_1661, %c0_1662] : memref<4x4x8x128xf32, #tpu.memory_space<vmem>>, vector<1x1x8x128xf32>
      %1318 = vector.shape_cast %1317 : vector<1x1x8x128xf32> to vector<8x128xf32>
      %1319 = arith.maximumf %1316, %1318 : vector<8x128xf32>
      %c3_1663 = arith.constant 3 : index
      %c1_1664 = arith.constant 1 : index
      %c0_1665 = arith.constant 0 : index
      %c0_1666 = arith.constant 0 : index
      %1320 = vector.load %arg7[%c3_1663, %c1_1664, %c0_1665, %c0_1666] : memref<4x4x8x128xf32, #tpu.memory_space<vmem>>, vector<1x1x8x128xf32>
      %1321 = vector.shape_cast %1320 : vector<1x1x8x128xf32> to vector<8x128xf32>
      %1322 = arith.maximumf %1319, %1321 : vector<8x128xf32>
      %c3_1667 = arith.constant 3 : index
      %c2_1668 = arith.constant 2 : index
      %c0_1669 = arith.constant 0 : index
      %c0_1670 = arith.constant 0 : index
      %1323 = vector.load %arg7[%c3_1667, %c2_1668, %c0_1669, %c0_1670] : memref<4x4x8x128xf32, #tpu.memory_space<vmem>>, vector<1x1x8x128xf32>
      %1324 = vector.shape_cast %1323 : vector<1x1x8x128xf32> to vector<8x128xf32>
      %1325 = arith.maximumf %1322, %1324 : vector<8x128xf32>
      %c3_1671 = arith.constant 3 : index
      %c3_1672 = arith.constant 3 : index
      %c0_1673 = arith.constant 0 : index
      %c0_1674 = arith.constant 0 : index
      %1326 = vector.load %arg7[%c3_1671, %c3_1672, %c0_1673, %c0_1674] : memref<4x4x8x128xf32, #tpu.memory_space<vmem>>, vector<1x1x8x128xf32>
      %1327 = vector.shape_cast %1326 : vector<1x1x8x128xf32> to vector<8x128xf32>
      %1328 = arith.maximumf %1325, %1327 : vector<8x128xf32>
      %c1_1675 = arith.constant 1 : index
      %c1_1676 = arith.constant 1 : index
      %c0_1677 = arith.constant 0 : index
      %c0_1678 = arith.constant 0 : index
      %1329 = vector.load %arg8[%c1_1675, %c1_1676, %c0_1677, %c0_1678] : memref<2x2x8x128xf32, #tpu.memory_space<vmem>>, vector<1x1x8x128xf32>
      %1330 = vector.shape_cast %1329 : vector<1x1x8x128xf32> to vector<8x128xf32>
      %1331 = vector.shape_cast %1328 : vector<8x128xf32> to vector<1x1x8x128xf32>
      tpu.vector_store %arg8[%c1_1675, %c1_1676, %c0_1677, %c0_1678], %1331 {strides = array<i32>} : memref<2x2x8x128xf32, #tpu.memory_space<vmem>>, vector<1x1x8x128xf32>,
      %c0_1679 = arith.constant 0 : index
      %c0_1680 = arith.constant 0 : index
      %c0_1681 = arith.constant 0 : index
      %c0_1682 = arith.constant 0 : index
      %1332 = vector.load %arg8[%c0_1679, %c0_1680, %c0_1681, %c0_1682] : memref<2x2x8x128xf32, #tpu.memory_space<vmem>>, vector<1x1x8x128xf32>
      %1333 = vector.shape_cast %1332 : vector<1x1x8x128xf32> to vector<8x128xf32>
      %c0_1683 = arith.constant 0 : index
      %c1_1684 = arith.constant 1 : index
      %c0_1685 = arith.constant 0 : index
      %c0_1686 = arith.constant 0 : index
      %1334 = vector.load %arg8[%c0_1683, %c1_1684, %c0_1685, %c0_1686] : memref<2x2x8x128xf32, #tpu.memory_space<vmem>>, vector<1x1x8x128xf32>
      %1335 = vector.shape_cast %1334 : vector<1x1x8x128xf32> to vector<8x128xf32>
      %1336 = arith.maximumf %1333, %1335 : vector<8x128xf32>
      %c1_1687 = arith.constant 1 : index
      %c0_1688 = arith.constant 0 : index
      %c0_1689 = arith.constant 0 : index
      %c0_1690 = arith.constant 0 : index
      %1337 = vector.load %arg8[%c1_1687, %c0_1688, %c0_1689, %c0_1690] : memref<2x2x8x128xf32, #tpu.memory_space<vmem>>, vector<1x1x8x128xf32>
      %1338 = vector.shape_cast %1337 : vector<1x1x8x128xf32> to vector<8x128xf32>
      %1339 = arith.maximumf %1336, %1338 : vector<8x128xf32>
      %c1_1691 = arith.constant 1 : index
      %c1_1692 = arith.constant 1 : index
      %c0_1693 = arith.constant 0 : index
      %c0_1694 = arith.constant 0 : index
      %1340 = vector.load %arg8[%c1_1691, %c1_1692, %c0_1693, %c0_1694] : memref<2x2x8x128xf32, #tpu.memory_space<vmem>>, vector<1x1x8x128xf32>
      %1341 = vector.shape_cast %1340 : vector<1x1x8x128xf32> to vector<8x128xf32>
      %1342 = arith.maximumf %1339, %1341 : vector<8x128xf32>
      %c0_1695 = arith.constant 0 : index
      %c0_1696 = arith.constant 0 : index
      %c0_1697 = arith.constant 0 : index
      %c0_1698 = arith.constant 0 : index
      %1343 = vector.load %arg9[%c0_1695, %c0_1696, %c0_1697, %c0_1698] : memref<1x1x8x128xf32, #tpu.memory_space<vmem>>, vector<1x1x8x128xf32>
      %1344 = vector.shape_cast %1343 : vector<1x1x8x128xf32> to vector<8x128xf32>
      %1345 = vector.shape_cast %1342 : vector<8x128xf32> to vector<1x1x8x128xf32>
      tpu.vector_store %arg9[%c0_1695, %c0_1696, %c0_1697, %c0_1698], %1345 {strides = array<i32>} : memref<1x1x8x128xf32, #tpu.memory_space<vmem>>, vector<1x1x8x128xf32>,
      %c0_1699 = arith.constant 0 : index
      %c0_1700 = arith.constant 0 : index
      %c0_1701 = arith.constant 0 : index
      %c0_1702 = arith.constant 0 : index
      %1346 = vector.load %arg9[%c0_1699, %c0_1700, %c0_1701, %c0_1702] : memref<1x1x8x128xf32, #tpu.memory_space<vmem>>, vector<1x1x8x128xf32>
      %1347 = vector.shape_cast %1346 : vector<1x1x8x128xf32> to vector<8x128xf32>
      %c0_1703 = arith.constant 0 : index
      %c0_1704 = arith.constant 0 : index
      %c0_1705 = arith.constant 0 : index
      %c0_1706 = arith.constant 0 : index
      %1348 = vector.load %arg10[%c0_1703, %c0_1704, %c0_1705, %c0_1706] : memref<1x1x8x128xf32, #tpu.memory_space<vmem>>, vector<1x1x8x128xf32>
      %1349 = vector.shape_cast %1348 : vector<1x1x8x128xf32> to vector<8x128xf32>
      %1350 = vector.shape_cast %1347 : vector<8x128xf32> to vector<1x1x8x128xf32>
      tpu.vector_store %arg10[%c0_1703, %c0_1704, %c0_1705, %c0_1706], %1350 {strides = array<i32>} : memref<1x1x8x128xf32, #tpu.memory_space<vmem>>, vector<1x1x8x128xf32>,
      %c0_1707 = arith.constant 0 : index
      %c0_1708 = arith.constant 0 : index
      %c0_1709 = arith.constant 0 : index
      %c0_1710 = arith.constant 0 : index
      %1351 = vector.load %arg10[%c0_1707, %c0_1708, %c0_1709, %c0_1710] : memref<1x1x8x128xf32, #tpu.memory_space<vmem>>, vector<1x1x8x128xf32>
      %1352 = vector.shape_cast %1351 : vector<1x1x8x128xf32> to vector<8x128xf32>
      %c0_1711 = arith.constant 0 : index
      %c0_1712 = arith.constant 0 : index
      %c0_1713 = arith.constant 0 : index
      %c0_1714 = arith.constant 0 : index
      %1353 = vector.load %arg2[%c0_1711, %c0_1712, %c0_1713, %c0_1714] : memref<1x1x128x256xf32, #tpu.memory_space<vmem>>, vector<1x1x128x256xf32>
      %1354 = vector.shape_cast %1353 : vector<1x1x128x256xf32> to vector<128x256xf32>
      %cst = arith.constant dense<0.000000e+00> : vector<8x256xf32>
      %1355 = tpu.matmul %1352, %1354, %cst {dimension_numbers = #tpu.dot_dimension_numbers<[1], [0], [0], [1], [0, 0, 1, 1], [], []>} : vector<8x128xf32>, vector<128x256xf32>, vector<8x256xf32> -> vector<8x256xf32>
      %c0_1715 = arith.constant 0 : index
      %c0_1716 = arith.constant 0 : index
      %1356 = vector.load %arg3[%c0_1715, %c0_1716] : memref<1x256xf32, #tpu.memory_space<vmem>>, vector<1x256xf32>
      %1357 = vector.broadcast %1356 : vector<1x256xf32> to vector<8x256xf32>
      %1358 = arith.addf %1355, %1357 : vector<8x256xf32>
      %c0_1717 = arith.constant 0 : index
      %c0_1718 = arith.constant 0 : index
      %1359 = vector.load %arg4[%c0_1717, %c0_1718] : memref<8x256xf32, #tpu.memory_space<vmem>>, vector<8x256xf32>
      tpu.vector_store %arg4[%c0_1717, %c0_1718], %1358 {strides = array<i32>} : memref<8x256xf32, #tpu.memory_space<vmem>>, vector<8x256xf32>,
    } else {
    }
    return
  }
  func.func @transform_0(%arg0: i32) -> (i32, i32, i32, i32) {
    %c0_i32 = arith.constant 0 : i32
    %c0_i32_0 = arith.constant 0 : i32
    %c0_i32_1 = arith.constant 0 : i32
    %c0_i32_2 = arith.constant 0 : i32
    return %arg0, %c0_i32, %c0_i32_0, %c0_i32_1 : i32, i32, i32, i32
  }
  func.func @transform_1(%arg0: i32) -> (i32, i32, i32, i32) {
    %c0_i32 = arith.constant 0 : i32
    %c0_i32_0 = arith.constant 0 : i32
    %c0_i32_1 = arith.constant 0 : i32
    %c0_i32_2 = arith.constant 0 : i32
    %c0_i32_3 = arith.constant 0 : i32
    return %c0_i32, %c0_i32_0, %c0_i32_1, %c0_i32_2 : i32, i32, i32, i32
  }
  func.func @transform_2(%arg0: i32) -> (i32, i32) {
    %c0_i32 = arith.constant 0 : i32
    %c0_i32_0 = arith.constant 0 : i32
    %c0_i32_1 = arith.constant 0 : i32
    return %c0_i32, %c0_i32_0 : i32, i32
  }
  func.func @transform_3(%arg0: i32) -> (i32, i32) {
    %c0_i32 = arith.constant 0 : i32
    %c0_i32_0 = arith.constant 0 : i32
    %c0_i32_1 = arith.constant 0 : i32
    return %c0_i32, %c0_i32_0 : i32, i32
  }
}

</mosaic_0001>

<bundles_post_ra>
// kernel: poolingnet_rt_forward_hwbc.1
= control target key start
LH: loop header
LB: loop body
LE: loop exit
PB: predicated region body
PF: predicated region fallthrough
CT: control target
= control target key end

     0   :  { %8 = vsyncpa [#allocation9], 0  ;;  %s2602_s0 = inlined_call_operand.hbm [shape: f32[16,16,8,128], index: 0, kind: input, shape index: {}]   ;;  %s2603_s1 = inlined_call_operand.hbm [shape: f32[1,1,128,256], index: 1, kind: input, shape index: {}]   ;;  %s2604_s2 = inlined_call_operand.vmem [shape: f32[1,256], index: 2, kind: input, shape index: {}]   ;;  %s2605_s3 = inlined_call_operand.hbm [shape: f32[8,256], index: 3, kind: output, shape index: {}]  }
   0x1   :  { %10 = vsyncpa [#allocation9 + $0x1], 0 }
   0x2   :  { %11 = vsyncpa [#allocation12], 0 }
   0x3   :  { %12 = vsyncpa [#allocation10], 0  ;;  %s2092_s12 = smov 0   ;;  %s2094_s13 = smov 0  }
   0x4   :  { %s2096_s14 = smov 0   ;;  %s2098_s15 = smov 0  }
   0x5 LB: > { %s2111_s16 = sadd.s32 4294967295, %s2061_s15   ;;  %p38_p0 = scmp.ne.s32.totalorder %s2053_s13, %s2049_s12  ;;  %s2061_s15 = sphi %s2098_s15, %s2621_s15   ;;  %s2057_s14 = sphi %s2096_s14, %s2620_s14   ;;  %s2053_s13 = sphi %s2094_s13, %s2619_s13   ;;  %s2049_s12 = sphi %s2092_s12, %s2618_s12  }
   0x6   : > { %p2606_p1 = scmp.eq.s32.totalorder %s2111_s16, 0  ;;  %p1564_p2 = scmp.ge.s32.totalorder %s2061_s15, 1 }
   0x7   : > { %p112_p3 = scmp.lt.s32.totalorder %s2061_s15, 3  ;;  %s2063_s19 = smov [#allocation11]  }
   0x8   : > { %p2120_p5 = por %p2606_p1, %p38_p0  ;;  %s124_s20 = sshll.u32 %s2063_s19, 4  ;;  %s125_s20 = int_to_ptr.vmem [resolvable:$true] %s124_s20 }
   0x9   : > { %p2124_p6 = pnand %p1564_p2, %p112_p3  ;;  %s2137_s22 = sadd.s32 1, %s2061_s15  }
   0xa   : > { %s2609_s17 = scalar_select %p2120_p5, 1, 0 }
   0xb   : > { %s2610_s18 = scalar_select %p2124_p6, 1, 0 }
   0xc   : > { %p1888_p7 = pneg %p2124_p6  ;;  %s25_s23 = sadd.s32 1, %s2057_s14 }
   0xd   : > { %s22_s24 = ssub.s32 %s2061_s15, %s2137_s22  ;;  %s1952_s25 = scalar_lea.vmem %s125_s20, 4096 }
   0xe   : > { %p2132_p8 = pnand %p1888_p7, %p2606_p1  ;;  %p1953_p10 = scmp.ne.s32.totalorder %s125_s20, %s1952_s25 }
   0xf   : > { %p1960_p13 = scmp.lt.s32.totalorder %s125_s20, %s125_s20  ;;  %p1961_p0 = scmp.lt.s32.totalorder %s1952_s25, %s1952_s25 }
  0x10   : > { %p1943_p9 = pneg %p2132_p8 }
  0x11   : > { %p1962_p2 = por %p1961_p0, %p1960_p13 }
  0x12   : > { %p1955_p11 = pnand %p1953_p10, %p1943_p9 }
  0x14   : > { %p1956_p12 = pneg %p1955_p11 }
  0x16   : > { %p1963_p3 = pnand %p1962_p2, %p1956_p12 }
  0x18   : > { %1966 = shalt.err (!%p1963_p3)
}
  0x19   : > { %s2064_s26 = smov 256   ;;  %s2065_s27 = smov 16  }
  0x1a   : > { %1891 = dma.hbm_to_vmem [thread:$0]  (!%p2132_p8), %s2603_s1, 4096, %s125_s20, [#allocation12], %s2064_s26, %s2064_s26, %s2065_s27  }
  0x1b   : > { %p23_p7 = scmp.eq.s32.totalorder %s22_s24, 0  ;;  %p32_p9 = scmp.ne.s32.totalorder %s2057_s14, %s2053_s13 }
  0x1c   : > { %p33_p10 = scmp.eq.s32.totalorder %s2061_s15, 0  ;;  %p1897_p11 = scmp.lt.s32.totalorder %s2061_s15, 2 }
  0x1d   : > { %s2154_s30 = scalar_select %p23_p7, %s2057_s14, %s25_s23  }
  0x1e   : > { %p34_p12 = por %p33_p10, %p32_p9  ;;  %s141_s4 = sand.u32 1, %s2057_s14  }
  0x1f   : > { %s1567_s5 = sshll.u32 %s141_s4, 10  ;;  %s1852_s6 = sshll.u32 %s2061_s15, 14 }
  0x20   : > { %s2161_s9 = scalar_lea.hbm %s2602_s0, %s1852_s6  ;;  %s145_s10 = scalar_lea.vmem [#allocation8], %s1567_s5 }
  0x21   : > { %s153_s11 = sshll.u32 %s145_s10, 4  ;;  %p2165_p8 = pnand %p1897_p11, %p34_p12  ;;  %s2163_s11 = int_to_ptr.vmem [resolvable:$true] %s153_s11 }
  0x22   : > { %s2169_s19 = scalar_lea.sflag [#allocation9], %s141_s4  ;;  %s1967_s15 = scalar_lea.hbm %s2161_s9, 16384 }
  0x23   : > { %p1968_p13 = scmp.ne.s32.totalorder %s2161_s9, %s1967_s15  ;;  %p1969_p0 = pneg %p2165_p8 }
  0x24   : > { %s1972_s23 = scalar_lea.hbm %s2602_s0, 32768  ;;  %p1973_p7 = scmp.lt.s32.totalorder %s2161_s9, %s2602_s0 }
  0x25   : > { %p1970_p2 = pnand %p1969_p0, %p1968_p13  ;;  %p1974_p9 = scmp.lt.s32.totalorder %s1972_s23, %s1967_s15 }
  0x27   : > { %p1971_p3 = pneg %p1970_p2  ;;  %p1975_p10 = por %p1974_p9, %p1973_p7 }
  0x29   : > { %p1976_p11 = pnand %p1975_p10, %p1971_p3 }
  0x2b   : > { %1979 = shalt.err (!%p1976_p11)
}
  0x2c   : > { %s1980_s26 = scalar_lea.vmem %s2163_s11, 16384  ;;  %s2066_s27 = smov [#allocation8]  }
  0x2d   : > { %p1981_p12 = scmp.ne.s32.totalorder %s2163_s11, %s1980_s26  ;;  %s1985_s28 = sshll.u32 %s2066_s27, 4  ;;  %s1986_s28 = int_to_ptr.vmem [resolvable:$false] %s1985_s28 }
  0x2e   : > { %s1987_s29 = scalar_lea.vmem %s1986_s28, 32768  ;;  %p1988_p2 = scmp.lt.s32.totalorder %s2163_s11, %s1986_s28 }
  0x2f   : > { %p1983_p4 = pnand %p1981_p12, %p1969_p0  ;;  %p1989_p1 = scmp.lt.s32.totalorder %s1987_s29, %s1980_s26 }
  0x31   : > { %p1984_p13 = pneg %p1983_p4  ;;  %p1990_p5 = por %p1989_p1, %p1988_p2 }
  0x33   : > { %p1991_p6 = pnand %p1990_p5, %p1984_p13 }
  0x35   : > { %1994 = shalt.err (!%p1991_p6)
}
  0x36   : > { %s2067_s4 = smov 128   ;;  %s2068_s5 = smov 8  }
  0x37   : > { %1895 = dma.hbm_to_vmem [thread:$0]  (!%p2165_p8), %s2161_s9, 16384, %s2163_s11, %s2169_s19, %s2067_s4, %s2067_s4, %s2068_s5  }
  0x38   : > { %p2613_p0 = scmp.ne.s32.totalorder %s2610_s18, 0 }
  0x39   : > { %s167_s6 = sand.u32 (!%p2613_p0), 1, %s2053_s13   ;;  %p2614_p1 = scmp.ne.s32.totalorder (!%p2613_p0), %s2609_s17, 0 }
  0x3a   : > { %165 = sbr.rel (%p2613_p0) target bundleno = 400 (0x190), region = 32  ;;  %s1572_s7 = sshll.u32 (!%p2613_p0), %s167_s6, 10 }
  0x3b   : > { %s168_s8 = scalar_lea.sflag (!%p2613_p0), [#allocation9], %s167_s6  ;;  %s2193_s10 = scalar_lea.vmem (!%p2613_p0), [#allocation8], %s1572_s7 }
  0x3f   : > { %2036 = dma.done.wait (%p2614_p1), %s168_s8, 16384  }
  0x40   : > { %2038 = vsyncadd (%p2614_p1), %s168_s8, 4294950912  ;;  %p2615_p4 = scmp.eq.s32.totalorder %s2111_s16, 0 }
  0x42   : > { %2040 = dma.done.wait (%p2615_p4), [#allocation12], 4096   ;;  %p2616_p5 = pmov %p2615_p4 }
  0x43   : > { %p2617_p6 = scmp.ne.s32.totalorder %s2111_s16, 0 }
  0x44   : > { %2042 = vsyncadd (%p2616_p5), [#allocation12], 4294963200 }
  0x45   : > { %197 = sbr.rel (%p2617_p6) target bundleno = 79 (0x4f), region = 44 }
  0x4a   : > { %v2069_v0 = vmov -inf  }
  0x4b   : > { %198 = vst [vmem:[#allocation2 + $0x30] sm:$0xff] %v2069_v0  ;;  %199 = vst [vmem:[#allocation2] sm:$0xff] %v2069_v0 }
  0x4c   : > { %200 = vst [vmem:[#allocation2 + $0x18] sm:$0xff] %v2069_v0  ;;  %201 = vst [vmem:[#allocation2 + $0x10] sm:$0xff] %v2069_v0 }
  0x4d   : > { %202 = vst [vmem:[#allocation2 + $0x8] sm:$0xff] %v2069_v0  ;;  %203 = vst [vmem:[#allocation2 + $0x20] sm:$0xff] %v2069_v0 }
  0x4e   : > { %204 = vst [vmem:[#allocation2 + $0x28] sm:$0xff] %v2069_v0  ;;  %205 = vst [vmem:[#allocation2 + $0x38] sm:$0xff] %v2069_v0 }
  0x4f PF: > { %v207_v1 = vld [vmem:[%s2193_s10] sm:$0xff]  ;;  %v1576_v2 = vld [vmem:[%s2193_s10 + $0x8] sm:$0xff]  ;;  %v1581_v7 = vld [vmem:[%s2193_s10 + $0x10] sm:$0xff]  ;;  %s1853_s17 = sshll.u32 %s2111_s16, 8  ;;  %p1846_p8 = scmp.ne.s32.totalorder %s2111_s16, 1 }
  0x50   : > { %v1577_v3 = vld [vmem:[%s2193_s10 + $0x80] sm:$0xff]  ;;  %v210_v4 = vmax.f32 %v207_v1, %v1576_v2  ;;  %v1578_v5 = vld [vmem:[%s2193_s10 + $0x88] sm:$0xff]  ;;  %v226_v8 = vmax.f32 %v1576_v2, %v1581_v7  ;;  %v1582_v9 = vld [vmem:[%s2193_s10 + $0x18] sm:$0xff]  ;;  %s2233_s18 = scalar_lea.vmem [#allocation3], %s1853_s17 }
  0x51   : > { %v1584_v10 = vld [vmem:[%s2193_s10 + $0x90] sm:$0xff]  ;;  %v1585_v11 = vld [vmem:[%s2193_s10 + $0x98] sm:$0xff]  ;;  %v2214_v12 = vmax.f32 %v1577_v3, %v1578_v5  ;;  %v1589_v16 = vld [vmem:[%s2193_s10 + $0x20] sm:$0xff] }
  0x52   : > { %v216_v6 = vld [vmem:[#allocation2 + $0x30] sm:$0xff]  ;;  %v233_v14 = vmax.f32 %v1578_v5, %v1584_v10  ;;  %v238_v15 = vld [vmem:[#allocation2] sm:$0xff]  ;;  %v1590_v17 = vld [vmem:[%s2193_s10 + $0x28] sm:$0xff]  ;;  %v229_v18 = vmax.f32 %v226_v8, %v1582_v9  ;;  %v248_v19 = vmax.f32 %v1582_v9, %v1589_v16 }
  0x53   : > { %v217_v13 = vmax.f32 %v216_v6, %v210_v4  ;;  %v1592_v20 = vld [vmem:[%s2193_s10 + $0xa0] sm:$0xff]  ;;  %v1593_v21 = vld [vmem:[%s2193_s10 + $0xa8] sm:$0xff]  ;;  %v260_v22 = vld [vmem:[#allocation2 + $0x18] sm:$0xff] }
  0x54   : > { %v255_v23 = vmax.f32 %v1585_v11, %v1592_v20  ;;  %v1597_v24 = vld [vmem:[%s2193_s10 + $0x30] sm:$0xff]  ;;  %v1598_v25 = vld [vmem:[%s2193_s10 + $0x38] sm:$0xff]  ;;  %v239_v28 = vmax.f32 %v238_v15, %v229_v18  ;;  %v251_v29 = vmax.f32 %v248_v19, %v1590_v17  ;;  %v1605_v34 = vld [vmem:[%s2193_s10 + $0x40] sm:$0xff]  ;;  %v2226_v35 = vmax.f32 %v233_v14, %v1585_v11 }
  0x55   : > { %v1600_v26 = vld [vmem:[%s2193_s10 + $0xb0] sm:$0xff]  ;;  %v218_v27 = vmax.f32 %v217_v13, %v2214_v12  ;;  %v270_v30 = vmax.f32 %v1590_v17, %v1597_v24  ;;  %v1601_v32 = vld [vmem:[%s2193_s10 + $0xb8] sm:$0xff]  ;;  %v292_v36 = vmax.f32 %v1598_v25, %v1605_v34  ;;  %v1606_v37 = vld [vmem:[%s2193_s10 + $0x48] sm:$0xff] }
  0x56   : > { %v277_v31 = vmax.f32 %v1593_v21, %v1600_v26  ;;  %v282_v33 = vld [vmem:[#allocation2 + $0x10] sm:$0xff]  ;;  %v1608_v38 = vld [vmem:[%s2193_s10 + $0xc0] sm:$0xff]  ;;  %v1609_v39 = vld [vmem:[%s2193_s10 + $0xc8] sm:$0xff]  ;;  %v2236_v40 = vmax.f32 %v255_v23, %v1593_v21  ;;  %v261_v41 = vmax.f32 %v260_v22, %v251_v29  ;;  %v240_v52 = vmax.f32 %v239_v28, %v2226_v35 }
  0x57   : > { %221 = vst [vmem:[%s2233_s18] sm:$0xff] %v218_v27  ;;  %v273_v42 = vmax.f32 %v270_v30, %v1598_v25  ;;  %v299_v43 = vmax.f32 %v1601_v32, %v1608_v38  ;;  %v304_v44 = vld [vmem:[#allocation2 + $0x8] sm:$0xff]  ;;  %v1613_v45 = vld [vmem:[%s2193_s10 + $0x50] sm:$0xff]  ;;  %v1614_v46 = vld [vmem:[%s2193_s10 + $0x58] sm:$0xff]  ;;  %v295_v47 = vmax.f32 %v292_v36, %v1606_v37 }
  0x58   : > { %v314_v48 = vmax.f32 %v1606_v37, %v1613_v45  ;;  %v1616_v49 = vld [vmem:[%s2193_s10 + $0xd0] sm:$0xff]  ;;  %v1617_v50 = vld [vmem:[%s2193_s10 + $0xd8] sm:$0xff]  ;;  %v326_v51 = vld [vmem:[#allocation2 + $0x20] sm:$0xff]  ;;  %v2243_v53 = vmax.f32 %v277_v31, %v1601_v32  ;;  %v262_v59 = vmax.f32 %v261_v41, %v2236_v40  ;;  %1587 = vst [vmem:[%s2233_s18 + $0x8] sm:$0xff] %v240_v52 }
  0x59   : > { %v283_v54 = vmax.f32 %v282_v33, %v273_v42  ;;  %v321_v55 = vmax.f32 %v1609_v39, %v1616_v49  ;;  %v1621_v56 = vld [vmem:[%s2193_s10 + $0x60] sm:$0xff]  ;;  %v1622_v57 = vld [vmem:[%s2193_s10 + $0x68] sm:$0xff]  ;;  %v305_v60 = vmax.f32 %v304_v44, %v295_v47  ;;  %v1629_v2 = vld [vmem:[%s2193_s10 + $0x70] sm:$0xff]  ;;  %v2252_v3 = vmax.f32 %v299_v43, %v1609_v39 }
  0x5a   : > { %v1624_v58 = vld [vmem:[%s2193_s10 + $0xe0] sm:$0xff]  ;;  %v317_v61 = vmax.f32 %v314_v48, %v1614_v46  ;;  %v336_v62 = vmax.f32 %v1614_v46, %v1621_v56  ;;  %v1625_v0 = vld [vmem:[%s2193_s10 + $0xe8] sm:$0xff]  ;;  %v358_v4 = vmax.f32 %v1622_v57, %v1629_v2  ;;  %v1630_v5 = vld [vmem:[%s2193_s10 + $0x78] sm:$0xff]  ;;  %1595 = vst [vmem:[%s2233_s18 + $0x10] sm:$0xff] %v262_v59 }
  0x5b   : > { %v343_v63 = vmax.f32 %v1617_v50, %v1624_v58  ;;  %v348_v1 = vld [vmem:[#allocation2 + $0x28] sm:$0xff]  ;;  %v1632_v6 = vld [vmem:[%s2193_s10 + $0xf0] sm:$0xff]  ;;  %v1633_v7 = vld [vmem:[%s2193_s10 + $0xf8] sm:$0xff]  ;;  %v284_v8 = vmax.f32 %v283_v54, %v2243_v53  ;;  %v2259_v9 = vmax.f32 %v321_v55, %v1617_v50  ;;  %v306_v23 = vmax.f32 %v305_v60, %v2252_v3 }
  0x5c   : > { %v327_v10 = vmax.f32 %v326_v51, %v317_v61  ;;  %v339_v11 = vmax.f32 %v336_v62, %v1622_v57  ;;  %v365_v13 = vmax.f32 %v1625_v0, %v1632_v6  ;;  %v370_v14 = vld [vmem:[#allocation2 + $0x38] sm:$0xff]  ;;  %v1636_v15 = vld [vmem:[%s2193_s10 + $0x100] sm:$0xff]  ;;  %v1637_v16 = vld [vmem:[%s2193_s10 + $0x108] sm:$0xff]  ;;  %v361_v18 = vmax.f32 %v358_v4, %v1630_v5 }
  0x5d   : > { %v2263_v17 = vmax.f32 %v343_v63, %v1625_v0  ;;  %v382_v19 = vmax.f32 %v1636_v15, %v1637_v16  ;;  %v1638_v20 = vld [vmem:[%s2193_s10 + $0x180] sm:$0xff]  ;;  %v1639_v21 = vld [vmem:[%s2193_s10 + $0x188] sm:$0xff]  ;;  %v1644_v22 = vld [vmem:[%s2193_s10 + $0x110] sm:$0xff]  ;;  %1603 = vst [vmem:[%s2233_s18 + $0x18] sm:$0xff] %v284_v8 }
  0x5e   : > { %v349_v24 = vmax.f32 %v348_v1, %v339_v11  ;;  %v2270_v25 = vmax.f32 %v365_v13, %v1633_v7  ;;  %v2272_v26 = vmax.f32 %v1638_v20, %v1639_v21  ;;  %v398_v27 = vmax.f32 %v1637_v16, %v1644_v22  ;;  %v1645_v28 = vld [vmem:[%s2193_s10 + $0x118] sm:$0xff]  ;;  %v1647_v29 = vld [vmem:[%s2193_s10 + $0x190] sm:$0xff]  ;;  %v1653_v34 = vld [vmem:[%s2193_s10 + $0x120] sm:$0xff]  ;;  %1611 = vst [vmem:[%s2233_s18 + $0x20] sm:$0xff] %v306_v23 }
  0x5f   : > { %v1648_v30 = vld [vmem:[%s2193_s10 + $0x198] sm:$0xff]  ;;  %v371_v31 = vmax.f32 %v370_v14, %v361_v18  ;;  %v389_v32 = vmax.f32 %v2214_v12, %v382_v19  ;;  %v405_v33 = vmax.f32 %v1639_v21, %v1647_v29  ;;  %v1654_v36 = vld [vmem:[%s2193_s10 + $0x128] sm:$0xff]  ;;  %v1656_v37 = vld [vmem:[%s2193_s10 + $0x1a0] sm:$0xff]  ;;  %v328_v38 = vmax.f32 %v327_v10, %v2259_v9 }
  0x60   : > { %v401_v39 = vmax.f32 %v398_v27, %v1645_v28  ;;  %v419_v41 = vmax.f32 %v1645_v28, %v1653_v34  ;;  %v426_v42 = vmax.f32 %v1648_v30, %v1656_v37  ;;  %v1657_v43 = vld [vmem:[%s2193_s10 + $0x1a8] sm:$0xff]  ;;  %v1662_v44 = vld [vmem:[%s2193_s10 + $0x130] sm:$0xff]  ;;  %v1663_v45 = vld [vmem:[%s2193_s10 + $0x138] sm:$0xff]  ;;  %v350_v12 = vmax.f32 %v349_v24, %v2263_v17 }
  0x61   : > { %v440_v46 = vmax.f32 %v1654_v36, %v1662_v44  ;;  %v1665_v47 = vld [vmem:[%s2193_s10 + $0x1b0] sm:$0xff]  ;;  %v1666_v48 = vld [vmem:[%s2193_s10 + $0x1b8] sm:$0xff]  ;;  %v1671_v49 = vld [vmem:[%s2193_s10 + $0x140] sm:$0xff]  ;;  %v390_v50 = vmax.f32 %v389_v32, %v2272_v26  ;;  %1619 = vst [vmem:[%s2233_s18 + $0x28] sm:$0xff] %v328_v38  ;;  %v372_v51 = vmax.f32 %v371_v31, %v2270_v25  ;;  %v2293_v52 = vmax.f32 %v405_v33, %v1648_v30 }
  0x62   : > { %v410_v54 = vmax.f32 %v2226_v35, %v401_v39  ;;  %v422_v55 = vmax.f32 %v419_v41, %v1654_v36  ;;  %v447_v56 = vmax.f32 %v1657_v43, %v1665_v47  ;;  %v1672_v57 = vld [vmem:[%s2193_s10 + $0x148] sm:$0xff]  ;;  %v1674_v58 = vld [vmem:[%s2193_s10 + $0x1c0] sm:$0xff]  ;;  %1627 = vst [vmem:[%s2233_s18 + $0x30] sm:$0xff] %v350_v12  ;;  %v2300_v60 = vmax.f32 %v426_v42, %v1657_v43  ;;  %v1680_v0 = vld [vmem:[%s2193_s10 + $0x150] sm:$0xff] }
  0x63   : > { %v1675_v59 = vld [vmem:[%s2193_s10 + $0x1c8] sm:$0xff]  ;;  %v443_v61 = vmax.f32 %v440_v46, %v1663_v45  ;;  %v461_v62 = vmax.f32 %v1663_v45, %v1671_v49  ;;  %v468_v63 = vmax.f32 %v1666_v48, %v1674_v58  ;;  %v1681_v1 = vld [vmem:[%s2193_s10 + $0x158] sm:$0xff]  ;;  %v1683_v2 = vld [vmem:[%s2193_s10 + $0x1d0] sm:$0xff]  ;;  %1642 = vst [vmem:[%s2233_s18 + $0x40] sm:$0xff] %v390_v50  ;;  %v482_v5 = vmax.f32 %v1672_v57, %v1680_v0 }
  0x64   : > { %1635 = vst [vmem:[%s2233_s18 + $0x38] sm:$0xff] %v372_v51  ;;  %v431_v35 = vmax.f32 %v2236_v40, %v422_v55  ;;  %v2308_v4 = vmax.f32 %v447_v56, %v1666_v48  ;;  %v489_v6 = vmax.f32 %v1675_v59, %v1683_v2  ;;  %v1684_v7 = vld [vmem:[%s2193_s10 + $0x1d8] sm:$0xff]  ;;  %v1689_v8 = vld [vmem:[%s2193_s10 + $0x160] sm:$0xff]  ;;  %v1690_v10 = vld [vmem:[%s2193_s10 + $0x168] sm:$0xff]  ;;  %v411_v30 = vmax.f32 %v410_v54, %v2293_v52 }
  0x65   : > { %v452_v11 = vmax.f32 %v2243_v53, %v443_v61  ;;  %v464_v13 = vmax.f32 %v461_v62, %v1672_v57  ;;  %v2314_v14 = vmax.f32 %v468_v63, %v1675_v59  ;;  %v503_v15 = vmax.f32 %v1681_v1, %v1689_v8  ;;  %v1692_v16 = vld [vmem:[%s2193_s10 + $0x1e0] sm:$0xff]  ;;  %v1693_v40 = vld [vmem:[%s2193_s10 + $0x1e8] sm:$0xff]  ;;  %v1698_v18 = vld [vmem:[%s2193_s10 + $0x170] sm:$0xff] }
  0x66   : > { %v485_v19 = vmax.f32 %v482_v5, %v1681_v1  ;;  %v2319_v20 = vmax.f32 %v489_v6, %v1684_v7  ;;  %v510_v21 = vmax.f32 %v1684_v7, %v1692_v16  ;;  %v524_v22 = vmax.f32 %v1690_v10, %v1698_v18  ;;  %v1699_v23 = vld [vmem:[%s2193_s10 + $0x178] sm:$0xff]  ;;  %v1701_v53 = vld [vmem:[%s2193_s10 + $0x1f0] sm:$0xff]  ;;  %v1706_v31 = vld [vmem:[%s2193_s10 + $0x200] sm:$0xff]  ;;  %1651 = vst [vmem:[%s2233_s18 + $0x48] sm:$0xff] %v411_v30 }
  0x67   : > { %v1702_v24 = vld [vmem:[%s2193_s10 + $0x1f8] sm:$0xff]  ;;  %v473_v27 = vmax.f32 %v2252_v3, %v464_v13  ;;  %v506_v28 = vmax.f32 %v503_v15, %v1690_v10  ;;  %v531_v29 = vmax.f32 %v1693_v40, %v1701_v53  ;;  %v1707_v32 = vld [vmem:[%s2193_s10 + $0x208] sm:$0xff]  ;;  %v1708_v33 = vld [vmem:[%s2193_s10 + $0x280] sm:$0xff]  ;;  %v432_v38 = vmax.f32 %v431_v35, %v2300_v60 }
  0x68   : > { %v494_v34 = vmax.f32 %v2259_v9, %v485_v19  ;;  %v2330_v36 = vmax.f32 %v510_v21, %v1693_v40  ;;  %v527_v37 = vmax.f32 %v524_v22, %v1699_v23  ;;  %v1709_v3 = vld [vmem:[%s2193_s10 + $0x288] sm:$0xff]  ;;  %v1714_v39 = vld [vmem:[%s2193_s10 + $0x210] sm:$0xff]  ;;  %v1715_v41 = vld [vmem:[%s2193_s10 + $0x218] sm:$0xff]  ;;  %v453_v9 = vmax.f32 %v452_v11, %v2308_v4 }
  0x69   : > { %v515_v42 = vmax.f32 %v2263_v17, %v506_v28  ;;  %v2337_v43 = vmax.f32 %v531_v29, %v1702_v24  ;;  %v474_v44 = vmax.f32 %v473_v27, %v2314_v14  ;;  %v1717_v45 = vld [vmem:[%s2193_s10 + $0x290] sm:$0xff]  ;;  %v1718_v12 = vld [vmem:[%s2193_s10 + $0x298] sm:$0xff]  ;;  %v1723_v46 = vld [vmem:[%s2193_s10 + $0x220] sm:$0xff]  ;;  %1660 = vst [vmem:[%s2233_s18 + $0x50] sm:$0xff] %v432_v38  ;;  %v547_v48 = vmax.f32 %v1706_v31, %v1707_v32 }
  0x6a   : > { %v536_v47 = vmax.f32 %v2270_v25, %v527_v37  ;;  %v495_v17 = vmax.f32 %v494_v34, %v2319_v20  ;;  %v2348_v49 = vmax.f32 %v1708_v33, %v1709_v3  ;;  %v1724_v50 = vld [vmem:[%s2193_s10 + $0x228] sm:$0xff]  ;;  %v1726_v51 = vld [vmem:[%s2193_s10 + $0x2a0] sm:$0xff]  ;;  %1669 = vst [vmem:[%s2233_s18 + $0x58] sm:$0xff] %v453_v9  ;;  %v563_v25 = vmax.f32 %v1707_v32, %v1714_v39  ;;  %v1732_v58 = vld [vmem:[%s2193_s10 + $0x230] sm:$0xff] }
  0x6b   : > { %v1727_v54 = vld [vmem:[%s2193_s10 + $0x2a8] sm:$0xff]  ;;  %1678 = vst [vmem:[%s2233_s18 + $0x60] sm:$0xff] %v474_v44  ;;  %v516_v55 = vmax.f32 %v515_v42, %v2330_v36  ;;  %v570_v56 = vmax.f32 %v1709_v3, %v1717_v45  ;;  %v584_v57 = vmax.f32 %v1715_v41, %v1723_v46  ;;  %v1733_v59 = vld [vmem:[%s2193_s10 + $0x238] sm:$0xff]  ;;  %v1735_v61 = vld [vmem:[%s2193_s10 + $0x2b0] sm:$0xff]  ;;  %v554_v63 = vmax.f32 %v2272_v26, %v547_v48 }
  0x6c   : > { %1687 = vst [vmem:[%s2233_s18 + $0x68] sm:$0xff] %v495_v17  ;;  %v537_v62 = vmax.f32 %v536_v47, %v2337_v43  ;;  %v591_v0 = vmax.f32 %v1718_v12, %v1726_v51  ;;  %v605_v1 = vmax.f32 %v1724_v50, %v1732_v58  ;;  %v1736_v2 = vld [vmem:[%s2193_s10 + $0x2b8] sm:$0xff]  ;;  %v1741_v35 = vld [vmem:[%s2193_s10 + $0x240] sm:$0xff]  ;;  %v1742_v5 = vld [vmem:[%s2193_s10 + $0x248] sm:$0xff]  ;;  %v566_v6 = vmax.f32 %v563_v25, %v1715_v41 }
  0x6d   : > { %1696 = vst [vmem:[%s2233_s18 + $0x70] sm:$0xff] %v516_v55  ;;  %v2366_v7 = vmax.f32 %v570_v56, %v1718_v12  ;;  %v587_v8 = vmax.f32 %v584_v57, %v1724_v50  ;;  %v612_v10 = vmax.f32 %v1727_v54, %v1735_v61  ;;  %v1744_v11 = vld [vmem:[%s2193_s10 + $0x2c0] sm:$0xff]  ;;  %v1745_v13 = vld [vmem:[%s2193_s10 + $0x2c8] sm:$0xff]  ;;  %v1750_v26 = vld [vmem:[%s2193_s10 + $0x250] sm:$0xff]  ;;  %v626_v40 = vmax.f32 %v1733_v59, %v1741_v35 }
  0x6e   : > { %1705 = vst [vmem:[%s2233_s18 + $0x78] sm:$0xff] %v537_v62  ;;  %v2372_v15 = vmax.f32 %v591_v0, %v1727_v54  ;;  %v608_v16 = vmax.f32 %v605_v1, %v1733_v59  ;;  %v633_v18 = vmax.f32 %v1736_v2, %v1744_v11  ;;  %v1751_v19 = vld [vmem:[%s2193_s10 + $0x258] sm:$0xff]  ;;  %v1753_v21 = vld [vmem:[%s2193_s10 + $0x2d0] sm:$0xff]  ;;  %v575_v23 = vmax.f32 %v2293_v52, %v566_v6  ;;  %v1759_v28 = vld [vmem:[%s2193_s10 + $0x260] sm:$0xff] }
  0x6f   : > { %v1754_v22 = vld [vmem:[%s2193_s10 + $0x2d8] sm:$0xff]  ;;  %v596_v53 = vmax.f32 %v2300_v60, %v587_v8  ;;  %v2379_v24 = vmax.f32 %v612_v10, %v1736_v2  ;;  %v647_v27 = vmax.f32 %v1742_v5, %v1750_v26  ;;  %v1760_v29 = vld [vmem:[%s2193_s10 + $0x268] sm:$0xff]  ;;  %v1762_v30 = vld [vmem:[%s2193_s10 + $0x2e0] sm:$0xff]  ;;  %v629_v32 = vmax.f32 %v626_v40, %v1742_v5 }
  0x70   : > { %v617_v31 = vmax.f32 %v2308_v4, %v608_v16  ;;  %v2385_v33 = vmax.f32 %v633_v18, %v1745_v13  ;;  %v654_v34 = vmax.f32 %v1745_v13, %v1753_v21  ;;  %v1763_v52 = vld [vmem:[%s2193_s10 + $0x2e8] sm:$0xff]  ;;  %v1768_v37 = vld [vmem:[%s2193_s10 + $0x270] sm:$0xff]  ;;  %v1769_v60 = vld [vmem:[%s2193_s10 + $0x278] sm:$0xff]  ;;  %v668_v3 = vmax.f32 %v1751_v19, %v1759_v28 }
  0x71   : > { %v650_v38 = vmax.f32 %v647_v27, %v1751_v19  ;;  %v675_v39 = vmax.f32 %v1754_v22, %v1762_v30  ;;  %v689_v41 = vmax.f32 %v1760_v29, %v1768_v37  ;;  %v1771_v42 = vld [vmem:[%s2193_s10 + $0x2f0] sm:$0xff]  ;;  %v1772_v9 = vld [vmem:[%s2193_s10 + $0x2f8] sm:$0xff]  ;;  %v638_v4 = vmax.f32 %v2314_v14, %v629_v32  ;;  %v1776_v46 = vld [vmem:[%s2193_s10 + $0x300] sm:$0xff] }
  0x72   : > { %v2393_v44 = vmax.f32 %v654_v34, %v1754_v22  ;;  %v696_v45 = vmax.f32 %v1763_v52, %v1771_v42  ;;  %v555_v12 = vmax.f32 %v554_v63, %v2348_v49  ;;  %v1777_v47 = vld [vmem:[%s2193_s10 + $0x308] sm:$0xff]  ;;  %v1778_v17 = vld [vmem:[%s2193_s10 + $0x380] sm:$0xff]  ;;  %v671_v50 = vmax.f32 %v668_v3, %v1760_v29  ;;  %v1784_v14 = vld [vmem:[%s2193_s10 + $0x310] sm:$0xff] }
  0x73   : > { %v659_v48 = vmax.f32 %v2319_v20, %v650_v38  ;;  %v2400_v51 = vmax.f32 %v675_v39, %v1763_v52  ;;  %v692_v54 = vmax.f32 %v689_v41, %v1769_v60  ;;  %v1779_v55 = vld [vmem:[%s2193_s10 + $0x388] sm:$0xff]  ;;  %v1787_v25 = vld [vmem:[%s2193_s10 + $0x390] sm:$0xff]  ;;  %v576_v57 = vmax.f32 %v575_v23, %v2366_v7  ;;  %v1785_v59 = vld [vmem:[%s2193_s10 + $0x318] sm:$0xff] }
  0x74   : > { %v2405_v56 = vmax.f32 %v696_v45, %v1772_v9  ;;  %1712 = vst [vmem:[%s2233_s18 + $0x80] sm:$0xff] %v555_v12  ;;  %v597_v20 = vmax.f32 %v596_v53, %v2372_v15  ;;  %v618_v58 = vmax.f32 %v617_v31, %v2379_v24  ;;  %v1788_v61 = vld [vmem:[%s2193_s10 + $0x398] sm:$0xff]  ;;  %v1793_v62 = vld [vmem:[%s2193_s10 + $0x320] sm:$0xff]  ;;  %v680_v63 = vmax.f32 %v2330_v36, %v671_v50  ;;  %v1794_v35 = vld [vmem:[%s2193_s10 + $0x328] sm:$0xff] }
  0x75   : > { %v701_v0 = vmax.f32 %v2337_v43, %v692_v54  ;;  %v639_v1 = vmax.f32 %v638_v4, %v2385_v33  ;;  %v660_v2 = vmax.f32 %v659_v48, %v2393_v44  ;;  %v1796_v5 = vld [vmem:[%s2193_s10 + $0x3a0] sm:$0xff]  ;;  %v1802_v6 = vld [vmem:[%s2193_s10 + $0x330] sm:$0xff]  ;;  %1721 = vst [vmem:[%s2233_s18 + $0x88] sm:$0xff] %v576_v57  ;;  %v712_v8 = vmax.f32 %v1776_v46, %v1777_v47  ;;  %v1797_v43 = vld [vmem:[%s2193_s10 + $0x3a8] sm:$0xff] }
  0x76   : > { %1730 = vst [vmem:[%s2233_s18 + $0x90] sm:$0xff] %v597_v20  ;;  %1739 = vst [vmem:[%s2233_s18 + $0x98] sm:$0xff] %v618_v58  ;;  %v717_v36 = vmax.f32 %v1778_v17, %v1779_v55  ;;  %v728_v10 = vmax.f32 %v1777_v47, %v1784_v14  ;;  %v735_v11 = vmax.f32 %v1779_v55, %v1787_v25  ;;  %v1803_v13 = vld [vmem:[%s2193_s10 + $0x338] sm:$0xff]  ;;  %v1805_v26 = vld [vmem:[%s2193_s10 + $0x3b0] sm:$0xff] }
  0x77   : > { %1748 = vst [vmem:[%s2233_s18 + $0xa0] sm:$0xff] %v639_v1  ;;  %1757 = vst [vmem:[%s2233_s18 + $0xa8] sm:$0xff] %v660_v2  ;;  %v681_v16 = vmax.f32 %v680_v63, %v2400_v51  ;;  %v702_v40 = vmax.f32 %v701_v0, %v2405_v56  ;;  %v749_v18 = vmax.f32 %v1785_v59, %v1793_v62  ;;  %v1806_v21 = vld [vmem:[%s2193_s10 + $0x3b8] sm:$0xff]  ;;  %v1811_v22 = vld [vmem:[%s2193_s10 + $0x340] sm:$0xff] }
  0x78   : > { %v756_v19 = vmax.f32 %v1788_v61, %v1796_v5  ;;  %v1814_v23 = vld [vmem:[%s2193_s10 + $0x3c0] sm:$0xff]  ;;  %v719_v53 = vmax.f32 %v2348_v49, %v712_v8  ;;  %724 = vst [vmem:[#allocation2 + $0x30] sm:$0xff] %v717_v36  ;;  %v731_v27 = vmax.f32 %v728_v10, %v1785_v59  ;;  %v738_v28 = vmax.f32 %v735_v11, %v1788_v61  ;;  %v1812_v30 = vld [vmem:[%s2193_s10 + $0x348] sm:$0xff]  ;;  %v1820_v31 = vld [vmem:[%s2193_s10 + $0x350] sm:$0xff] }
  0x79   : > { %v770_v29 = vmax.f32 %v1794_v35, %v1802_v6  ;;  %1766 = vst [vmem:[%s2233_s18 + $0xb0] sm:$0xff] %v681_v16  ;;  %1775 = vst [vmem:[%s2233_s18 + $0xb8] sm:$0xff] %v702_v40  ;;  %v752_v32 = vmax.f32 %v749_v18, %v1794_v35  ;;  %v777_v52 = vmax.f32 %v1797_v43, %v1805_v26  ;;  %v1815_v60 = vld [vmem:[%s2193_s10 + $0x3c8] sm:$0xff]  ;;  %v1823_v38 = vld [vmem:[%s2193_s10 + $0x3d0] sm:$0xff] }
  0x7a   : > { %v759_v34 = vmax.f32 %v756_v19, %v1797_v43  ;;  %v791_v37 = vmax.f32 %v1803_v13, %v1811_v22  ;;  %v720_v49 = vmax.f32 %v719_v53, %v717_v36  ;;  %v740_v3 = vmax.f32 %v2366_v7, %v731_v27  ;;  %745 = vst [vmem:[#allocation2] sm:$0xff] %v738_v28  ;;  %v1821_v42 = vld [vmem:[%s2193_s10 + $0x358] sm:$0xff]  ;;  %v1829_v4 = vld [vmem:[%s2193_s10 + $0x360] sm:$0xff]  ;;  %v1830_v17 = vld [vmem:[%s2193_s10 + $0x368] sm:$0xff] }
  0x7b   : > { %v773_v39 = vmax.f32 %v770_v29, %v1803_v13  ;;  %v798_v41 = vmax.f32 %v1806_v21, %v1814_v23  ;;  %v1824_v9 = vld [vmem:[%s2193_s10 + $0x3d8] sm:$0xff]  ;;  %v761_v45 = vmax.f32 %v2372_v15, %v752_v32  ;;  %v780_v12 = vmax.f32 %v777_v52, %v1806_v21  ;;  %v1832_v48 = vld [vmem:[%s2193_s10 + $0x3e0] sm:$0xff]  ;;  %v1838_v50 = vld [vmem:[%s2193_s10 + $0x370] sm:$0xff] }
  0x7c   : > { %766 = vst [vmem:[#allocation2 + $0x18] sm:$0xff] %v759_v34  ;;  %v794_v46 = vmax.f32 %v791_v37, %v1812_v30  ;;  %v812_v47 = vmax.f32 %v1812_v30, %v1820_v31  ;;  %1782 = vst [vmem:[%s2233_s18 + $0xc0] sm:$0xff] %v720_v49  ;;  %v741_v7 = vmax.f32 %v740_v3, %v738_v28  ;;  %v1833_v25 = vld [vmem:[%s2193_s10 + $0x3e8] sm:$0xff]  ;;  %v1841_v57 = vld [vmem:[%s2193_s10 + $0x3f0] sm:$0xff] }
  0x7d   : > { %v782_v54 = vmax.f32 %v2379_v24, %v773_v39  ;;  %v801_v55 = vmax.f32 %v798_v41, %v1815_v60  ;;  %v819_v14 = vmax.f32 %v1815_v60, %v1823_v38  ;;  %v762_v15 = vmax.f32 %v761_v45, %v759_v34  ;;  %787 = vst [vmem:[#allocation2 + $0x10] sm:$0xff] %v780_v12  ;;  %v1839_v61 = vld [vmem:[%s2193_s10 + $0x378] sm:$0xff] }
  0x7e   : > { %v803_v20 = vmax.f32 %v2385_v33, %v794_v46  ;;  %v815_v58 = vmax.f32 %v812_v47, %v1821_v42  ;;  %v833_v59 = vmax.f32 %v1821_v42, %v1829_v4  ;;  %1791 = vst [vmem:[%s2233_s18 + $0xc8] sm:$0xff] %v741_v7  ;;  %v840_v24 = vmax.f32 %v1824_v9, %v1832_v48  ;;  %v1842_v1 = vld [vmem:[%s2193_s10 + $0x3f8] sm:$0xff] }
  0x7f   : > { %v783_v62 = vmax.f32 %v782_v54, %v780_v12  ;;  %808 = vst [vmem:[#allocation2 + $0x8] sm:$0xff] %v801_v55  ;;  %v822_v63 = vmax.f32 %v819_v14, %v1824_v9  ;;  %v854_v0 = vmax.f32 %v1830_v17, %v1838_v50  ;;  %1800 = vst [vmem:[%s2233_s18 + $0xd0] sm:$0xff] %v762_v15 }
  0x80   : > { %v804_v2 = vmax.f32 %v803_v20, %v801_v55  ;;  %v824_v35 = vmax.f32 %v2393_v44, %v815_v58  ;;  %v836_v5 = vmax.f32 %v833_v59, %v1830_v17  ;;  %v861_v33 = vmax.f32 %v1833_v25, %v1841_v57 }
  0x81   : > { %1809 = vst [vmem:[%s2233_s18 + $0xd8] sm:$0xff] %v783_v62  ;;  %829 = vst [vmem:[#allocation2 + $0x20] sm:$0xff] %v822_v63  ;;  %v843_v6 = vmax.f32 %v840_v24, %v1833_v25  ;;  %v857_v8 = vmax.f32 %v854_v0, %v1839_v61 }
  0x82   : > { %1818 = vst [vmem:[%s2233_s18 + $0xe0] sm:$0xff] %v804_v2  ;;  %v825_v36 = vmax.f32 %v824_v35, %v822_v63  ;;  %v845_v10 = vmax.f32 %v2400_v51, %v836_v5  ;;  %v864_v11 = vmax.f32 %v861_v33, %v1842_v1 }
  0x83   : > { %850 = vst [vmem:[#allocation2 + $0x28] sm:$0xff] %v843_v6  ;;  %v866_v43 = vmax.f32 %v2405_v56, %v857_v8  ;;  %875 = sbr.rel (%p1846_p8) target bundleno = 385 (0x181), region = 48 }
  0x84   : > { %1827 = vst [vmem:[%s2233_s18 + $0xe8] sm:$0xff] %v825_v36  ;;  %v846_v13 = vmax.f32 %v845_v10, %v843_v6  ;;  %871 = vst [vmem:[#allocation2 + $0x38] sm:$0xff] %v864_v11 }
  0x85   : > { %v867_v44 = vmax.f32 %v866_v43, %v864_v11 }
  0x86   : > { %1836 = vst [vmem:[%s2233_s18 + $0xf0] sm:$0xff] %v846_v13 }
  0x87   : > { %1845 = vst [vmem:[%s2233_s18 + $0xf8] sm:$0xff] %v867_v44 }
  0x88   : > { %v1291_v26 = vld [vmem:[#allocation11 + $0xf8] sm:$0xff]  ;;  %v1290_v16 = vld [vmem:[#allocation11 + $0xf0] sm:$0xff]  ;;  %v1289_v40 = vld [vmem:[#allocation11 + $0xe8] sm:$0xff]  ;;  %v2070_v19 = vmov 0.0  }
  0x89   : > { %1304 = vmatprep.subr.mxu0 %v1291_v26  ;;  %v1288_v18 = vld [vmem:[#allocation11 + $0xe0] sm:$0xff]  ;;  %1368 = vmatprep.mubr.f32.mxu0 %v2070_v19  ;;  %v1287_v51 = vld [vmem:[#allocation11 + $0xd8] sm:$0xff]  ;;  %v1286_v56 = vld [vmem:[#allocation11 + $0xd0] sm:$0xff] }
  0x8a   : > { %1305 = vmatpush1.msra.mxu0 %v1290_v16  ;;  %v1285_v21 = vld [vmem:[#allocation11 + $0xc8] sm:$0xff]  ;;  %v1284_v22 = vld [vmem:[#allocation11 + $0xc0] sm:$0xff]  ;;  %v1283_v23 = vld [vmem:[#allocation11 + $0xb8] sm:$0xff] }
  0x8b   : > { %1306 = vmatprep.subr.mxu0 %v1289_v40  ;;  %v1282_v53 = vld [vmem:[#allocation11 + $0xb0] sm:$0xff]  ;;  %v1281_v27 = vld [vmem:[#allocation11 + $0xa8] sm:$0xff]  ;;  %v1280_v28 = vld [vmem:[#allocation11 + $0xa0] sm:$0xff] }
  0x8c   : > { %1307 = vmatpush1.msra.mxu0 %v1288_v18  ;;  %v1279_v29 = vld [vmem:[#allocation11 + $0x98] sm:$0xff]  ;;  %v1278_v30 = vld [vmem:[#allocation11 + $0x90] sm:$0xff]  ;;  %v1277_v31 = vld [vmem:[#allocation11 + $0x88] sm:$0xff] }
  0x8d   : > { %1308 = vmatprep.subr.mxu0 %v1287_v51  ;;  %v1276_v34 = vld [vmem:[#allocation11 + $0x80] sm:$0xff]  ;;  %v1275_v38 = vld [vmem:[#allocation11 + $0x78] sm:$0xff]  ;;  %v1274_v42 = vld [vmem:[#allocation11 + $0x70] sm:$0xff] }
  0x8e   : > { %1309 = vmatpush1.msra.mxu0 %v1286_v56  ;;  %v876_v32 = vld [vmem:[#allocation3] sm:$0xff]  ;;  %v878_v52 = vld [vmem:[#allocation3 + $0x8] sm:$0xff]  ;;  %v889_v3 = vld [vmem:[#allocation3 + $0x10] sm:$0xff] }
  0x8f   : > { %1310 = vmatprep.subr.mxu0 %v1285_v21  ;;  %v881_v37 = vld [vmem:[#allocation3 + $0x40] sm:$0xff]  ;;  %v2467_v60 = vld [vmem:[#allocation3 + $0x48] sm:$0xff]  ;;  %v879_v49 = vmax.f32 %v876_v32, %v878_v52  ;;  %v892_v39 = vld [vmem:[#allocation3 + $0x18] sm:$0xff]  ;;  %v890_v9 = vmax.f32 %v878_v52, %v889_v3 }
  0x90   : > { %1311 = vmatpush1.msra.mxu0 %v1284_v22  ;;  %v897_v41 = vld [vmem:[#allocation3 + $0x50] sm:$0xff]  ;;  %v2469_v4 = vld [vmem:[#allocation3 + $0x58] sm:$0xff]  ;;  %v906_v45 = vld [vmem:[#allocation3 + $0x20] sm:$0xff]  ;;  %v940_v46 = vmax.f32 %v881_v37, %v2467_v60 }
  0x91   : > { %1312 = vmatprep.subr.mxu0 %v1283_v23  ;;  %v909_v12 = vld [vmem:[#allocation3 + $0x28] sm:$0xff]  ;;  %v957_v47 = vmax.f32 %v2467_v60, %v897_v41  ;;  %v907_v48 = vmax.f32 %v892_v39, %v906_v45  ;;  %v914_v50 = vld [vmem:[#allocation3 + $0x60] sm:$0xff]  ;;  %v923_v54 = vld [vmem:[#allocation3 + $0x30] sm:$0xff]  ;;  %v893_v14 = vmax.f32 %v890_v9, %v892_v39  ;;  %v2481_v62 = vmax.f32 %v879_v49, %v881_v37 }
  0x92   : > { %1313 = vmatpush1.msra.mxu0 %v1282_v53  ;;  %v1273_v17 = vld [vmem:[#allocation11 + $0x68] sm:$0xff]  ;;  %v1272_v55 = vld [vmem:[#allocation11 + $0x60] sm:$0xff]  ;;  %v924_v25 = vmax.f32 %v909_v12, %v923_v54  ;;  %v926_v57 = vld [vmem:[#allocation3 + $0x38] sm:$0xff]  ;;  %v980_v59 = vmax.f32 %v2469_v4, %v914_v50 }
  0x93   : > { %1314 = vmatprep.subr.mxu0 %v1281_v27  ;;  %v2473_v7 = vld [vmem:[#allocation3 + $0x68] sm:$0xff]  ;;  %v2475_v15 = vld [vmem:[#allocation3 + $0x70] sm:$0xff]  ;;  %v2477_v20 = vld [vmem:[#allocation3 + $0x78] sm:$0xff]  ;;  %v959_v58 = vmax.f32 %v957_v47, %v2469_v4  ;;  %v910_v63 = vmax.f32 %v907_v48, %v909_v12  ;;  %v895_v35 = vmax.f32 %v893_v14, %v2467_v60 }
  0x94   : > { %1315 = vmatpush1.msra.mxu0 %v1280_v28  ;;  %v1271_v61 = vld [vmem:[#allocation11 + $0x58] sm:$0xff]  ;;  %v942_v24 = vld [vmem:[#allocation3 + $0x80] sm:$0xff]  ;;  %v945_v0 = vld [vmem:[#allocation3 + $0x88] sm:$0xff]  ;;  %v1003_v2 = vmax.f32 %v2473_v7, %v2475_v15  ;;  %v927_v5 = vmax.f32 %v924_v25, %v926_v57  ;;  %v982_v26 = vmax.f32 %v980_v59, %v2473_v7 }
  0x95   : > { %1316 = vmatprep.subr.mxu0 %v1279_v29  ;;  %v948_v1 = vld [vmem:[#allocation3 + $0xc0] sm:$0xff]  ;;  %v943_v33 = vmax.f32 %v940_v46, %v942_v24  ;;  %v2486_v6 = vld [vmem:[#allocation3 + $0xc8] sm:$0xff]  ;;  %v961_v8 = vmax.f32 %v959_v58, %v945_v0  ;;  %v963_v36 = vld [vmem:[#allocation3 + $0x90] sm:$0xff]  ;;  %v912_v13 = vmax.f32 %v910_v63, %v2469_v4  ;;  %v898_v19 = vmax.f32 %v895_v35, %v897_v41 }
  0x96   : > { %1317 = vmatpush1.msra.mxu0 %v1278_v30  ;;  %v966_v10 = vld [vmem:[#allocation3 + $0x98] sm:$0xff]  ;;  %v1270_v11 = vld [vmem:[#allocation11 + $0x50] sm:$0xff]  ;;  %v1269_v43 = vld [vmem:[#allocation11 + $0x48] sm:$0xff]  ;;  %v1005_v16 = vmax.f32 %v1003_v2, %v2477_v20  ;;  %v1026_v40 = vmax.f32 %v948_v1, %v2486_v6  ;;  %v929_v51 = vmax.f32 %v927_v5, %v2473_v7 }
  0x97   : > { %1318 = vmatprep.subr.mxu0 %v1277_v31  ;;  %v2489_v44 = vld [vmem:[#allocation3 + $0xd0] sm:$0xff]  ;;  %v1268_v18 = vld [vmem:[#allocation11 + $0x40] sm:$0xff]  ;;  %v946_v56 = vmax.f32 %v943_v33, %v945_v0  ;;  %v964_v21 = vmax.f32 %v961_v8, %v963_v36  ;;  %v989_v23 = vld [vmem:[#allocation3 + $0xa8] sm:$0xff]  ;;  %v984_v28 = vmax.f32 %v982_v26, %v966_v10  ;;  %v2503_v52 = vmax.f32 %v912_v13, %v914_v50 }
  0x98   : > { %1319 = vmatpush1.msra.mxu0 %v1276_v34  ;;  %v986_v22 = vld [vmem:[#allocation3 + $0xa0] sm:$0xff]  ;;  %v1267_v53 = vld [vmem:[#allocation11 + $0x38] sm:$0xff]  ;;  %v1007_v30 = vmax.f32 %v1005_v16, %v989_v23  ;;  %v1009_v31 = vld [vmem:[#allocation3 + $0xb0] sm:$0xff]  ;;  %v1043_v32 = vmax.f32 %v2486_v6, %v2489_v44  ;;  %v885_v34 = vmax.f32 %v2481_v62, %v2467_v60  ;;  %v2508_v39 = vmax.f32 %v898_v19, %v2469_v4 }
  0x99   : > { %1320 = vmatprep.subr.mxu0 %v1275_v38  ;;  %v2495_v27 = vld [vmem:[#allocation3 + $0xd8] sm:$0xff]  ;;  %v2497_v29 = vld [vmem:[#allocation3 + $0xe0] sm:$0xff]  ;;  %v967_v37 = vmax.f32 %v964_v21, %v966_v10  ;;  %v2505_v38 = vld [vmem:[#allocation3 + $0xe8] sm:$0xff]  ;;  %v987_v41 = vmax.f32 %v984_v28, %v986_v22  ;;  %v2513_v50 = vmax.f32 %v929_v51, %v2475_v15  ;;  %v949_v54 = vmax.f32 %v946_v56, %v948_v1 }
  0x9a   : > { %1321 = vmatpush1.msra.mxu0 %v1274_v42  ;;  %v1012_v49 = vld [vmem:[#allocation3 + $0xb8] sm:$0xff]  ;;  %v1028_v3 = vld [vmem:[#allocation3 + $0x100] sm:$0xff]  ;;  %v1010_v42 = vmax.f32 %v1007_v30, %v1009_v31  ;;  %v2510_v9 = vld [vmem:[#allocation3 + $0xf0] sm:$0xff]  ;;  %v1045_v4 = vmax.f32 %v1043_v32, %v2495_v27  ;;  %v1066_v63 = vmax.f32 %v2495_v27, %v2497_v29 }
  0x9b   : > { %1322 = vmatprep.subr.mxu0 %v1273_v17  ;;  %v1029_v45 = vmax.f32 %v1026_v40, %v1028_v3  ;;  %v1031_v12 = vld [vmem:[#allocation3 + $0x108] sm:$0xff]  ;;  %v1034_v46 = vld [vmem:[#allocation3 + $0x140] sm:$0xff]  ;;  %v1266_v47 = vld [vmem:[#allocation11 + $0x30] sm:$0xff]  ;;  %v990_v14 = vmax.f32 %v987_v41, %v989_v23  ;;  %v1089_v35 = vmax.f32 %v2505_v38, %v2510_v9  ;;  %v935_v21 = vmax.f32 %v2513_v50, %v2477_v20 }
  0x9c   : > { %1323 = vmatpush1.msra.mxu0 %v1272_v55  ;;  %v1265_v17 = vld [vmem:[#allocation11 + $0x28] sm:$0xff]  ;;  %v1264_v48 = vld [vmem:[#allocation11 + $0x20] sm:$0xff]  ;;  %v969_v55 = vmax.f32 %v967_v37, %v2486_v6  ;;  %v1013_v25 = vmax.f32 %v1010_v42, %v1012_v49  ;;  %v2517_v57 = vld [vmem:[#allocation3 + $0xf8] sm:$0xff]  ;;  %v1047_v1 = vmax.f32 %v1045_v4, %v1031_v12  ;;  %v2542_v22 = vmax.f32 %v949_v54, %v2486_v6 }
  0x9d   : > { %1324 = vmatprep.subr.mxu0 %v1271_v61  ;;  %v1032_v58 = vmax.f32 %v1029_v45, %v1031_v12  ;;  %v2519_v59 = vld [vmem:[#allocation3 + $0x148] sm:$0xff]  ;;  %v1049_v61 = vld [vmem:[#allocation3 + $0x110] sm:$0xff]  ;;  %v1263_v15 = vld [vmem:[#allocation11 + $0x18] sm:$0xff]  ;;  %v992_v33 = vmax.f32 %v990_v14, %v2495_v27  ;;  %v1091_v19 = vmax.f32 %v1089_v35, %v2517_v57  ;;  %v1198_v4 = vmax.f32 %v885_v34, %v2508_v39 }
  0x9e   : > { %1325 = vmatpush1.msra.mxu0 %v1270_v11  ;;  %v1262_v24 = vld [vmem:[#allocation11 + $0x10] sm:$0xff]  ;;  %v972_v0 = vmax.f32 %v969_v55, %v2489_v44  ;;  %v1052_v2 = vld [vmem:[#allocation3 + $0x118] sm:$0xff]  ;;  %v1112_v5 = vmax.f32 %v1034_v46, %v2519_v59  ;;  %v1015_v8 = vmax.f32 %v1013_v25, %v2505_v38  ;;  %v1068_v11 = vmax.f32 %v1066_v63, %v2505_v38  ;;  %v1114_v13 = vld [vmem:[#allocation3 + $0x180] sm:$0xff] }
  0x9f   : > { %1326 = vmatprep.subr.mxu0 %v1269_v43  ;;  %v2529_v36 = vmax.f32 %v1032_v58, %v1034_v46  ;;  %v2531_v10 = vld [vmem:[#allocation3 + $0x150] sm:$0xff]  ;;  %v1075_v43 = vld [vmem:[#allocation3 + $0x128] sm:$0xff]  ;;  %v918_v44 = vmax.f32 %v2503_v52, %v2473_v7  ;;  %v1050_v26 = vmax.f32 %v1047_v1, %v1049_v61  ;;  %v1060_v16 = vld [vmem:[#allocation3 + $0x158] sm:$0xff]  ;;  %v995_v30 = vmax.f32 %v992_v33, %v2497_v29 }
  0xa0   : > { %1327 = vmatpush1.msra.mxu0 %v1268_v18  ;;  %v1072_v40 = vld [vmem:[#allocation3 + $0x120] sm:$0xff]  ;;  %v1115_v51 = vmax.f32 %v1112_v5, %v1114_v13  ;;  %v1261_v56 = vld [vmem:[#allocation11 + $0x8] sm:$0xff]  ;;  %v2545_v23 = vmax.f32 %v972_v0, %v2495_v27  ;;  %v1070_v7 = vmax.f32 %v1068_v11, %v1052_v2  ;;  %v1093_v52 = vmax.f32 %v1091_v19, %v1075_v43  ;;  %v2548_v37 = vld [vmem:[#allocation3 + $0x170] sm:$0xff] }
  0xa1   : > { %1328 = vmatprep.subr.mxu0 %v1267_v53  ;;  %v2536_v18 = vld [vmem:[#allocation3 + $0x160] sm:$0xff]  ;;  %v1095_v53 = vld [vmem:[#allocation3 + $0x130] sm:$0xff]  ;;  %v1053_v31 = vmax.f32 %v1050_v26, %v1052_v2  ;;  %v1083_v32 = vld [vmem:[#allocation3 + $0x168] sm:$0xff]  ;;  %v1129_v20 = vmax.f32 %v2519_v59, %v2531_v10  ;;  %v1018_v6 = vmax.f32 %v1015_v8, %v2510_v9  ;;  %v1038_v27 = vmax.f32 %v2529_v36, %v2519_v59 }
  0xa2   : > { %1329 = vmatpush1.msra.mxu0 %v1266_v47  ;;  %v1260_v28 = vld [vmem:[#allocation11] sm:$0xff]  ;;  %v1073_v49 = vmax.f32 %v1070_v7, %v1072_v40  ;;  %v1098_v3 = vld [vmem:[#allocation3 + $0x138] sm:$0xff]  ;;  %v1117_v41 = vld [vmem:[#allocation3 + $0x188] sm:$0xff]  ;;  %v1152_v42 = vmax.f32 %v1060_v16, %v2536_v18  ;;  %v1096_v45 = vmax.f32 %v1093_v52, %v1095_v53  ;;  %v1175_v55 = vmax.f32 %v1083_v32, %v2548_v37 }
  0xa3   : > { %1330 = vmatprep.subr.mxu0 %v1265_v17  ;;  %v1055_v29 = vmax.f32 %v1053_v31, %v2519_v59  ;;  %v1106_v12 = vld [vmem:[#allocation3 + $0x178] sm:$0xff]  ;;  %v1118_v46 = vmax.f32 %v1115_v51, %v1117_v41  ;;  %v1131_v47 = vmax.f32 %v1129_v20, %v1060_v16  ;;  %v1120_v50 = vld [vmem:[#allocation3 + $0x1c0] sm:$0xff]  ;;  %v1135_v9 = vld [vmem:[#allocation3 + $0x190] sm:$0xff]  ;;  %v998_v14 = vmax.f32 %v995_v30, %v2505_v38 }
  0xa4   : > { %1331 = vmatpush1.msra.mxu0 %v1264_v48  ;;  %v1138_v17 = vld [vmem:[#allocation3 + $0x198] sm:$0xff]  ;;  %v1076_v48 = vmax.f32 %v1073_v49, %v1075_v43  ;;  %v1154_v54 = vmax.f32 %v1152_v42, %v1083_v32  ;;  %v1099_v58 = vmax.f32 %v1096_v45, %v1098_v3  ;;  %v1158_v61 = vld [vmem:[#allocation3 + $0x1a0] sm:$0xff]  ;;  %v1161_v63 = vld [vmem:[#allocation3 + $0x1a8] sm:$0xff]  ;;  %v1177_v1 = vmax.f32 %v1175_v55, %v1106_v12 }
  0xa5   : > { %1332 = vmatprep.subr.mxu0 %v1263_v15  ;;  %v1058_v25 = vmax.f32 %v1055_v29, %v2531_v10  ;;  %v1133_v59 = vmax.f32 %v1131_v47, %v1117_v41  ;;  %v1021_v15 = vmax.f32 %v1018_v6, %v2517_v57  ;;  %v1121_v35 = vmax.f32 %v1118_v46, %v1120_v50  ;;  %v1181_v33 = vld [vmem:[#allocation3 + $0x1b0] sm:$0xff]  ;;  %v1123_v34 = vld [vmem:[#allocation3 + $0x1c8] sm:$0xff]  ;;  %v1146_v43 = vld [vmem:[#allocation3 + $0x1d8] sm:$0xff] }
  0xa6   : > { %1333 = vmatpush1.msra.mxu0 %v1262_v24  ;;  %v1078_v24 = vmax.f32 %v1076_v48, %v1060_v16  ;;  %v1156_v0 = vmax.f32 %v1154_v54, %v1138_v17  ;;  %v1101_v2 = vmax.f32 %v1099_v58, %v1083_v32  ;;  %v1206_v60 = vmax.f32 %v2508_v39, %v918_v44  ;;  %v1184_v57 = vld [vmem:[#allocation3 + $0x1b8] sm:$0xff]  ;;  %v1143_v19 = vld [vmem:[#allocation3 + $0x1d0] sm:$0xff]  ;;  %v1166_v7 = vld [vmem:[#allocation3 + $0x1e0] sm:$0xff] }
  0xa7   : > { %1334 = vmatprep.subr.mxu0 %v1261_v56  ;;  %v1136_v5 = vmax.f32 %v1133_v59, %v1135_v9  ;;  %v1179_v8 = vmax.f32 %v1177_v1, %v1161_v63  ;;  %v1200_v36 = vmax.f32 %v1198_v4, %v2542_v22  ;;  %v1061_v10 = vmax.f32 %v1058_v25, %v1060_v16  ;;  %v1169_v53 = vld [vmem:[#allocation3 + $0x1e8] sm:$0xff] }
  0xa8   : > { %1335 = vmatpush1.msra.mxu0 %v1260_v28  ;;  %v1081_v62 = vmax.f32 %v1078_v24, %v2536_v18  ;;  %v1159_v38 = vmax.f32 %v1156_v0, %v1158_v61  ;;  %v1208_v13 = vmax.f32 %v1206_v60, %v935_v21  ;;  %v1219_v26 = vmax.f32 %v2542_v22, %v2545_v23  ;;  %v1189_v22 = vld [vmem:[#allocation3 + $0x1f0] sm:$0xff] }
  0xa9   : > { %v1139_v11 = vmax.f32 %v1136_v5, %v1138_v17  ;;  %v1104_v40 = vmax.f32 %v1101_v2, %v2548_v37  ;;  %v1182_v39 = vmax.f32 %v1179_v8, %v1181_v33  ;;  %v1232_v44 = vmax.f32 %v2545_v23, %v998_v14 }
  0xaa   : > { %v1162_v51 = vmax.f32 %v1159_v38, %v1161_v63  ;;  %v1124_v18 = vmax.f32 %v1121_v35, %v1123_v34  ;;  %v1210_v16 = vmax.f32 %v1208_v13, %v2545_v23  ;;  %v1221_v28 = vmax.f32 %v1219_v26, %v1038_v27  ;;  %v1192_v27 = vld [vmem:[#allocation3 + $0x1f8] sm:$0xff]  ;;  %v1292_v63 = vld [vmem:[%s2604_s2] sm:$0x3] }
  0xab   : > { %v1141_v56 = vmax.f32 %v1139_v11, %v1123_v34  ;;  %v1084_v30 = vmax.f32 %v1081_v62, %v1083_v32  ;;  %v1185_v21 = vmax.f32 %v1182_v39, %v1184_v57  ;;  %v1234_v52 = vmax.f32 %v1232_v44, %v1021_v15 }
  0xac   : > { %v1164_v31 = vmax.f32 %v1162_v51, %v1146_v43  ;;  %v1202_v37 = vmax.f32 %v1200_v36, %v2545_v23  ;;  %v1212_v6 = vmax.f32 %v1210_v16, %v998_v14  ;;  %v1223_v49 = vmax.f32 %v1221_v28, %v1061_v10 }
  0xad   : > { %v1144_v20 = vmax.f32 %v1141_v56, %v1143_v19  ;;  %v1107_v3 = vmax.f32 %v1104_v40, %v1106_v12  ;;  %v1187_v42 = vmax.f32 %v1185_v21, %v1169_v53  ;;  %v1236_v29 = vmax.f32 %v1234_v52, %v1061_v10 }
  0xae   : > { %v1167_v41 = vmax.f32 %v1164_v31, %v1166_v7  ;;  %v1214_v45 = vmax.f32 %v1212_v6, %v1021_v15  ;;  %v1225_v46 = vmax.f32 %v1223_v49, %v1124_v18  ;;  %v1294_v12 = vlaneseq }
  0xaf   : > { %v1147_v47 = vmax.f32 %v1144_v20, %v1146_v43  ;;  %v1190_v17 = vmax.f32 %v1187_v42, %v1189_v22  ;;  %v1238_v48 = vmax.f32 %v1236_v29, %v1084_v30 }
  0xb0   : > { %v1170_v32 = vmax.f32 %v1167_v41, %v1169_v53  ;;  %v1251_v54 = vmax.f32 %v1202_v37, %v1214_v45  ;;  %v1295_v59 = vshrl.u32 %v1294_v12, 7 }
  0xb1   : > { %v1227_v50 = vmax.f32 %v1225_v46, %v1147_v47  ;;  %v1240_v9 = vmax.f32 %v1238_v48, %v1107_v3  ;;  %v1193_v55 = vmax.f32 %v1190_v17, %v1192_v27 }
  0xb2   : > { %v1296_v61 = vsub.s32 0, %v1295_v59  ;;  %v1300_v15 = vsub.s32 1, %v1295_v59 }
  0xb3   : > { %v1242_v4 = vmax.f32 %v1240_v9, %v1147_v47  ;;  %v1253_v23 = vmax.f32 %v1251_v54, %v1227_v50 }
  0xb4   : > { %v1297_v24 = vrot.slane %v1292_v63, %v1296_v61  ;;  %v1301_v0 = vrot.slane %v1292_v63, %v1300_v15 }
  0xb5   : > { %v1244_v25 = vmax.f32 %v1242_v4, %v1170_v32 }
  0xb7   : > { %v1246_v14 = vmax.f32 %v1244_v25, %v1193_v55 }
  0xb9   : > { %v1255_v58 = vmax.f32 %v1253_v23, %v1246_v14 }
  0xbb   : > { %1369 = vmatmul.mubr.f32.vlgmr.msra.gmra.mxu0 %v1255_v58 }
 0x17b   : > { %v1370_v1 = vpop.f32.mrf.mxu0 }
 0x17c   : > { %v1371_v2 = vadd.f32 %v1370_v1, %v1297_v24 }
 0x17d   : > { %v1372_v35 = vpop.f32.mrf.mxu0 }
 0x17e   : > { %1375 = vst [vmem:[#allocation13] sm:$0xff] %v1371_v2  ;;  %v1373_v5 = vadd.f32 %v1372_v35, %v1301_v0 }
 0x180   : > { %1376 = vst [vmem:[#allocation13 + $0x8] sm:$0xff] %v1373_v5 }
 0x181 PF: > { %p1899_p3 = scmp.eq.s32.totalorder %s2111_s16, 1  ;;  %s2071_s12 = smov [#allocation13]  }
 0x182   : > { %s1384_s19 = sshll.u32 %s2071_s12, 4  ;;  %s1385_s19 = int_to_ptr.vmem [resolvable:$true] %s1384_s19 }
 0x183   : > { %s1995_s15 = scalar_lea.vmem %s1385_s19, 256  ;;  %p2002_p11 = scmp.lt.s32.totalorder %s1385_s19, %s1385_s19 }
 0x184   : > { %p1996_p7 = scmp.ne.s32.totalorder %s1385_s19, %s1995_s15  ;;  %p2003_p12 = scmp.lt.s32.totalorder %s1995_s15, %s1995_s15 }
 0x186   : > { %p1997_p9 = pnand %p1996_p7, %p1899_p3  ;;  %p2004_p13 = por %p2003_p12, %p2002_p11 }
 0x188   : > { %p1998_p10 = pneg %p1997_p9 }
 0x18a   : > { %p2005_p2 = pnand %p2004_p13, %p1998_p10 }
 0x18c   : > { %2008 = shalt.err (!%p2005_p2)
}
 0x18d   : > { %1885 = dma.vmem_to_hbm [thread:$0]  (%p1899_p3), %s1385_s19, 256, %s2605_s3, [#allocation10]  }
 0x18e   : > { %2044 = dma.done.wait (%p1899_p3), [#allocation10], 256  }
 0x18f   : > { %2046 = vsyncadd (%p1899_p3), [#allocation10], 4294967040 }
 0x190 PF: > { %p15_p0 = scmp.ge.s32.totalorder %s2137_s22, 4   ;;  %s2618_s12 = smov %s2053_s13 }
 0x191   : > { %s2619_s13 = smov %s2057_s14  ;;  %s2620_s14 = smov %s2154_s30 }
 0x192   : > { %s2621_s15 = smov %s2137_s22  ;;  %17 = sbr.rel (!%p15_p0) target bundleno = 5 (0x5), region = 328 }
 0x197   :  { %1397 = vsyncpa [#allocation9], 1 }
 0x198   :  { %1399 = vsyncpa [#allocation9 + $0x1], 1 }
 0x199   :  { %1400 = vsyncpa [#allocation12], 1 }
 0x19a   :  { %1401 = vsyncpa [#allocation10], 1 }
 0x19b   :  { %1403 = vsyncpa [#allocation10 + $0x1], 1 }

</bundles_post_ra>
